<compile_context>
chip_gen: v5e
topology: v5e:2x2
jax: 0.10.0
libtpu: 0.0.40
codegen_flags: <defaults>
</compile_context>

<pallas_src>
import jax
import jax.numpy as jnp
from jax import lax
from jax.experimental import pallas as pl
from jax.experimental.pallas import tpu as pltpu

# ---------------- model config (small synthetic sizes) ----------------
B = 2            # batch
L = 16           # win_size
F = 4            # feature_num
D = 64           # d_model (PyTorch default 512; kept small, synthetic weights)
H = 4            # num_heads
DH = D // H
E_LAYERS = 2
NC = 3           # num_classes
NC_PAD = 128     # lane-dense padded logits width
DFF = 4 * D      # encoder FFN hidden dim
C2 = D // 2
C4 = D // 4
BL = B * L
LN_EPS = 1e-5
BN_EPS = 1e-5
ATTN_SCALE = 1.0 / float(DH) ** 0.5
NEG_INF = -1e9
BF = jnp.bfloat16

# ---- slab layouts (host packing and kernel slicing must agree) ----
# row_vec slab (2*BL, 128) f32 lane offsets / row blocks
RV_BN1S, RV_BN1T, RV_BN2S, RV_BN2T, RV_MPREV, RV_MNEXT, RV_EMB = 0, 1, 2, 3, 4, 5, 64
# smat slab (32, 128) bf16 row offsets
SM_EMBW, SM_BCAST, SM_HW, SM_AVG, SM_ROWS = 0, 4, 8, 24, 32
# svec slab (8, 128) f32 rows
SV_C1B, SV_C2B, SV_HB = 0, 1, 2
# per-layer slab (E, 8, 4*D) f32 rows
LR_QKVB, LR_B1, LR_MISC, LR_LN2 = 0, 1, 2, 3


def _layer_norm(x, g, b):
    m = jnp.mean(x, axis=-1, keepdims=True)
    v = jnp.mean(jnp.square(x - m), axis=-1, keepdims=True)
    return (x - m) * lax.rsqrt(v + LN_EPS) * g + b


# ---------------- single fused kernel ----------------
def fused_kernel(x_ref, smat_ref, rowv_ref, svec_ref, layv_ref,
                 wqkv_ref, wo_ref, w1_ref, w2_ref,
                 blksum_ref, c1w_ref, c2w_ref, o_ref):
    smat = smat_ref[...]           # (32,128)  bf16  small matmul operands
    rowv = rowv_ref[...]           # (64,128)  f32   per-row constants + attn mask
    svec = svec_ref[...]           # (8,128)   f32   small bias vectors
    blksum = blksum_ref[...]       # (128,128) bf16  block-diag ones (softmax sums)

    emb_w = smat[SM_EMBW:SM_EMBW + F, 0:D]          # (4,64)
    bcast4 = smat[SM_BCAST:SM_BCAST + H, :]         # (4,128)  per-head max bcast
    hw = smat[SM_HW:SM_HW + C4, :]                  # (16,128) padded head weight
    avg_m = smat[SM_AVG:SM_AVG + B, 0:BL]           # (2,32)   AdaptiveAvgPool1d(1)

    bn1s = rowv[0:BL, RV_BN1S:RV_BN1S + 1]
    bn1t = rowv[0:BL, RV_BN1T:RV_BN1T + 1]
    bn2s = rowv[0:BL, RV_BN2S:RV_BN2S + 1]
    bn2t = rowv[0:BL, RV_BN2T:RV_BN2T + 1]
    mprev = rowv[0:BL, RV_MPREV:RV_MPREV + 1]
    mnext = rowv[0:BL, RV_MNEXT:RV_MNEXT + 1]
    emb_pb = rowv[0:BL, RV_EMB:RV_EMB + D]          # PE (tiled) + embedding bias
    mask_pk = rowv[BL:2 * BL, :]                    # block-diag mask, tiled x H

    c1b = svec[SV_C1B:SV_C1B + 1, 0:D]
    c2b = svec[SV_C2B:SV_C2B + 1, 0:C2]
    hb = svec[SV_HB:SV_HB + 1, :]

    # Embedding: value projection + (positional encoding + bias), batch folded.
    h = jnp.dot(x_ref[...].astype(BF), emb_w,
                preferred_element_type=jnp.float32) + emb_pb            # (BL,D)

    # Encoder layers (statically unrolled); per-sample attention via the
    # block-diagonal additive mask on the batch-folded row axis.
    for li in range(E_LAYERS):
        lv = layv_ref[li]                                               # (8,256)
        bqkv = lv[LR_QKVB:LR_QKVB + 1, 0:3 * D]     # [bq*scale | 0 (bk dropped) | bv]
        b1 = lv[LR_B1:LR_B1 + 1, :]
        bo = lv[LR_MISC:LR_MISC + 1, 0:D]
        b2 = lv[LR_MISC:LR_MISC + 1, D:2 * D]
        g1 = lv[LR_MISC:LR_MISC + 1, 2 * D:3 * D]
        be1 = lv[LR_MISC:LR_MISC + 1, 3 * D:4 * D]
        g2 = lv[LR_LN2:LR_LN2 + 1, 0:D]
        be2 = lv[LR_LN2:LR_LN2 + 1, D:2 * D]

        # Fused QKV: one lane-dense (BL,64)x(64,192) matmul per layer.
        qkv = jnp.dot(h.astype(BF), wqkv_ref[li],
                      preferred_element_type=jnp.float32) + bqkv        # (BL,192)

        # Per-head (BL,BL) score blocks packed lane-dense -> (BL, H*BL)=(32,128).
        # Attention scale is pre-folded into Wq/bq host-side.
        s_blocks = [
            jnp.einsum("qd,kd->qk",
                       qkv[:, hd * DH:(hd + 1) * DH].astype(BF),
                       qkv[:, D + hd * DH:D + (hd + 1) * DH].astype(BF),
                       preferred_element_type=jnp.float32)
            for hd in range(H)]
        s_pk = jnp.concatenate(s_blocks, axis=-1) + mask_pk             # (32,128)

        # Per-head row max (static 32-lane slices) broadcast back via a tiny
        # matmul, then exp / sum / reciprocal on full 128-lane vregs.
        m_cat = jnp.concatenate(
            [jnp.max(s_pk[:, hd * BL:(hd + 1) * BL], axis=-1, keepdims=True)
             for hd in range(H)], axis=-1)                              # (32,4)
        m_b = jnp.dot(m_cat.astype(BF), bcast4,
                      preferred_element_type=jnp.float32)               # (32,128)
        p_pk = jnp.exp(s_pk - m_b)
        denom = jnp.dot(p_pk.astype(BF), blksum,
                        preferred_element_type=jnp.float32)             # (32,128)
        p_pk = p_pk * pl.reciprocal(denom, approx=True)

        # P@V per head, lane-concat to (BL,D), single fused output projection.
        heads = jnp.concatenate(
            [jnp.dot(p_pk[:, hd * BL:(hd + 1) * BL].astype(BF),
                     qkv[:, 2 * D + hd * DH:2 * D + (hd + 1) * DH].astype(BF),
                     preferred_element_type=jnp.float32)
             for hd in range(H)], axis=-1)                              # (BL,D)
        attn = jnp.dot(heads.astype(BF), wo_ref[li],
                       preferred_element_type=jnp.float32) + bo

        h1 = _layer_norm(h + attn, g1, be1)
        f = jnp.maximum(
            jnp.dot(h1.astype(BF), w1_ref[li],
                    preferred_element_type=jnp.float32) + b1, 0.0)
        f = jnp.dot(f.astype(BF), w2_ref[li],
                    preferred_element_type=jnp.float32) + b2
        h = _layer_norm(h1 + f, g2, be2)

    # CNN1 (k=1 conv == channel matmul; output channels permuted even|odd),
    # folded eval-mode BatchNorm1d(win_size), Tanh, then MaxPool via lane split.
    y = jnp.dot(h.astype(BF), c1w_ref[...],
                preferred_element_type=jnp.float32) + c1b               # (BL,D)
    y = jnp.tanh(y * bn1s + bn1t)
    pool1 = jnp.maximum(y[:, 0:C2], y[:, C2:D])                         # (BL,C2)

    # CNN2 (k=3, pad=1 along L): sublane rolls + per-sample boundary masks,
    # all three taps fused into one (BL,96)x(96,C2) matmul.
    y_prev = pltpu.roll(pool1, 1, axis=0) * mprev
    y_next = pltpu.roll(pool1, BL - 1, axis=0) * mnext
    cat = jnp.concatenate([y_prev, pool1, y_next], axis=-1)             # (BL,3*C2)
    y2 = jnp.dot(cat.astype(BF), c2w_ref[...],
                 preferred_element_type=jnp.float32) + c2b              # (BL,C2)
    y2 = jnp.tanh(y2 * bn2s + bn2t)
    pool2 = jnp.maximum(y2[:, 0:C4], y2[:, C4:C2])                      # (BL,C4)

    # AdaptiveAvgPool1d(1) over L + padded (lane-dense) classifier head.
    pooled = jnp.dot(avg_m, pool2.astype(BF),
                     preferred_element_type=jnp.float32)                # (B,C4)
    o_ref[...] = jnp.dot(pooled.astype(BF), hw,
                         preferred_element_type=jnp.float32) + hb       # (B,128)


# ---------------- pallas_call wrapper ----------------
def _full_spec(shape):
    zeros = (0,) * len(shape)
    return pl.BlockSpec(tuple(shape), lambda i, _z=zeros: _z)


def forward(x, consts):
    args = (x.reshape(BL, F),) + tuple(consts)
    out = pl.pallas_call(
        fused_kernel,
        out_shape=jax.ShapeDtypeStruct((B, NC_PAD), jnp.float32),
        grid=(1,),
        in_specs=[_full_spec(a.shape) for a in args],
        out_specs=_full_spec((B, NC_PAD)),
        compiler_params=pltpu.CompilerParams(
            dimension_semantics=("arbitrary",),
            vmem_limit_bytes=32 * 1024 * 1024),
        cost_estimate=pl.CostEstimate(
            flops=10_000_000, transcendentals=20_000, bytes_accessed=320_000),
    )(*args)
    return out[:, :NC]


# ---------------- host-side parameter preparation ----------------
def prepare_kernel_consts(p):
    rows = jnp.arange(BL)
    sample = rows // L

    # ---- per-row slab: BN scale/shift, conv boundary masks, PE+bias, attn mask
    emb_pb = jnp.tile(p["pe"], (B, 1)) + p["emb_b"]                     # (BL,D)
    attn_mask = jnp.where(sample[:, None] == sample[None, :],
                          0.0, NEG_INF).astype(jnp.float32)             # (BL,BL)
    mask_pk = jnp.tile(attn_mask, (1, H))                               # (BL,128)

    bn1_scale = p["bn1g"] * lax.rsqrt(p["bn1v"] + BN_EPS)               # (L,1)
    bn1s = jnp.tile(bn1_scale, (B, 1))
    bn1t = jnp.tile(p["bn1b"] - p["bn1m"] * bn1_scale, (B, 1))
    bn2_scale = p["bn2g"] * lax.rsqrt(p["bn2v"] + BN_EPS)
    bn2s = jnp.tile(bn2_scale, (B, 1))
    bn2t = jnp.tile(p["bn2b"] - p["bn2m"] * bn2_scale, (B, 1))

    mprev = (rows % L != 0).astype(jnp.float32)[:, None]                # (BL,1)
    mnext = (rows % L != L - 1).astype(jnp.float32)[:, None]

    rowv = jnp.zeros((2 * BL, 128), jnp.float32)
    rowv = rowv.at[0:BL, RV_BN1S:RV_BN1S + 1].set(bn1s)
    rowv = rowv.at[0:BL, RV_BN1T:RV_BN1T + 1].set(bn1t)
    rowv = rowv.at[0:BL, RV_BN2S:RV_BN2S + 1].set(bn2s)
    rowv = rowv.at[0:BL, RV_BN2T:RV_BN2T + 1].set(bn2t)
    rowv = rowv.at[0:BL, RV_MPREV:RV_MPREV + 1].set(mprev)
    rowv = rowv.at[0:BL, RV_MNEXT:RV_MNEXT + 1].set(mnext)
    rowv = rowv.at[0:BL, RV_EMB:RV_EMB + D].set(emb_pb)
    rowv = rowv.at[BL:2 * BL, :].set(mask_pk)

    # ---- small bf16 matmul-operand slab: emb_w | max-bcast | head | avgpool
    bcast4 = (jnp.arange(H)[:, None] ==
              (jnp.arange(H * BL)[None, :] // BL)).astype(jnp.float32)  # (4,128)
    hw_pad = jnp.zeros((C4, NC_PAD), jnp.float32).at[:, :NC].set(p["hw"])
    avg_mat = ((jnp.arange(B)[:, None] == (jnp.arange(BL)[None, :] // L))
               .astype(jnp.float32) / float(L))                         # (B,BL)
    smat = jnp.zeros((SM_ROWS, 128), jnp.float32)
    smat = smat.at[SM_EMBW:SM_EMBW + F, 0:D].set(p["emb_w"])
    smat = smat.at[SM_BCAST:SM_BCAST + H, :].set(bcast4)
    smat = smat.at[SM_HW:SM_HW + C4, :].set(hw_pad)
    smat = smat.at[SM_AVG:SM_AVG + B, 0:BL].set(avg_mat)
    smat = smat.astype(BF)

    # ---- small f32 bias slab (CNN biases channel-permuted, padded head bias)
    perm1 = jnp.concatenate([jnp.arange(0, D, 2), jnp.arange(1, D, 2)])
    perm2 = jnp.concatenate([jnp.arange(0, C2, 2), jnp.arange(1, C2, 2)])
    svec = jnp.zeros((8, 128), jnp.float32)
    svec = svec.at[SV_C1B, 0:D].set(p["c1b"][0, perm1])
    svec = svec.at[SV_C2B, 0:C2].set(p["c2b"][0, perm2])
    svec = svec.at[SV_HB, 0:NC].set(p["hb"][0])

    # ---- per-layer bias / LayerNorm slab (E, 8, 4*D)
    def pack_layer(lp):
        r = jnp.zeros((8, 4 * D), jnp.float32)
        r = r.at[LR_QKVB, 0:D].set(lp["bq"][0] * ATTN_SCALE)
        # K bias dropped: softmax(q.(k+b)) == softmax(q.k) exactly.
        r = r.at[LR_QKVB, 2 * D:3 * D].set(lp["bv"][0])
        r = r.at[LR_B1, :].set(lp["b1"][0])
        r = r.at[LR_MISC, 0:D].set(lp["bo"][0])
        r = r.at[LR_MISC, D:2 * D].set(lp["b2"][0])
        r = r.at[LR_MISC, 2 * D:3 * D].set(lp["g1"][0])
        r = r.at[LR_MISC, 3 * D:4 * D].set(lp["be1"][0])
        r = r.at[LR_LN2, 0:D].set(lp["g2"][0])
        r = r.at[LR_LN2, D:2 * D].set(lp["be2"][0])
        return r
    layv = jnp.stack([pack_layer(lp) for lp in p["layers"]], 0)

    # ---- big bf16 weights (attention scale folded into Wq; K-bias dropped)
    wqkv = jnp.stack(
        [jnp.concatenate([lp["wq"] * ATTN_SCALE, lp["wk"], lp["wv"]], axis=1)
         for lp in p["layers"]], 0).astype(BF)                          # (E,D,3D)
    wo = jnp.stack([lp["wo"] for lp in p["layers"]], 0).astype(BF)      # (E,D,D)
    w1 = jnp.stack([lp["w1"] for lp in p["layers"]], 0).astype(BF)      # (E,D,DFF)
    w2 = jnp.stack([lp["w2"] for lp in p["layers"]], 0).astype(BF)      # (E,DFF,D)

    blksum = ((jnp.arange(H * BL)[:, None] // BL) ==
              (jnp.arange(H * BL)[None, :] // BL)).astype(jnp.float32).astype(BF)

    c1w_p = p["c1w"][:, perm1].astype(BF)                               # (D,D)
    c2w_stk = p["c2w"][:, :, perm2].reshape(3 * C2, C2).astype(BF)      # (96,C2)

    return (smat, rowv, svec, layv, wqkv, wo, w1, w2, blksum, c1w_p, c2w_stk)


# ---------------- deterministic synthetic parameter init ----------------
def init_params(key):
    ks = iter(jax.random.split(key, 64))

    def nrm(shape, scale):
        return jax.random.normal(next(ks), shape, jnp.float32) * scale

    p = {}
    p["emb_w"] = nrm((F, D), 1.0 / F ** 0.5)
    p["emb_b"] = nrm((1, D), 0.02)
    pos = jnp.arange(L, dtype=jnp.float32)[:, None]
    dim = jnp.arange(D, dtype=jnp.float32)[None, :]
    angle = pos / jnp.power(10000.0, (2.0 * jnp.floor(dim / 2.0)) / D)
    p["pe"] = jnp.where(dim % 2 == 0, jnp.sin(angle), jnp.cos(angle)).astype(jnp.float32)

    layers = []
    for _ in range(E_LAYERS):
        lp = {}
        s = 1.0 / D ** 0.5
        for wn, bn in (("wq", "bq"), ("wk", "bk"), ("wv", "bv"), ("wo", "bo")):
            lp[wn] = nrm((D, D), s)
            lp[bn] = nrm((1, D), 0.02)
        lp["g1"] = 1.0 + nrm((1, D), 0.02)
        lp["be1"] = nrm((1, D), 0.02)
        lp["w1"] = nrm((D, DFF), s)
        lp["b1"] = nrm((1, DFF), 0.02)
        lp["w2"] = nrm((DFF, D), 1.0 / DFF ** 0.5)
        lp["b2"] = nrm((1, D), 0.02)
        lp["g2"] = 1.0 + nrm((1, D), 0.02)
        lp["be2"] = nrm((1, D), 0.02)
        layers.append(lp)
    p["layers"] = layers

    # CNN1 weight stored as (C_in, C_out) == torch conv1.weight[co, ci, 0].T
    p["c1w"] = nrm((D, D), 1.0 / D ** 0.5)
    p["c1b"] = nrm((1, D), 0.02)
    p["bn1g"] = 1.0 + nrm((L, 1), 0.05)
    p["bn1b"] = nrm((L, 1), 0.05)
    p["bn1m"] = nrm((L, 1), 0.05)
    p["bn1v"] = 1.0 + jnp.abs(nrm((L, 1), 0.05))
    # CNN2 weight stored as (tap, C_in, C_out)
    p["c2w"] = nrm((3, C2, C2), 1.0 / (3 * C2) ** 0.5)
    p["c2b"] = nrm((1, C2), 0.02)
    p["bn2g"] = 1.0 + nrm((L, 1), 0.05)
    p["bn2b"] = nrm((L, 1), 0.05)
    p["bn2m"] = nrm((L, 1), 0.05)
    p["bn2v"] = 1.0 + jnp.abs(nrm((L, 1), 0.05))
    # head weight stored as (C4, NC) == torch head.weight.T
    p["hw"] = nrm((C4, NC), 1.0 / C4 ** 0.5)
    p["hb"] = nrm((1, NC), 0.02)
    return p


# ---------------- pure-JAX f32 reference for validation ----------------
def ref_forward(x, p):
    out = jnp.einsum("blf,fd->bld", x, p["emb_w"]) + p["emb_b"] + p["pe"]
    for lp in p["layers"]:
        q = out @ lp["wq"] + lp["bq"]
        k = out @ lp["wk"] + lp["bk"]
        v = out @ lp["wv"] + lp["bv"]
        qh = q.reshape(B, L, H, DH).transpose(0, 2, 1, 3)
        kh = k.reshape(B, L, H, DH).transpose(0, 2, 1, 3)
        vh = v.reshape(B, L, H, DH).transpose(0, 2, 1, 3)
        s = jnp.einsum("bhqd,bhkd->bhqk", qh, kh) * ATTN_SCALE
        pr = jax.nn.softmax(s, axis=-1)
        a = jnp.einsum("bhqk,bhkd->bhqd", pr, vh).transpose(0, 2, 1, 3).reshape(B, L, D)
        a = a @ lp["wo"] + lp["bo"]
        h1 = _layer_norm(out + a, lp["g1"], lp["be1"])
        f = jax.nn.relu(h1 @ lp["w1"] + lp["b1"]) @ lp["w2"] + lp["b2"]
        out = _layer_norm(h1 + f, lp["g2"], lp["be2"])

    h = out @ p["c1w"] + p["c1b"]
    h = (h - p["bn1m"][None]) * lax.rsqrt(p["bn1v"][None] + BN_EPS) * p["bn1g"][None] + p["bn1b"][None]
    h = jnp.tanh(h)
    h = h.reshape(B, L, C2, 2).max(axis=-1)
    hp = jnp.pad(h, ((0, 0), (1, 1), (0, 0)))
    h2 = (jnp.einsum("blc,cd->bld", hp[:, :-2], p["c2w"][0])
          + jnp.einsum("blc,cd->bld", hp[:, 1:-1], p["c2w"][1])
          + jnp.einsum("blc,cd->bld", hp[:, 2:], p["c2w"][2]) + p["c2b"])
    h2 = (h2 - p["bn2m"][None]) * lax.rsqrt(p["bn2v"][None] + BN_EPS) * p["bn2g"][None] + p["bn2b"][None]
    h2 = jnp.tanh(h2)
    h3 = h2.reshape(B, L, C4, 2).max(axis=-1)
    pooled = h3.mean(axis=1)
    return pooled @ p["hw"] + p["hb"]


if __name__ == "__main__":
    key = jax.random.PRNGKey(0)
    pkey, xkey = jax.random.split(key)
    params = init_params(pkey)
    x = jax.random.normal(xkey, (B, L, F), jnp.float32)

    consts = prepare_kernel_consts(params)
    out = jax.jit(forward)(x, consts)
    out = jax.block_until_ready(out)

    assert out.shape == (B, NC)
    assert bool(jnp.all(jnp.isfinite(out)))
    ref = ref_forward(x, params)
    # bf16 MXU operands (per perf review) -> looser tolerance vs the f32 reference.
    assert bool(jnp.allclose(out, ref, rtol=5e-2, atol=5e-2)), (out, ref)
    print("KERNEL_OK")
</pallas_src>

<mosaic_0001>
module attributes {stable_mosaic.version = 11 : i64} {
  func.func @fused_kernel(%arg0: i32, %arg1: memref<32x4xf32, #tpu.memory_space<vmem>>, %arg2: memref<32x128xbf16, #tpu.memory_space<vmem>>, %arg3: memref<64x128xf32, #tpu.memory_space<vmem>>, %arg4: memref<8x128xf32, #tpu.memory_space<vmem>>, %arg5: memref<2x8x256xf32, #tpu.memory_space<vmem>>, %arg6: memref<2x64x192xbf16, #tpu.memory_space<vmem>>, %arg7: memref<2x64x64xbf16, #tpu.memory_space<vmem>>, %arg8: memref<2x64x256xbf16, #tpu.memory_space<vmem>>, %arg9: memref<2x256x64xbf16, #tpu.memory_space<vmem>>, %arg10: memref<128x128xbf16, #tpu.memory_space<vmem>>, %arg11: memref<64x64xbf16, #tpu.memory_space<vmem>>, %arg12: memref<96x32xbf16, #tpu.memory_space<vmem>>, %arg13: memref<2x128xf32, #tpu.memory_space<vmem>>) attributes {dimension_semantics = [#tpu.dimension_semantics<arbitrary>], iteration_bounds = array<i64: 1>, scalar_prefetch = 0 : i64, scratch_operands = 0 : i64, tpu.core_type = #tpu.core_type<tc>, window_params = [{pipeline_mode = #tpu.pipeline_mode<synchronous>, transform_indices = @transform_0, window_bounds = array<i64: 32, 4>}, {pipeline_mode = #tpu.pipeline_mode<synchronous>, transform_indices = @transform_1, window_bounds = array<i64: 32, 128>}, {pipeline_mode = #tpu.pipeline_mode<synchronous>, transform_indices = @transform_2, window_bounds = array<i64: 64, 128>}, {pipeline_mode = #tpu.pipeline_mode<synchronous>, transform_indices = @transform_3, window_bounds = array<i64: 8, 128>}, {pipeline_mode = #tpu.pipeline_mode<synchronous>, transform_indices = @transform_4, window_bounds = array<i64: 2, 8, 256>}, {pipeline_mode = #tpu.pipeline_mode<synchronous>, transform_indices = @transform_5, window_bounds = array<i64: 2, 64, 192>}, {pipeline_mode = #tpu.pipeline_mode<synchronous>, transform_indices = @transform_6, window_bounds = array<i64: 2, 64, 64>}, {pipeline_mode = #tpu.pipeline_mode<synchronous>, transform_indices = @transform_7, window_bounds = array<i64: 2, 64, 256>}, {pipeline_mode = #tpu.pipeline_mode<synchronous>, transform_indices = @transform_8, window_bounds = array<i64: 2, 256, 64>}, {pipeline_mode = #tpu.pipeline_mode<synchronous>, transform_indices = @transform_9, window_bounds = array<i64: 128, 128>}, {pipeline_mode = #tpu.pipeline_mode<synchronous>, transform_indices = @transform_10, window_bounds = array<i64: 64, 64>}, {pipeline_mode = #tpu.pipeline_mode<synchronous>, transform_indices = @transform_11, window_bounds = array<i64: 96, 32>}, {pipeline_mode = #tpu.pipeline_mode<synchronous>, transform_indices = @transform_12, window_bounds = array<i64: 2, 128>}]} {
    %c0 = arith.constant 0 : index
    %c0_0 = arith.constant 0 : index
    %0 = vector.load %arg2[%c0, %c0_0] : memref<32x128xbf16, #tpu.memory_space<vmem>>, vector<32x128xbf16>
    %c0_1 = arith.constant 0 : index
    %c0_2 = arith.constant 0 : index
    %1 = vector.load %arg3[%c0_1, %c0_2] : memref<64x128xf32, #tpu.memory_space<vmem>>, vector<64x128xf32>
    %c0_3 = arith.constant 0 : index
    %c0_4 = arith.constant 0 : index
    %2 = vector.load %arg4[%c0_3, %c0_4] : memref<8x128xf32, #tpu.memory_space<vmem>>, vector<8x128xf32>
    %c0_5 = arith.constant 0 : index
    %c0_6 = arith.constant 0 : index
    %3 = vector.load %arg10[%c0_5, %c0_6] : memref<128x128xbf16, #tpu.memory_space<vmem>>, vector<128x128xbf16>
    %4 = vector.extract_strided_slice %0 {offsets = [0, 0], sizes = [4, 64], strides = [1, 1]} : vector<32x128xbf16> to vector<4x64xbf16>
    %5 = vector.extract_strided_slice %0 {offsets = [4, 0], sizes = [4, 128], strides = [1, 1]} : vector<32x128xbf16> to vector<4x128xbf16>
    %6 = vector.extract_strided_slice %0 {offsets = [8, 0], sizes = [16, 128], strides = [1, 1]} : vector<32x128xbf16> to vector<16x128xbf16>
    %7 = vector.extract_strided_slice %0 {offsets = [24, 0], sizes = [2, 32], strides = [1, 1]} : vector<32x128xbf16> to vector<2x32xbf16>
    %8 = vector.extract_strided_slice %1 {offsets = [0, 0], sizes = [32, 1], strides = [1, 1]} : vector<64x128xf32> to vector<32x1xf32>
    %9 = vector.extract_strided_slice %1 {offsets = [0, 1], sizes = [32, 1], strides = [1, 1]} : vector<64x128xf32> to vector<32x1xf32>
    %10 = vector.extract_strided_slice %1 {offsets = [0, 2], sizes = [32, 1], strides = [1, 1]} : vector<64x128xf32> to vector<32x1xf32>
    %11 = vector.extract_strided_slice %1 {offsets = [0, 3], sizes = [32, 1], strides = [1, 1]} : vector<64x128xf32> to vector<32x1xf32>
    %12 = vector.extract_strided_slice %1 {offsets = [0, 4], sizes = [32, 1], strides = [1, 1]} : vector<64x128xf32> to vector<32x1xf32>
    %13 = vector.extract_strided_slice %1 {offsets = [0, 5], sizes = [32, 1], strides = [1, 1]} : vector<64x128xf32> to vector<32x1xf32>
    %14 = vector.extract_strided_slice %1 {offsets = [0, 64], sizes = [32, 64], strides = [1, 1]} : vector<64x128xf32> to vector<32x64xf32>
    %15 = vector.extract_strided_slice %1 {offsets = [32, 0], sizes = [32, 128], strides = [1, 1]} : vector<64x128xf32> to vector<32x128xf32>
    %16 = vector.extract_strided_slice %2 {offsets = [0, 0], sizes = [1, 64], strides = [1, 1]} : vector<8x128xf32> to vector<1x64xf32>
    %17 = vector.extract_strided_slice %2 {offsets = [1, 0], sizes = [1, 32], strides = [1, 1]} : vector<8x128xf32> to vector<1x32xf32>
    %18 = vector.extract_strided_slice %2 {offsets = [2, 0], sizes = [1, 128], strides = [1, 1]} : vector<8x128xf32> to vector<1x128xf32>
    %c0_7 = arith.constant 0 : index
    %c0_8 = arith.constant 0 : index
    %19 = vector.load %arg1[%c0_7, %c0_8] : memref<32x4xf32, #tpu.memory_space<vmem>>, vector<32x4xf32>
    %20 = arith.truncf %19 : vector<32x4xf32> to vector<32x4xbf16>
    %cst = arith.constant dense<0.000000e+00> : vector<32x64xf32>
    %21 = tpu.matmul %20, %4, %cst {dimension_numbers = #tpu.dot_dimension_numbers<[1], [0], [0], [1], [0, 0, 1, 1], [], []>} : vector<32x4xbf16>, vector<4x64xbf16>, vector<32x64xf32> -> vector<32x64xf32>
    %22 = arith.addf %21, %14 : vector<32x64xf32>
    %c0_9 = arith.constant 0 : index
    %c0_10 = arith.constant 0 : index
    %c0_11 = arith.constant 0 : index
    %23 = vector.load %arg5[%c0_9, %c0_10, %c0_11] : memref<2x8x256xf32, #tpu.memory_space<vmem>>, vector<1x8x256xf32>
    %24 = vector.shape_cast %23 : vector<1x8x256xf32> to vector<8x256xf32>
    %25 = vector.extract_strided_slice %24 {offsets = [0, 0], sizes = [1, 192], strides = [1, 1]} : vector<8x256xf32> to vector<1x192xf32>
    %26 = vector.extract_strided_slice %24 {offsets = [1, 0], sizes = [1, 256], strides = [1, 1]} : vector<8x256xf32> to vector<1x256xf32>
    %27 = vector.extract_strided_slice %24 {offsets = [2, 0], sizes = [1, 64], strides = [1, 1]} : vector<8x256xf32> to vector<1x64xf32>
    %28 = vector.extract_strided_slice %24 {offsets = [2, 64], sizes = [1, 64], strides = [1, 1]} : vector<8x256xf32> to vector<1x64xf32>
    %29 = vector.extract_strided_slice %24 {offsets = [2, 128], sizes = [1, 64], strides = [1, 1]} : vector<8x256xf32> to vector<1x64xf32>
    %30 = vector.extract_strided_slice %24 {offsets = [2, 192], sizes = [1, 64], strides = [1, 1]} : vector<8x256xf32> to vector<1x64xf32>
    %31 = vector.extract_strided_slice %24 {offsets = [3, 0], sizes = [1, 64], strides = [1, 1]} : vector<8x256xf32> to vector<1x64xf32>
    %32 = vector.extract_strided_slice %24 {offsets = [3, 64], sizes = [1, 64], strides = [1, 1]} : vector<8x256xf32> to vector<1x64xf32>
    %33 = arith.truncf %22 : vector<32x64xf32> to vector<32x64xbf16>
    %c0_12 = arith.constant 0 : index
    %c0_13 = arith.constant 0 : index
    %c0_14 = arith.constant 0 : index
    %34 = vector.load %arg6[%c0_12, %c0_13, %c0_14] : memref<2x64x192xbf16, #tpu.memory_space<vmem>>, vector<1x64x192xbf16>
    %35 = vector.shape_cast %34 : vector<1x64x192xbf16> to vector<64x192xbf16>
    %cst_15 = arith.constant dense<0.000000e+00> : vector<32x192xf32>
    %36 = tpu.matmul %33, %35, %cst_15 {dimension_numbers = #tpu.dot_dimension_numbers<[1], [0], [0], [1], [0, 0, 1, 1], [], []>} : vector<32x64xbf16>, vector<64x192xbf16>, vector<32x192xf32> -> vector<32x192xf32>
    %37 = vector.broadcast %25 : vector<1x192xf32> to vector<32x192xf32>
    %38 = arith.addf %36, %37 : vector<32x192xf32>
    %39 = vector.extract_strided_slice %38 {offsets = [0, 0], sizes = [32, 16], strides = [1, 1]} : vector<32x192xf32> to vector<32x16xf32>
    %40 = arith.truncf %39 : vector<32x16xf32> to vector<32x16xbf16>
    %41 = vector.extract_strided_slice %38 {offsets = [0, 64], sizes = [32, 16], strides = [1, 1]} : vector<32x192xf32> to vector<32x16xf32>
    %42 = arith.truncf %41 : vector<32x16xf32> to vector<32x16xbf16>
    "tpu.trace_start"() <{level = 10 : i32, message = "qd,kd->qk"}> : () -> ()
    %cst_16 = arith.constant dense<0.000000e+00> : vector<32x32xf32>
    %43 = tpu.matmul %40, %42, %cst_16 {dimension_numbers = #tpu.dot_dimension_numbers<[1], [1], [0], [0], [0, 0, 1, 0], [], []>} : vector<32x16xbf16>, vector<32x16xbf16>, vector<32x32xf32> -> vector<32x32xf32>
    "tpu.trace_stop"() : () -> ()
    %44 = vector.extract_strided_slice %38 {offsets = [0, 16], sizes = [32, 16], strides = [1, 1]} : vector<32x192xf32> to vector<32x16xf32>
    %45 = arith.truncf %44 : vector<32x16xf32> to vector<32x16xbf16>
    %46 = vector.extract_strided_slice %38 {offsets = [0, 80], sizes = [32, 16], strides = [1, 1]} : vector<32x192xf32> to vector<32x16xf32>
    %47 = arith.truncf %46 : vector<32x16xf32> to vector<32x16xbf16>
    "tpu.trace_start"() <{level = 10 : i32, message = "qd,kd->qk"}> : () -> ()
    %cst_17 = arith.constant dense<0.000000e+00> : vector<32x32xf32>
    %48 = tpu.matmul %45, %47, %cst_17 {dimension_numbers = #tpu.dot_dimension_numbers<[1], [1], [0], [0], [0, 0, 1, 0], [], []>} : vector<32x16xbf16>, vector<32x16xbf16>, vector<32x32xf32> -> vector<32x32xf32>
    "tpu.trace_stop"() : () -> ()
    %49 = vector.extract_strided_slice %38 {offsets = [0, 32], sizes = [32, 16], strides = [1, 1]} : vector<32x192xf32> to vector<32x16xf32>
    %50 = arith.truncf %49 : vector<32x16xf32> to vector<32x16xbf16>
    %51 = vector.extract_strided_slice %38 {offsets = [0, 96], sizes = [32, 16], strides = [1, 1]} : vector<32x192xf32> to vector<32x16xf32>
    %52 = arith.truncf %51 : vector<32x16xf32> to vector<32x16xbf16>
    "tpu.trace_start"() <{level = 10 : i32, message = "qd,kd->qk"}> : () -> ()
    %cst_18 = arith.constant dense<0.000000e+00> : vector<32x32xf32>
    %53 = tpu.matmul %50, %52, %cst_18 {dimension_numbers = #tpu.dot_dimension_numbers<[1], [1], [0], [0], [0, 0, 1, 0], [], []>} : vector<32x16xbf16>, vector<32x16xbf16>, vector<32x32xf32> -> vector<32x32xf32>
    "tpu.trace_stop"() : () -> ()
    %54 = vector.extract_strided_slice %38 {offsets = [0, 48], sizes = [32, 16], strides = [1, 1]} : vector<32x192xf32> to vector<32x16xf32>
    %55 = arith.truncf %54 : vector<32x16xf32> to vector<32x16xbf16>
    %56 = vector.extract_strided_slice %38 {offsets = [0, 112], sizes = [32, 16], strides = [1, 1]} : vector<32x192xf32> to vector<32x16xf32>
    %57 = arith.truncf %56 : vector<32x16xf32> to vector<32x16xbf16>
    "tpu.trace_start"() <{level = 10 : i32, message = "qd,kd->qk"}> : () -> ()
    %cst_19 = arith.constant dense<0.000000e+00> : vector<32x32xf32>
    %58 = tpu.matmul %55, %57, %cst_19 {dimension_numbers = #tpu.dot_dimension_numbers<[1], [1], [0], [0], [0, 0, 1, 0], [], []>} : vector<32x16xbf16>, vector<32x16xbf16>, vector<32x32xf32> -> vector<32x32xf32>
    "tpu.trace_stop"() : () -> ()
    %59 = tpu.concatenate %43, %48, %53, %58 in 1 : vector<32x32xf32>, vector<32x32xf32>, vector<32x32xf32>, vector<32x32xf32> -> vector<32x128xf32>
    %60 = arith.addf %59, %15 : vector<32x128xf32>
    %61 = vector.extract_strided_slice %60 {offsets = [0, 0], sizes = [32, 32], strides = [1, 1]} : vector<32x128xf32> to vector<32x32xf32>
    %cst_20 = arith.constant dense<0xFF800000> : vector<32xf32>
    %62 = vector.multi_reduction <maximumf>, %61, %cst_20 [1] : vector<32x32xf32> to vector<32xf32>
    %63 = vector.shape_cast %62 : vector<32xf32> to vector<32x1xf32>
    %64 = vector.extract_strided_slice %60 {offsets = [0, 32], sizes = [32, 32], strides = [1, 1]} : vector<32x128xf32> to vector<32x32xf32>
    %cst_21 = arith.constant dense<0xFF800000> : vector<32xf32>
    %65 = vector.multi_reduction <maximumf>, %64, %cst_21 [1] : vector<32x32xf32> to vector<32xf32>
    %66 = vector.shape_cast %65 : vector<32xf32> to vector<32x1xf32>
    %67 = vector.extract_strided_slice %60 {offsets = [0, 64], sizes = [32, 32], strides = [1, 1]} : vector<32x128xf32> to vector<32x32xf32>
    %cst_22 = arith.constant dense<0xFF800000> : vector<32xf32>
    %68 = vector.multi_reduction <maximumf>, %67, %cst_22 [1] : vector<32x32xf32> to vector<32xf32>
    %69 = vector.shape_cast %68 : vector<32xf32> to vector<32x1xf32>
    %70 = vector.extract_strided_slice %60 {offsets = [0, 96], sizes = [32, 32], strides = [1, 1]} : vector<32x128xf32> to vector<32x32xf32>
    %cst_23 = arith.constant dense<0xFF800000> : vector<32xf32>
    %71 = vector.multi_reduction <maximumf>, %70, %cst_23 [1] : vector<32x32xf32> to vector<32xf32>
    %72 = vector.shape_cast %71 : vector<32xf32> to vector<32x1xf32>
    %73 = tpu.concatenate %63, %66, %69, %72 in 1 : vector<32x1xf32>, vector<32x1xf32>, vector<32x1xf32>, vector<32x1xf32> -> vector<32x4xf32>
    %74 = arith.truncf %73 : vector<32x4xf32> to vector<32x4xbf16>
    %cst_24 = arith.constant dense<0.000000e+00> : vector<32x128xf32>
    %75 = tpu.matmul %74, %5, %cst_24 {dimension_numbers = #tpu.dot_dimension_numbers<[1], [0], [0], [1], [0, 0, 1, 1], [], []>} : vector<32x4xbf16>, vector<4x128xbf16>, vector<32x128xf32> -> vector<32x128xf32>
    %76 = arith.subf %60, %75 : vector<32x128xf32>
    %77 = math.exp %76 : vector<32x128xf32>
    %78 = arith.truncf %77 : vector<32x128xf32> to vector<32x128xbf16>
    %cst_25 = arith.constant dense<0.000000e+00> : vector<32x128xf32>
    %79 = tpu.matmul %78, %3, %cst_25 {dimension_numbers = #tpu.dot_dimension_numbers<[1], [0], [0], [1], [0, 0, 1, 1], [], []>} : vector<32x128xbf16>, vector<128x128xbf16>, vector<32x128xf32> -> vector<32x128xf32>
    %80 = tpu.reciprocal %79 {approx = true} : vector<32x128xf32> -> vector<32x128xf32>
    %81 = arith.mulf %77, %80 : vector<32x128xf32>
    %82 = vector.extract_strided_slice %81 {offsets = [0, 0], sizes = [32, 32], strides = [1, 1]} : vector<32x128xf32> to vector<32x32xf32>
    %83 = arith.truncf %82 : vector<32x32xf32> to vector<32x32xbf16>
    %84 = vector.extract_strided_slice %38 {offsets = [0, 128], sizes = [32, 16], strides = [1, 1]} : vector<32x192xf32> to vector<32x16xf32>
    %85 = arith.truncf %84 : vector<32x16xf32> to vector<32x16xbf16>
    %cst_26 = arith.constant dense<0.000000e+00> : vector<32x16xf32>
    %86 = tpu.matmul %83, %85, %cst_26 {dimension_numbers = #tpu.dot_dimension_numbers<[1], [0], [0], [1], [0, 0, 1, 1], [], []>} : vector<32x32xbf16>, vector<32x16xbf16>, vector<32x16xf32> -> vector<32x16xf32>
    %87 = vector.extract_strided_slice %81 {offsets = [0, 32], sizes = [32, 32], strides = [1, 1]} : vector<32x128xf32> to vector<32x32xf32>
    %88 = arith.truncf %87 : vector<32x32xf32> to vector<32x32xbf16>
    %89 = vector.extract_strided_slice %38 {offsets = [0, 144], sizes = [32, 16], strides = [1, 1]} : vector<32x192xf32> to vector<32x16xf32>
    %90 = arith.truncf %89 : vector<32x16xf32> to vector<32x16xbf16>
    %cst_27 = arith.constant dense<0.000000e+00> : vector<32x16xf32>
    %91 = tpu.matmul %88, %90, %cst_27 {dimension_numbers = #tpu.dot_dimension_numbers<[1], [0], [0], [1], [0, 0, 1, 1], [], []>} : vector<32x32xbf16>, vector<32x16xbf16>, vector<32x16xf32> -> vector<32x16xf32>
    %92 = vector.extract_strided_slice %81 {offsets = [0, 64], sizes = [32, 32], strides = [1, 1]} : vector<32x128xf32> to vector<32x32xf32>
    %93 = arith.truncf %92 : vector<32x32xf32> to vector<32x32xbf16>
    %94 = vector.extract_strided_slice %38 {offsets = [0, 160], sizes = [32, 16], strides = [1, 1]} : vector<32x192xf32> to vector<32x16xf32>
    %95 = arith.truncf %94 : vector<32x16xf32> to vector<32x16xbf16>
    %cst_28 = arith.constant dense<0.000000e+00> : vector<32x16xf32>
    %96 = tpu.matmul %93, %95, %cst_28 {dimension_numbers = #tpu.dot_dimension_numbers<[1], [0], [0], [1], [0, 0, 1, 1], [], []>} : vector<32x32xbf16>, vector<32x16xbf16>, vector<32x16xf32> -> vector<32x16xf32>
    %97 = vector.extract_strided_slice %81 {offsets = [0, 96], sizes = [32, 32], strides = [1, 1]} : vector<32x128xf32> to vector<32x32xf32>
    %98 = arith.truncf %97 : vector<32x32xf32> to vector<32x32xbf16>
    %99 = vector.extract_strided_slice %38 {offsets = [0, 176], sizes = [32, 16], strides = [1, 1]} : vector<32x192xf32> to vector<32x16xf32>
    %100 = arith.truncf %99 : vector<32x16xf32> to vector<32x16xbf16>
    %cst_29 = arith.constant dense<0.000000e+00> : vector<32x16xf32>
    %101 = tpu.matmul %98, %100, %cst_29 {dimension_numbers = #tpu.dot_dimension_numbers<[1], [0], [0], [1], [0, 0, 1, 1], [], []>} : vector<32x32xbf16>, vector<32x16xbf16>, vector<32x16xf32> -> vector<32x16xf32>
    %102 = tpu.concatenate %86, %91, %96, %101 in 1 : vector<32x16xf32>, vector<32x16xf32>, vector<32x16xf32>, vector<32x16xf32> -> vector<32x64xf32>
    %103 = arith.truncf %102 : vector<32x64xf32> to vector<32x64xbf16>
    %c0_30 = arith.constant 0 : index
    %c0_31 = arith.constant 0 : index
    %c0_32 = arith.constant 0 : index
    %104 = vector.load %arg7[%c0_30, %c0_31, %c0_32] : memref<2x64x64xbf16, #tpu.memory_space<vmem>>, vector<1x64x64xbf16>
    %105 = vector.shape_cast %104 : vector<1x64x64xbf16> to vector<64x64xbf16>
    %cst_33 = arith.constant dense<0.000000e+00> : vector<32x64xf32>
    %106 = tpu.matmul %103, %105, %cst_33 {dimension_numbers = #tpu.dot_dimension_numbers<[1], [0], [0], [1], [0, 0, 1, 1], [], []>} : vector<32x64xbf16>, vector<64x64xbf16>, vector<32x64xf32> -> vector<32x64xf32>
    %107 = vector.broadcast %27 : vector<1x64xf32> to vector<32x64xf32>
    %108 = arith.addf %106, %107 : vector<32x64xf32>
    %109 = arith.addf %22, %108 : vector<32x64xf32>
    %cst_34 = arith.constant dense<0.000000e+00> : vector<32xf32>
    %110 = vector.multi_reduction <add>, %109, %cst_34 [1] : vector<32x64xf32> to vector<32xf32>
    %111 = vector.shape_cast %110 : vector<32xf32> to vector<32x1xf32>
    %cst_35 = arith.constant 6.400000e+01 : f32
    %112 = vector.broadcast %cst_35 : f32 to vector<32x1xf32>
    %113 = arith.divf %111, %112 : vector<32x1xf32>
    %114 = vector.broadcast %113 : vector<32x1xf32> to vector<32x64xf32>
    %115 = arith.subf %109, %114 : vector<32x64xf32>
    %116 = arith.mulf %115, %115 : vector<32x64xf32>
    %cst_36 = arith.constant dense<0.000000e+00> : vector<32xf32>
    %117 = vector.multi_reduction <add>, %116, %cst_36 [1] : vector<32x64xf32> to vector<32xf32>
    %118 = vector.shape_cast %117 : vector<32xf32> to vector<32x1xf32>
    %cst_37 = arith.constant 6.400000e+01 : f32
    %119 = vector.broadcast %cst_37 : f32 to vector<32x1xf32>
    %120 = arith.divf %118, %119 : vector<32x1xf32>
    %121 = vector.broadcast %113 : vector<32x1xf32> to vector<32x64xf32>
    %122 = arith.subf %109, %121 : vector<32x64xf32>
    %cst_38 = arith.constant 9.99999974E-6 : f32
    %123 = vector.broadcast %cst_38 : f32 to vector<32x1xf32>
    %124 = arith.addf %120, %123 : vector<32x1xf32>
    %125 = math.rsqrt %124 : vector<32x1xf32>
    %126 = vector.broadcast %125 : vector<32x1xf32> to vector<32x64xf32>
    %127 = arith.mulf %122, %126 : vector<32x64xf32>
    %128 = vector.broadcast %29 : vector<1x64xf32> to vector<32x64xf32>
    %129 = arith.mulf %127, %128 : vector<32x64xf32>
    %130 = vector.broadcast %30 : vector<1x64xf32> to vector<32x64xf32>
    %131 = arith.addf %129, %130 : vector<32x64xf32>
    %132 = arith.truncf %131 : vector<32x64xf32> to vector<32x64xbf16>
    %c0_39 = arith.constant 0 : index
    %c0_40 = arith.constant 0 : index
    %c0_41 = arith.constant 0 : index
    %133 = vector.load %arg8[%c0_39, %c0_40, %c0_41] : memref<2x64x256xbf16, #tpu.memory_space<vmem>>, vector<1x64x256xbf16>
    %134 = vector.shape_cast %133 : vector<1x64x256xbf16> to vector<64x256xbf16>
    %cst_42 = arith.constant dense<0.000000e+00> : vector<32x256xf32>
    %135 = tpu.matmul %132, %134, %cst_42 {dimension_numbers = #tpu.dot_dimension_numbers<[1], [0], [0], [1], [0, 0, 1, 1], [], []>} : vector<32x64xbf16>, vector<64x256xbf16>, vector<32x256xf32> -> vector<32x256xf32>
    %136 = vector.broadcast %26 : vector<1x256xf32> to vector<32x256xf32>
    %137 = arith.addf %135, %136 : vector<32x256xf32>
    %cst_43 = arith.constant 0.000000e+00 : f32
    %138 = vector.broadcast %cst_43 : f32 to vector<32x256xf32>
    %139 = arith.maximumf %137, %138 : vector<32x256xf32>
    %140 = arith.truncf %139 : vector<32x256xf32> to vector<32x256xbf16>
    %c0_44 = arith.constant 0 : index
    %c0_45 = arith.constant 0 : index
    %c0_46 = arith.constant 0 : index
    %141 = vector.load %arg9[%c0_44, %c0_45, %c0_46] : memref<2x256x64xbf16, #tpu.memory_space<vmem>>, vector<1x256x64xbf16>
    %142 = vector.shape_cast %141 : vector<1x256x64xbf16> to vector<256x64xbf16>
    %cst_47 = arith.constant dense<0.000000e+00> : vector<32x64xf32>
    %143 = tpu.matmul %140, %142, %cst_47 {dimension_numbers = #tpu.dot_dimension_numbers<[1], [0], [0], [1], [0, 0, 1, 1], [], []>} : vector<32x256xbf16>, vector<256x64xbf16>, vector<32x64xf32> -> vector<32x64xf32>
    %144 = vector.broadcast %28 : vector<1x64xf32> to vector<32x64xf32>
    %145 = arith.addf %143, %144 : vector<32x64xf32>
    %146 = arith.addf %131, %145 : vector<32x64xf32>
    %cst_48 = arith.constant dense<0.000000e+00> : vector<32xf32>
    %147 = vector.multi_reduction <add>, %146, %cst_48 [1] : vector<32x64xf32> to vector<32xf32>
    %148 = vector.shape_cast %147 : vector<32xf32> to vector<32x1xf32>
    %cst_49 = arith.constant 6.400000e+01 : f32
    %149 = vector.broadcast %cst_49 : f32 to vector<32x1xf32>
    %150 = arith.divf %148, %149 : vector<32x1xf32>
    %151 = vector.broadcast %150 : vector<32x1xf32> to vector<32x64xf32>
    %152 = arith.subf %146, %151 : vector<32x64xf32>
    %153 = arith.mulf %152, %152 : vector<32x64xf32>
    %cst_50 = arith.constant dense<0.000000e+00> : vector<32xf32>
    %154 = vector.multi_reduction <add>, %153, %cst_50 [1] : vector<32x64xf32> to vector<32xf32>
    %155 = vector.shape_cast %154 : vector<32xf32> to vector<32x1xf32>
    %cst_51 = arith.constant 6.400000e+01 : f32
    %156 = vector.broadcast %cst_51 : f32 to vector<32x1xf32>
    %157 = arith.divf %155, %156 : vector<32x1xf32>
    %158 = vector.broadcast %150 : vector<32x1xf32> to vector<32x64xf32>
    %159 = arith.subf %146, %158 : vector<32x64xf32>
    %cst_52 = arith.constant 9.99999974E-6 : f32
    %160 = vector.broadcast %cst_52 : f32 to vector<32x1xf32>
    %161 = arith.addf %157, %160 : vector<32x1xf32>
    %162 = math.rsqrt %161 : vector<32x1xf32>
    %163 = vector.broadcast %162 : vector<32x1xf32> to vector<32x64xf32>
    %164 = arith.mulf %159, %163 : vector<32x64xf32>
    %165 = vector.broadcast %31 : vector<1x64xf32> to vector<32x64xf32>
    %166 = arith.mulf %164, %165 : vector<32x64xf32>
    %167 = vector.broadcast %32 : vector<1x64xf32> to vector<32x64xf32>
    %168 = arith.addf %166, %167 : vector<32x64xf32>
    %c1 = arith.constant 1 : index
    %c0_53 = arith.constant 0 : index
    %c0_54 = arith.constant 0 : index
    %169 = vector.load %arg5[%c1, %c0_53, %c0_54] : memref<2x8x256xf32, #tpu.memory_space<vmem>>, vector<1x8x256xf32>
    %170 = vector.shape_cast %169 : vector<1x8x256xf32> to vector<8x256xf32>
    %171 = vector.extract_strided_slice %170 {offsets = [0, 0], sizes = [1, 192], strides = [1, 1]} : vector<8x256xf32> to vector<1x192xf32>
    %172 = vector.extract_strided_slice %170 {offsets = [1, 0], sizes = [1, 256], strides = [1, 1]} : vector<8x256xf32> to vector<1x256xf32>
    %173 = vector.extract_strided_slice %170 {offsets = [2, 0], sizes = [1, 64], strides = [1, 1]} : vector<8x256xf32> to vector<1x64xf32>
    %174 = vector.extract_strided_slice %170 {offsets = [2, 64], sizes = [1, 64], strides = [1, 1]} : vector<8x256xf32> to vector<1x64xf32>
    %175 = vector.extract_strided_slice %170 {offsets = [2, 128], sizes = [1, 64], strides = [1, 1]} : vector<8x256xf32> to vector<1x64xf32>
    %176 = vector.extract_strided_slice %170 {offsets = [2, 192], sizes = [1, 64], strides = [1, 1]} : vector<8x256xf32> to vector<1x64xf32>
    %177 = vector.extract_strided_slice %170 {offsets = [3, 0], sizes = [1, 64], strides = [1, 1]} : vector<8x256xf32> to vector<1x64xf32>
    %178 = vector.extract_strided_slice %170 {offsets = [3, 64], sizes = [1, 64], strides = [1, 1]} : vector<8x256xf32> to vector<1x64xf32>
    %179 = arith.truncf %168 : vector<32x64xf32> to vector<32x64xbf16>
    %c1_55 = arith.constant 1 : index
    %c0_56 = arith.constant 0 : index
    %c0_57 = arith.constant 0 : index
    %180 = vector.load %arg6[%c1_55, %c0_56, %c0_57] : memref<2x64x192xbf16, #tpu.memory_space<vmem>>, vector<1x64x192xbf16>
    %181 = vector.shape_cast %180 : vector<1x64x192xbf16> to vector<64x192xbf16>
    %cst_58 = arith.constant dense<0.000000e+00> : vector<32x192xf32>
    %182 = tpu.matmul %179, %181, %cst_58 {dimension_numbers = #tpu.dot_dimension_numbers<[1], [0], [0], [1], [0, 0, 1, 1], [], []>} : vector<32x64xbf16>, vector<64x192xbf16>, vector<32x192xf32> -> vector<32x192xf32>
    %183 = vector.broadcast %171 : vector<1x192xf32> to vector<32x192xf32>
    %184 = arith.addf %182, %183 : vector<32x192xf32>
    %185 = vector.extract_strided_slice %184 {offsets = [0, 0], sizes = [32, 16], strides = [1, 1]} : vector<32x192xf32> to vector<32x16xf32>
    %186 = arith.truncf %185 : vector<32x16xf32> to vector<32x16xbf16>
    %187 = vector.extract_strided_slice %184 {offsets = [0, 64], sizes = [32, 16], strides = [1, 1]} : vector<32x192xf32> to vector<32x16xf32>
    %188 = arith.truncf %187 : vector<32x16xf32> to vector<32x16xbf16>
    "tpu.trace_start"() <{level = 10 : i32, message = "qd,kd->qk"}> : () -> ()
    %cst_59 = arith.constant dense<0.000000e+00> : vector<32x32xf32>
    %189 = tpu.matmul %186, %188, %cst_59 {dimension_numbers = #tpu.dot_dimension_numbers<[1], [1], [0], [0], [0, 0, 1, 0], [], []>} : vector<32x16xbf16>, vector<32x16xbf16>, vector<32x32xf32> -> vector<32x32xf32>
    "tpu.trace_stop"() : () -> ()
    %190 = vector.extract_strided_slice %184 {offsets = [0, 16], sizes = [32, 16], strides = [1, 1]} : vector<32x192xf32> to vector<32x16xf32>
    %191 = arith.truncf %190 : vector<32x16xf32> to vector<32x16xbf16>
    %192 = vector.extract_strided_slice %184 {offsets = [0, 80], sizes = [32, 16], strides = [1, 1]} : vector<32x192xf32> to vector<32x16xf32>
    %193 = arith.truncf %192 : vector<32x16xf32> to vector<32x16xbf16>
    "tpu.trace_start"() <{level = 10 : i32, message = "qd,kd->qk"}> : () -> ()
    %cst_60 = arith.constant dense<0.000000e+00> : vector<32x32xf32>
    %194 = tpu.matmul %191, %193, %cst_60 {dimension_numbers = #tpu.dot_dimension_numbers<[1], [1], [0], [0], [0, 0, 1, 0], [], []>} : vector<32x16xbf16>, vector<32x16xbf16>, vector<32x32xf32> -> vector<32x32xf32>
    "tpu.trace_stop"() : () -> ()
    %195 = vector.extract_strided_slice %184 {offsets = [0, 32], sizes = [32, 16], strides = [1, 1]} : vector<32x192xf32> to vector<32x16xf32>
    %196 = arith.truncf %195 : vector<32x16xf32> to vector<32x16xbf16>
    %197 = vector.extract_strided_slice %184 {offsets = [0, 96], sizes = [32, 16], strides = [1, 1]} : vector<32x192xf32> to vector<32x16xf32>
    %198 = arith.truncf %197 : vector<32x16xf32> to vector<32x16xbf16>
    "tpu.trace_start"() <{level = 10 : i32, message = "qd,kd->qk"}> : () -> ()
    %cst_61 = arith.constant dense<0.000000e+00> : vector<32x32xf32>
    %199 = tpu.matmul %196, %198, %cst_61 {dimension_numbers = #tpu.dot_dimension_numbers<[1], [1], [0], [0], [0, 0, 1, 0], [], []>} : vector<32x16xbf16>, vector<32x16xbf16>, vector<32x32xf32> -> vector<32x32xf32>
    "tpu.trace_stop"() : () -> ()
    %200 = vector.extract_strided_slice %184 {offsets = [0, 48], sizes = [32, 16], strides = [1, 1]} : vector<32x192xf32> to vector<32x16xf32>
    %201 = arith.truncf %200 : vector<32x16xf32> to vector<32x16xbf16>
    %202 = vector.extract_strided_slice %184 {offsets = [0, 112], sizes = [32, 16], strides = [1, 1]} : vector<32x192xf32> to vector<32x16xf32>
    %203 = arith.truncf %202 : vector<32x16xf32> to vector<32x16xbf16>
    "tpu.trace_start"() <{level = 10 : i32, message = "qd,kd->qk"}> : () -> ()
    %cst_62 = arith.constant dense<0.000000e+00> : vector<32x32xf32>
    %204 = tpu.matmul %201, %203, %cst_62 {dimension_numbers = #tpu.dot_dimension_numbers<[1], [1], [0], [0], [0, 0, 1, 0], [], []>} : vector<32x16xbf16>, vector<32x16xbf16>, vector<32x32xf32> -> vector<32x32xf32>
    "tpu.trace_stop"() : () -> ()
    %205 = tpu.concatenate %189, %194, %199, %204 in 1 : vector<32x32xf32>, vector<32x32xf32>, vector<32x32xf32>, vector<32x32xf32> -> vector<32x128xf32>
    %206 = arith.addf %205, %15 : vector<32x128xf32>
    %207 = vector.extract_strided_slice %206 {offsets = [0, 0], sizes = [32, 32], strides = [1, 1]} : vector<32x128xf32> to vector<32x32xf32>
    %cst_63 = arith.constant dense<0xFF800000> : vector<32xf32>
    %208 = vector.multi_reduction <maximumf>, %207, %cst_63 [1] : vector<32x32xf32> to vector<32xf32>
    %209 = vector.shape_cast %208 : vector<32xf32> to vector<32x1xf32>
    %210 = vector.extract_strided_slice %206 {offsets = [0, 32], sizes = [32, 32], strides = [1, 1]} : vector<32x128xf32> to vector<32x32xf32>
    %cst_64 = arith.constant dense<0xFF800000> : vector<32xf32>
    %211 = vector.multi_reduction <maximumf>, %210, %cst_64 [1] : vector<32x32xf32> to vector<32xf32>
    %212 = vector.shape_cast %211 : vector<32xf32> to vector<32x1xf32>
    %213 = vector.extract_strided_slice %206 {offsets = [0, 64], sizes = [32, 32], strides = [1, 1]} : vector<32x128xf32> to vector<32x32xf32>
    %cst_65 = arith.constant dense<0xFF800000> : vector<32xf32>
    %214 = vector.multi_reduction <maximumf>, %213, %cst_65 [1] : vector<32x32xf32> to vector<32xf32>
    %215 = vector.shape_cast %214 : vector<32xf32> to vector<32x1xf32>
    %216 = vector.extract_strided_slice %206 {offsets = [0, 96], sizes = [32, 32], strides = [1, 1]} : vector<32x128xf32> to vector<32x32xf32>
    %cst_66 = arith.constant dense<0xFF800000> : vector<32xf32>
    %217 = vector.multi_reduction <maximumf>, %216, %cst_66 [1] : vector<32x32xf32> to vector<32xf32>
    %218 = vector.shape_cast %217 : vector<32xf32> to vector<32x1xf32>
    %219 = tpu.concatenate %209, %212, %215, %218 in 1 : vector<32x1xf32>, vector<32x1xf32>, vector<32x1xf32>, vector<32x1xf32> -> vector<32x4xf32>
    %220 = arith.truncf %219 : vector<32x4xf32> to vector<32x4xbf16>
    %cst_67 = arith.constant dense<0.000000e+00> : vector<32x128xf32>
    %221 = tpu.matmul %220, %5, %cst_67 {dimension_numbers = #tpu.dot_dimension_numbers<[1], [0], [0], [1], [0, 0, 1, 1], [], []>} : vector<32x4xbf16>, vector<4x128xbf16>, vector<32x128xf32> -> vector<32x128xf32>
    %222 = arith.subf %206, %221 : vector<32x128xf32>
    %223 = math.exp %222 : vector<32x128xf32>
    %224 = arith.truncf %223 : vector<32x128xf32> to vector<32x128xbf16>
    %cst_68 = arith.constant dense<0.000000e+00> : vector<32x128xf32>
    %225 = tpu.matmul %224, %3, %cst_68 {dimension_numbers = #tpu.dot_dimension_numbers<[1], [0], [0], [1], [0, 0, 1, 1], [], []>} : vector<32x128xbf16>, vector<128x128xbf16>, vector<32x128xf32> -> vector<32x128xf32>
    %226 = tpu.reciprocal %225 {approx = true} : vector<32x128xf32> -> vector<32x128xf32>
    %227 = arith.mulf %223, %226 : vector<32x128xf32>
    %228 = vector.extract_strided_slice %227 {offsets = [0, 0], sizes = [32, 32], strides = [1, 1]} : vector<32x128xf32> to vector<32x32xf32>
    %229 = arith.truncf %228 : vector<32x32xf32> to vector<32x32xbf16>
    %230 = vector.extract_strided_slice %184 {offsets = [0, 128], sizes = [32, 16], strides = [1, 1]} : vector<32x192xf32> to vector<32x16xf32>
    %231 = arith.truncf %230 : vector<32x16xf32> to vector<32x16xbf16>
    %cst_69 = arith.constant dense<0.000000e+00> : vector<32x16xf32>
    %232 = tpu.matmul %229, %231, %cst_69 {dimension_numbers = #tpu.dot_dimension_numbers<[1], [0], [0], [1], [0, 0, 1, 1], [], []>} : vector<32x32xbf16>, vector<32x16xbf16>, vector<32x16xf32> -> vector<32x16xf32>
    %233 = vector.extract_strided_slice %227 {offsets = [0, 32], sizes = [32, 32], strides = [1, 1]} : vector<32x128xf32> to vector<32x32xf32>
    %234 = arith.truncf %233 : vector<32x32xf32> to vector<32x32xbf16>
    %235 = vector.extract_strided_slice %184 {offsets = [0, 144], sizes = [32, 16], strides = [1, 1]} : vector<32x192xf32> to vector<32x16xf32>
    %236 = arith.truncf %235 : vector<32x16xf32> to vector<32x16xbf16>
    %cst_70 = arith.constant dense<0.000000e+00> : vector<32x16xf32>
    %237 = tpu.matmul %234, %236, %cst_70 {dimension_numbers = #tpu.dot_dimension_numbers<[1], [0], [0], [1], [0, 0, 1, 1], [], []>} : vector<32x32xbf16>, vector<32x16xbf16>, vector<32x16xf32> -> vector<32x16xf32>
    %238 = vector.extract_strided_slice %227 {offsets = [0, 64], sizes = [32, 32], strides = [1, 1]} : vector<32x128xf32> to vector<32x32xf32>
    %239 = arith.truncf %238 : vector<32x32xf32> to vector<32x32xbf16>
    %240 = vector.extract_strided_slice %184 {offsets = [0, 160], sizes = [32, 16], strides = [1, 1]} : vector<32x192xf32> to vector<32x16xf32>
    %241 = arith.truncf %240 : vector<32x16xf32> to vector<32x16xbf16>
    %cst_71 = arith.constant dense<0.000000e+00> : vector<32x16xf32>
    %242 = tpu.matmul %239, %241, %cst_71 {dimension_numbers = #tpu.dot_dimension_numbers<[1], [0], [0], [1], [0, 0, 1, 1], [], []>} : vector<32x32xbf16>, vector<32x16xbf16>, vector<32x16xf32> -> vector<32x16xf32>
    %243 = vector.extract_strided_slice %227 {offsets = [0, 96], sizes = [32, 32], strides = [1, 1]} : vector<32x128xf32> to vector<32x32xf32>
    %244 = arith.truncf %243 : vector<32x32xf32> to vector<32x32xbf16>
    %245 = vector.extract_strided_slice %184 {offsets = [0, 176], sizes = [32, 16], strides = [1, 1]} : vector<32x192xf32> to vector<32x16xf32>
    %246 = arith.truncf %245 : vector<32x16xf32> to vector<32x16xbf16>
    %cst_72 = arith.constant dense<0.000000e+00> : vector<32x16xf32>
    %247 = tpu.matmul %244, %246, %cst_72 {dimension_numbers = #tpu.dot_dimension_numbers<[1], [0], [0], [1], [0, 0, 1, 1], [], []>} : vector<32x32xbf16>, vector<32x16xbf16>, vector<32x16xf32> -> vector<32x16xf32>
    %248 = tpu.concatenate %232, %237, %242, %247 in 1 : vector<32x16xf32>, vector<32x16xf32>, vector<32x16xf32>, vector<32x16xf32> -> vector<32x64xf32>
    %249 = arith.truncf %248 : vector<32x64xf32> to vector<32x64xbf16>
    %c1_73 = arith.constant 1 : index
    %c0_74 = arith.constant 0 : index
    %c0_75 = arith.constant 0 : index
    %250 = vector.load %arg7[%c1_73, %c0_74, %c0_75] : memref<2x64x64xbf16, #tpu.memory_space<vmem>>, vector<1x64x64xbf16>
    %251 = vector.shape_cast %250 : vector<1x64x64xbf16> to vector<64x64xbf16>
    %cst_76 = arith.constant dense<0.000000e+00> : vector<32x64xf32>
    %252 = tpu.matmul %249, %251, %cst_76 {dimension_numbers = #tpu.dot_dimension_numbers<[1], [0], [0], [1], [0, 0, 1, 1], [], []>} : vector<32x64xbf16>, vector<64x64xbf16>, vector<32x64xf32> -> vector<32x64xf32>
    %253 = vector.broadcast %173 : vector<1x64xf32> to vector<32x64xf32>
    %254 = arith.addf %252, %253 : vector<32x64xf32>
    %255 = arith.addf %168, %254 : vector<32x64xf32>
    %cst_77 = arith.constant dense<0.000000e+00> : vector<32xf32>
    %256 = vector.multi_reduction <add>, %255, %cst_77 [1] : vector<32x64xf32> to vector<32xf32>
    %257 = vector.shape_cast %256 : vector<32xf32> to vector<32x1xf32>
    %cst_78 = arith.constant 6.400000e+01 : f32
    %258 = vector.broadcast %cst_78 : f32 to vector<32x1xf32>
    %259 = arith.divf %257, %258 : vector<32x1xf32>
    %260 = vector.broadcast %259 : vector<32x1xf32> to vector<32x64xf32>
    %261 = arith.subf %255, %260 : vector<32x64xf32>
    %262 = arith.mulf %261, %261 : vector<32x64xf32>
    %cst_79 = arith.constant dense<0.000000e+00> : vector<32xf32>
    %263 = vector.multi_reduction <add>, %262, %cst_79 [1] : vector<32x64xf32> to vector<32xf32>
    %264 = vector.shape_cast %263 : vector<32xf32> to vector<32x1xf32>
    %cst_80 = arith.constant 6.400000e+01 : f32
    %265 = vector.broadcast %cst_80 : f32 to vector<32x1xf32>
    %266 = arith.divf %264, %265 : vector<32x1xf32>
    %267 = vector.broadcast %259 : vector<32x1xf32> to vector<32x64xf32>
    %268 = arith.subf %255, %267 : vector<32x64xf32>
    %cst_81 = arith.constant 9.99999974E-6 : f32
    %269 = vector.broadcast %cst_81 : f32 to vector<32x1xf32>
    %270 = arith.addf %266, %269 : vector<32x1xf32>
    %271 = math.rsqrt %270 : vector<32x1xf32>
    %272 = vector.broadcast %271 : vector<32x1xf32> to vector<32x64xf32>
    %273 = arith.mulf %268, %272 : vector<32x64xf32>
    %274 = vector.broadcast %175 : vector<1x64xf32> to vector<32x64xf32>
    %275 = arith.mulf %273, %274 : vector<32x64xf32>
    %276 = vector.broadcast %176 : vector<1x64xf32> to vector<32x64xf32>
    %277 = arith.addf %275, %276 : vector<32x64xf32>
    %278 = arith.truncf %277 : vector<32x64xf32> to vector<32x64xbf16>
    %c1_82 = arith.constant 1 : index
    %c0_83 = arith.constant 0 : index
    %c0_84 = arith.constant 0 : index
    %279 = vector.load %arg8[%c1_82, %c0_83, %c0_84] : memref<2x64x256xbf16, #tpu.memory_space<vmem>>, vector<1x64x256xbf16>
    %280 = vector.shape_cast %279 : vector<1x64x256xbf16> to vector<64x256xbf16>
    %cst_85 = arith.constant dense<0.000000e+00> : vector<32x256xf32>
    %281 = tpu.matmul %278, %280, %cst_85 {dimension_numbers = #tpu.dot_dimension_numbers<[1], [0], [0], [1], [0, 0, 1, 1], [], []>} : vector<32x64xbf16>, vector<64x256xbf16>, vector<32x256xf32> -> vector<32x256xf32>
    %282 = vector.broadcast %172 : vector<1x256xf32> to vector<32x256xf32>
    %283 = arith.addf %281, %282 : vector<32x256xf32>
    %cst_86 = arith.constant 0.000000e+00 : f32
    %284 = vector.broadcast %cst_86 : f32 to vector<32x256xf32>
    %285 = arith.maximumf %283, %284 : vector<32x256xf32>
    %286 = arith.truncf %285 : vector<32x256xf32> to vector<32x256xbf16>
    %c1_87 = arith.constant 1 : index
    %c0_88 = arith.constant 0 : index
    %c0_89 = arith.constant 0 : index
    %287 = vector.load %arg9[%c1_87, %c0_88, %c0_89] : memref<2x256x64xbf16, #tpu.memory_space<vmem>>, vector<1x256x64xbf16>
    %288 = vector.shape_cast %287 : vector<1x256x64xbf16> to vector<256x64xbf16>
    %cst_90 = arith.constant dense<0.000000e+00> : vector<32x64xf32>
    %289 = tpu.matmul %286, %288, %cst_90 {dimension_numbers = #tpu.dot_dimension_numbers<[1], [0], [0], [1], [0, 0, 1, 1], [], []>} : vector<32x256xbf16>, vector<256x64xbf16>, vector<32x64xf32> -> vector<32x64xf32>
    %290 = vector.broadcast %174 : vector<1x64xf32> to vector<32x64xf32>
    %291 = arith.addf %289, %290 : vector<32x64xf32>
    %292 = arith.addf %277, %291 : vector<32x64xf32>
    %cst_91 = arith.constant dense<0.000000e+00> : vector<32xf32>
    %293 = vector.multi_reduction <add>, %292, %cst_91 [1] : vector<32x64xf32> to vector<32xf32>
    %294 = vector.shape_cast %293 : vector<32xf32> to vector<32x1xf32>
    %cst_92 = arith.constant 6.400000e+01 : f32
    %295 = vector.broadcast %cst_92 : f32 to vector<32x1xf32>
    %296 = arith.divf %294, %295 : vector<32x1xf32>
    %297 = vector.broadcast %296 : vector<32x1xf32> to vector<32x64xf32>
    %298 = arith.subf %292, %297 : vector<32x64xf32>
    %299 = arith.mulf %298, %298 : vector<32x64xf32>
    %cst_93 = arith.constant dense<0.000000e+00> : vector<32xf32>
    %300 = vector.multi_reduction <add>, %299, %cst_93 [1] : vector<32x64xf32> to vector<32xf32>
    %301 = vector.shape_cast %300 : vector<32xf32> to vector<32x1xf32>
    %cst_94 = arith.constant 6.400000e+01 : f32
    %302 = vector.broadcast %cst_94 : f32 to vector<32x1xf32>
    %303 = arith.divf %301, %302 : vector<32x1xf32>
    %304 = vector.broadcast %296 : vector<32x1xf32> to vector<32x64xf32>
    %305 = arith.subf %292, %304 : vector<32x64xf32>
    %cst_95 = arith.constant 9.99999974E-6 : f32
    %306 = vector.broadcast %cst_95 : f32 to vector<32x1xf32>
    %307 = arith.addf %303, %306 : vector<32x1xf32>
    %308 = math.rsqrt %307 : vector<32x1xf32>
    %309 = vector.broadcast %308 : vector<32x1xf32> to vector<32x64xf32>
    %310 = arith.mulf %305, %309 : vector<32x64xf32>
    %311 = vector.broadcast %177 : vector<1x64xf32> to vector<32x64xf32>
    %312 = arith.mulf %310, %311 : vector<32x64xf32>
    %313 = vector.broadcast %178 : vector<1x64xf32> to vector<32x64xf32>
    %314 = arith.addf %312, %313 : vector<32x64xf32>
    %315 = arith.truncf %314 : vector<32x64xf32> to vector<32x64xbf16>
    %c0_96 = arith.constant 0 : index
    %c0_97 = arith.constant 0 : index
    %316 = vector.load %arg11[%c0_96, %c0_97] : memref<64x64xbf16, #tpu.memory_space<vmem>>, vector<64x64xbf16>
    %cst_98 = arith.constant dense<0.000000e+00> : vector<32x64xf32>
    %317 = tpu.matmul %315, %316, %cst_98 {dimension_numbers = #tpu.dot_dimension_numbers<[1], [0], [0], [1], [0, 0, 1, 1], [], []>} : vector<32x64xbf16>, vector<64x64xbf16>, vector<32x64xf32> -> vector<32x64xf32>
    %318 = vector.broadcast %16 : vector<1x64xf32> to vector<32x64xf32>
    %319 = arith.addf %317, %318 : vector<32x64xf32>
    %320 = vector.broadcast %8 : vector<32x1xf32> to vector<32x64xf32>
    %321 = arith.mulf %319, %320 : vector<32x64xf32>
    %322 = vector.broadcast %9 : vector<32x1xf32> to vector<32x64xf32>
    %323 = arith.addf %321, %322 : vector<32x64xf32>
    %324 = math.tanh %323 : vector<32x64xf32>
    %325 = vector.extract_strided_slice %324 {offsets = [0, 0], sizes = [32, 32], strides = [1, 1]} : vector<32x64xf32> to vector<32x32xf32>
    %326 = vector.extract_strided_slice %324 {offsets = [0, 32], sizes = [32, 32], strides = [1, 1]} : vector<32x64xf32> to vector<32x32xf32>
    %327 = arith.maximumf %325, %326 : vector<32x32xf32>
    %c1_i32 = arith.constant 1 : i32
    %328 = tpu.dynamic_rotate %327 by %c1_i32 dim 0 : vector<32x32xf32>, i32 -> vector<32x32xf32>
    %329 = vector.broadcast %12 : vector<32x1xf32> to vector<32x32xf32>
    %330 = arith.mulf %328, %329 : vector<32x32xf32>
    %c31_i32 = arith.constant 31 : i32
    %331 = tpu.dynamic_rotate %327 by %c31_i32 dim 0 : vector<32x32xf32>, i32 -> vector<32x32xf32>
    %332 = vector.broadcast %13 : vector<32x1xf32> to vector<32x32xf32>
    %333 = arith.mulf %331, %332 : vector<32x32xf32>
    %334 = tpu.concatenate %330, %327, %333 in 1 : vector<32x32xf32>, vector<32x32xf32>, vector<32x32xf32> -> vector<32x96xf32>
    %335 = arith.truncf %334 : vector<32x96xf32> to vector<32x96xbf16>
    %c0_99 = arith.constant 0 : index
    %c0_100 = arith.constant 0 : index
    %336 = vector.load %arg12[%c0_99, %c0_100] : memref<96x32xbf16, #tpu.memory_space<vmem>>, vector<96x32xbf16>
    %cst_101 = arith.constant dense<0.000000e+00> : vector<32x32xf32>
    %337 = tpu.matmul %335, %336, %cst_101 {dimension_numbers = #tpu.dot_dimension_numbers<[1], [0], [0], [1], [0, 0, 1, 1], [], []>} : vector<32x96xbf16>, vector<96x32xbf16>, vector<32x32xf32> -> vector<32x32xf32>
    %338 = vector.broadcast %17 : vector<1x32xf32> to vector<32x32xf32>
    %339 = arith.addf %337, %338 : vector<32x32xf32>
    %340 = vector.broadcast %10 : vector<32x1xf32> to vector<32x32xf32>
    %341 = arith.mulf %339, %340 : vector<32x32xf32>
    %342 = vector.broadcast %11 : vector<32x1xf32> to vector<32x32xf32>
    %343 = arith.addf %341, %342 : vector<32x32xf32>
    %344 = math.tanh %343 : vector<32x32xf32>
    %345 = vector.extract_strided_slice %344 {offsets = [0, 0], sizes = [32, 16], strides = [1, 1]} : vector<32x32xf32> to vector<32x16xf32>
    %346 = vector.extract_strided_slice %344 {offsets = [0, 16], sizes = [32, 16], strides = [1, 1]} : vector<32x32xf32> to vector<32x16xf32>
    %347 = arith.maximumf %345, %346 : vector<32x16xf32>
    %348 = arith.truncf %347 : vector<32x16xf32> to vector<32x16xbf16>
    %cst_102 = arith.constant dense<0.000000e+00> : vector<2x16xf32>
    %349 = tpu.matmul %7, %348, %cst_102 {dimension_numbers = #tpu.dot_dimension_numbers<[1], [0], [0], [1], [0, 0, 1, 1], [], []>} : vector<2x32xbf16>, vector<32x16xbf16>, vector<2x16xf32> -> vector<2x16xf32>
    %350 = arith.truncf %349 : vector<2x16xf32> to vector<2x16xbf16>
    %cst_103 = arith.constant dense<0.000000e+00> : vector<2x128xf32>
    %351 = tpu.matmul %350, %6, %cst_103 {dimension_numbers = #tpu.dot_dimension_numbers<[1], [0], [0], [1], [0, 0, 1, 1], [], []>} : vector<2x16xbf16>, vector<16x128xbf16>, vector<2x128xf32> -> vector<2x128xf32>
    %352 = vector.broadcast %18 : vector<1x128xf32> to vector<2x128xf32>
    %353 = arith.addf %351, %352 : vector<2x128xf32>
    %c0_104 = arith.constant 0 : index
    %c0_105 = arith.constant 0 : index
    %354 = vector.load %arg13[%c0_104, %c0_105] : memref<2x128xf32, #tpu.memory_space<vmem>>, vector<2x128xf32>
    tpu.vector_store %arg13[%c0_104, %c0_105], %353 {strides = array<i32>} : memref<2x128xf32, #tpu.memory_space<vmem>>, vector<2x128xf32>,
    return
  }
  func.func @transform_0(%arg0: i32) -> (i32, i32) {
    %c0_i32 = arith.constant 0 : i32
    %c0_i32_0 = arith.constant 0 : i32
    %c0_i32_1 = arith.constant 0 : i32
    return %c0_i32, %c0_i32_0 : i32, i32
  }
  func.func @transform_1(%arg0: i32) -> (i32, i32) {
    %c0_i32 = arith.constant 0 : i32
    %c0_i32_0 = arith.constant 0 : i32
    %c0_i32_1 = arith.constant 0 : i32
    return %c0_i32, %c0_i32_0 : i32, i32
  }
  func.func @transform_2(%arg0: i32) -> (i32, i32) {
    %c0_i32 = arith.constant 0 : i32
    %c0_i32_0 = arith.constant 0 : i32
    %c0_i32_1 = arith.constant 0 : i32
    return %c0_i32, %c0_i32_0 : i32, i32
  }
  func.func @transform_3(%arg0: i32) -> (i32, i32) {
    %c0_i32 = arith.constant 0 : i32
    %c0_i32_0 = arith.constant 0 : i32
    %c0_i32_1 = arith.constant 0 : i32
    return %c0_i32, %c0_i32_0 : i32, i32
  }
  func.func @transform_4(%arg0: i32) -> (i32, i32, i32) {
    %c0_i32 = arith.constant 0 : i32
    %c0_i32_0 = arith.constant 0 : i32
    %c0_i32_1 = arith.constant 0 : i32
    %c0_i32_2 = arith.constant 0 : i32
    return %c0_i32, %c0_i32_0, %c0_i32_1 : i32, i32, i32
  }
  func.func @transform_5(%arg0: i32) -> (i32, i32, i32) {
    %c0_i32 = arith.constant 0 : i32
    %c0_i32_0 = arith.constant 0 : i32
    %c0_i32_1 = arith.constant 0 : i32
    %c0_i32_2 = arith.constant 0 : i32
    return %c0_i32, %c0_i32_0, %c0_i32_1 : i32, i32, i32
  }
  func.func @transform_6(%arg0: i32) -> (i32, i32, i32) {
    %c0_i32 = arith.constant 0 : i32
    %c0_i32_0 = arith.constant 0 : i32
    %c0_i32_1 = arith.constant 0 : i32
    %c0_i32_2 = arith.constant 0 : i32
    return %c0_i32, %c0_i32_0, %c0_i32_1 : i32, i32, i32
  }
  func.func @transform_7(%arg0: i32) -> (i32, i32, i32) {
    %c0_i32 = arith.constant 0 : i32
    %c0_i32_0 = arith.constant 0 : i32
    %c0_i32_1 = arith.constant 0 : i32
    %c0_i32_2 = arith.constant 0 : i32
    return %c0_i32, %c0_i32_0, %c0_i32_1 : i32, i32, i32
  }
  func.func @transform_8(%arg0: i32) -> (i32, i32, i32) {
    %c0_i32 = arith.constant 0 : i32
    %c0_i32_0 = arith.constant 0 : i32
    %c0_i32_1 = arith.constant 0 : i32
    %c0_i32_2 = arith.constant 0 : i32
    return %c0_i32, %c0_i32_0, %c0_i32_1 : i32, i32, i32
  }
  func.func @transform_9(%arg0: i32) -> (i32, i32) {
    %c0_i32 = arith.constant 0 : i32
    %c0_i32_0 = arith.constant 0 : i32
    %c0_i32_1 = arith.constant 0 : i32
    return %c0_i32, %c0_i32_0 : i32, i32
  }
  func.func @transform_10(%arg0: i32) -> (i32, i32) {
    %c0_i32 = arith.constant 0 : i32
    %c0_i32_0 = arith.constant 0 : i32
    %c0_i32_1 = arith.constant 0 : i32
    return %c0_i32, %c0_i32_0 : i32, i32
  }
  func.func @transform_11(%arg0: i32) -> (i32, i32) {
    %c0_i32 = arith.constant 0 : i32
    %c0_i32_0 = arith.constant 0 : i32
    %c0_i32_1 = arith.constant 0 : i32
    return %c0_i32, %c0_i32_0 : i32, i32
  }
  func.func @transform_12(%arg0: i32) -> (i32, i32) {
    %c0_i32 = arith.constant 0 : i32
    %c0_i32_0 = arith.constant 0 : i32
    %c0_i32_1 = arith.constant 0 : i32
    return %c0_i32, %c0_i32_0 : i32, i32
  }
}

</mosaic_0001>

<bundles_post_ra>
// kernel: forward.1
= control target key start
LH: loop header
LB: loop body
LE: loop exit
PB: predicated region body
PF: predicated region fallthrough
CT: control target
= control target key end

     0   :  { %17 = vsyncpa [#allocation3], 0  ;;  %s5279_s0 = inlined_call_operand.vmem [shape: f32[32,4], index: 0, kind: input, shape index: {}]   ;;  %s5280_s1 = inlined_call_operand.hbm [shape: bf16[32,128], index: 1, kind: input, shape index: {}]   ;;  %s5281_s2 = inlined_call_operand.vmem [shape: f32[64,128], index: 2, kind: input, shape index: {}]   ;;  %s5282_s3 = inlined_call_operand.hbm [shape: f32[8,128], index: 3, kind: input, shape index: {}]   ;;  %s5283_s4 = inlined_call_operand.vmem [shape: f32[2,8,256], index: 4, kind: input, shape index: {}]   ;;  %s5284_s5 = inlined_call_operand.vmem [shape: bf16[2,64,192], index: 5, kind: input, shape index: {}]   ;;  %s5285_s6 = inlined_call_operand.vmem [shape: bf16[2,64,64], index: 6, kind: input, shape index: {}]   ;;  %s5286_s7 = inlined_call_operand.vmem [shape: bf16[2,64,256], index: 7, kind: input, shape index: {}]   ;;  %s5287_s8 = inlined_call_operand.vmem [shape: bf16[2,256,64], index: 8, kind: input, shape index: {}]   ;;  %s5288_s9 = inlined_call_operand.vmem [shape: bf16[128,128], index: 9, kind: input, shape index: {}]   ;;  %s5289_s10 = inlined_call_operand.hbm [shape: bf16[64,64], index: 10, kind: input, shape index: {}]   ;;  %s5290_s11 = inlined_call_operand.vmem [shape: bf16[96,32], index: 11, kind: input, shape index: {}]   ;;  %s5291_s12 = inlined_call_operand.hbm [shape: f32[2,128], index: 12, kind: output, shape index: {}]  }
   0x1   :  { %18 = vsyncpa [#allocation6], 0  ;;  %s42_s23 = sshll.u32 %s5282_s3, 4  ;;  %s43_s23 = int_to_ptr.hbm [resolvable:$true] %s42_s23 }
   0x2   :  { %19 = vsyncpa [#allocation4], 0  ;;  %s3966_s24 = smov [#allocation5]   ;;  %s26_s28 = sshll.u32 %s5280_s1, 4  ;;  %s27_s28 = int_to_ptr.hbm [resolvable:$true] %s26_s28 }
   0x3   :  { %s44_s25 = sshll.u32 %s3966_s24, 4  ;;  %s3967_s29 = smov [#allocation2]   ;;  %s45_s25 = int_to_ptr.vmem [resolvable:$true] %s44_s25 }
   0x4   :  { %47 = dma.hbm_to_vmem [thread:$0]  %s43_s23, 128, %s45_s25, [#allocation6]  }
   0x5   :  { %s28_s30 = sshll.u32 %s3967_s29, 4  ;;  %s3968_s13 = smov 64   ;;  %s29_s30 = int_to_ptr.vmem [resolvable:$true] %s28_s30 }
   0x6   :  { %s3969_s14 = smov 4   ;;  %s64_s16 = sshll.u32 %s5289_s10, 4  ;;  %s65_s16 = int_to_ptr.hbm [resolvable:$true] %s64_s16 }
   0x7   :  { %34 = dma.hbm_to_vmem [thread:$0]  %s27_s28, 256, %s29_s30, [#allocation3], %s3968_s13, %s3968_s13, %s3969_s14  }
   0x8   :  { %s3970_s17 = smov [#allocation7]  }
   0x9   :  { %s66_s18 = sshll.u32 %s3970_s17, 4  ;;  %s67_s18 = int_to_ptr.vmem [resolvable:$true] %s66_s18 }
   0xa   :  { %72 = dma.hbm_to_vmem [thread:$0]  %s65_s16, 512, %s67_s18, [#allocation6], %s3968_s13, %s3968_s13, %s3969_s14  }
   0xb   :  { %3960 = dma.done.wait [#allocation3], 256  }
   0xc   :  { %3961 = vsyncadd [#allocation3], 4294967040 }
   0xd   :  { %3962 = dma.done.wait [#allocation6], 640  }
   0xe   :  { %3963 = vsyncadd [#allocation6], 4294966656  ;;  %vm146_vm0 = vcmask 1041408   ;;  %v88_v0 = vld [vmem:[#allocation2] sm:$0xf]  ;;  %v117_v1 = vld [vmem:[%s5279_s0] sm:$0xff] }
   0xf   :  { %v118_v2 = vld [vmem:[%s5279_s0 + $0x8] sm:$0xff]  ;;  %v148_v3 = vsel %vm146_vm0, %v88_v0, 0  ;;  %v560_v4 = vunpack.c.l.b16 %v88_v0  ;;  %v119_v6 = vld [vmem:[%s5279_s0 + $0x10] sm:$0xff]  ;;  %v120_v7 = vld [vmem:[%s5279_s0 + $0x18] sm:$0xff]  ;;  %vm5293_vm1 = vcmask 31744   ;;  %vm223_vm2 = vcmask 523264  }
  0x10   :  { %v121_v5 = vpack.c.bf16 %v118_v2, %v117_v1  ;;  %v92_v8 = vld [vmem:[%s5281_s2] sm:$0xff]  ;;  %157 = vmatpush.bf16.msra.mxu0 %v148_v3  ;;  %3633 = vmatpush.bf16.msra.mxu3 %v148_v3  ;;  %v122_v9 = vpack.c.bf16 %v120_v7, %v119_v6  ;;  %v94_v10 = vld [vmem:[%s5281_s2 + $0x10] sm:$0xff]  ;;  %v3558_v13 = vld [vmem:[%s5284_s5 + $0x34] sm:$0xf0]  ;;  %s3971_s25 = smov 16   ;;  %s3972_s26 = smov 80  }
  0x11   :  { %v561_v11 = vpack.c.b16 %v560_v4, %v560_v4  ;;  %127 = vrot.lane.b32.xlu0 %v92_v8, %s3968_s13  ;;  %131 = vrot.lane.b32.xlu1 %v94_v10, %s3968_s13  ;;  %v3084_v12 = vld [vmem:[%s5284_s5 + $0x30] sm:$0xf]  ;;  %v3557_v15 = vld [vmem:[%s5284_s5 + $0x34] sm:$0xf]  ;;  %s3973_s27 = smov 32   ;;  %s3974_s28 = smov 48  }
  0x12   :  { %v3085_v14 = vor.u32 %v3558_v13, %v3084_v12  ;;  %v3086_v16 = vld [vmem:[%s5284_s5 + $0x38] sm:$0xf0]  ;;  %v93_v20 = vld [vmem:[%s5281_s2 + $0x8] sm:$0xff]  ;;  %v3076_v22 = vld [vmem:[%s5284_s5 + $0x20] sm:$0xf]  ;;  %s3975_s29 = smov 96  }
  0x13   :  { %v562_v17 = vrot.slane %v561_v11, 2  ;;  %3056 = vmatmul.msk.bf16.vlgmr.msra.gmra.mxu0 %vm5293_vm1, %v121_v5  ;;  %3057 = vmatmul.msk.bf16.vlgmr.msra.gmra.mxu3 %vm5293_vm1, %v122_v9  ;;  %v3089_v18 = vor.u32 %v3557_v15, %v3086_v16  ;;  %v95_v21 = vld [vmem:[%s5281_s2 + $0x18] sm:$0xff]  ;;  %v3556_v23 = vld [vmem:[%s5284_s5 + $0x24] sm:$0xf0]  ;;  %v3555_v24 = vld [vmem:[%s5284_s5 + $0x24] sm:$0xf] }
  0x14   :  { %234 = vmatpush.bf16.msra.mxu1 %v3085_v14  ;;  %v3077_v25 = vor.u32 %v3556_v23, %v3076_v22  ;;  %v3078_v26 = vld [vmem:[%s5284_s5 + $0x28] sm:$0xf0]  ;;  %v3068_v28 = vld [vmem:[%s5284_s5 + $0x10] sm:$0xf]  ;;  %v3554_v29 = vld [vmem:[%s5284_s5 + $0x14] sm:$0xf0] }
  0x15   :  { %v4099_v19 = vsel %vm146_vm0, %v562_v17, 0  ;;  %253 = vmatpush.bf16.msra.mxu2 %v3089_v18  ;;  %v3081_v27 = vor.u32 %v3555_v24, %v3078_v26  ;;  %v3553_v30 = vld [vmem:[%s5284_s5 + $0x14] sm:$0xf]  ;;  %v3069_v31 = vor.u32 %v3554_v29, %v3068_v28  ;;  %v3070_v32 = vld [vmem:[%s5284_s5 + $0x18] sm:$0xf0]  ;;  %v4164_v55 = vld [vmem:[%s5283_s4] sm:$0xff] }
  0x16   :  { %v3073_v33 = vor.u32 %v3553_v30, %v3070_v32  ;;  %v3060_v34 = vld [vmem:[%s5284_s5] sm:$0xf]  ;;  %v3552_v35 = vld [vmem:[%s5284_s5 + $0x4] sm:$0xf0]  ;;  %v3551_v36 = vld [vmem:[%s5284_s5 + $0x4] sm:$0xf] }
  0x17   :  { %v3061_v37 = vor.u32 %v3552_v35, %v3060_v34  ;;  %v3062_v38 = vld [vmem:[%s5284_s5 + $0x8] sm:$0xf0]  ;;  %v181_v56 = vperm.slane %v4164_v55, 0  ;;  %s3976_s30 = smov 112   ;;  %vm276_vm3 = vcmask 130048   ;;  %vm473_vm4 = vcmask 261120  }
  0x18   :  { %235 = vmatpush.bf16.msra.mxu1 %v3077_v25  ;;  %v3065_v39 = vor.u32 %v3551_v36, %v3062_v38  ;;  %v4207_v14 = vld [vmem:[%s5283_s4 + $0x8] sm:$0xff]  ;;  %vm482_vm5 = vcmask 785408   ;;  %vm503_vm6 = vcmask 523520   ;;  %vm529_vm7 = vcmask 1048320   ;;  %s3045_s10 = sshll.u32 %s5291_s12, 4  ;;  %s3046_s10 = int_to_ptr.hbm [resolvable:$true] %s3045_s10 }
  0x19   :  { %129 = vrot.lane.b32.xlu0 %v93_v20, %s3968_s13  ;;  %133 = vrot.lane.b32.xlu1 %v95_v21, %s3968_s13  ;;  %v182_v20 = vperm.slane %v4207_v14, 0  ;;  %vm516_vm8 = vcmask 785920   ;;  %vm542_vm9 = vcmask 7168   ;;  %vm547_vm10 = vcmask 15360  }
  0x1a   :  { %254 = vmatpush.bf16.msra.mxu2 %v3081_v27  ;;  %vm552_vm11 = vcmask 23552   ;;  %vm5292_vm12 = vcmask 392192  }
  0x1c   :  { %236 = vmatpush.bf16.msra.mxu1 %v3069_v31 }
  0x1e   :  { %255 = vmatpush.bf16.msra.mxu2 %v3073_v33 }
  0x20   :  { %237 = vmatpush.bf16.msra.mxu1 %v3061_v37 }
  0x22   :  { %256 = vmatpush.bf16.msra.mxu2 %v3065_v39 }
  0x83   :  { %v128_v40 = vpop.permute.xlu0 %127  ;;  %v132_v46 = vpop.permute.xlu1 %131 }
  0x8b   :  { %v130_v42 = vpop.permute.xlu0 %129  ;;  %v134_v49 = vpop.permute.xlu1 %133 }
  0x90   :  { %v159_v41 = vpop.f32.mrf.mxu0 }
  0x91   :  { %v4145_v44 = vadd.f32 %v159_v41, %v128_v40 }
  0x96   :  { %v164_v47 = vpop.f32.mrf.mxu3 }
  0x97   :  { %v4153_v51 = vadd.f32 %v164_v47, %v132_v46 }
  0x98   :  { %v161_v43 = vpop.f32.mrf.mxu0 }
  0x99   :  { %v4147_v45 = vadd.f32 %v161_v43, %v130_v42 }
  0x9b   :  { %v171_v48 = vpack.c.bf16 %v4147_v45, %v4145_v44 }
  0x9d   :  { %3090 = vmatmul.msk.bf16.vlgmr.msra.gmra.mxu1 %vm223_vm2, %v171_v48  ;;  %3092 = vmatmul.msk.bf16.vlgmr.msra.gmra.mxu2 %vm223_vm2, %v171_v48 }
  0x9e   :  { %v166_v50 = vpop.f32.mrf.mxu3 }
  0x9f   :  { %v4155_v52 = vadd.f32 %v166_v50, %v134_v49 }
  0xa1   :  { %v172_v53 = vpack.c.bf16 %v4155_v52, %v4153_v51 }
  0xad   :  { %3091 = vmatmul.msk.bf16.gmra.mxu1 %vm223_vm2, %v172_v53  ;;  %3093 = vmatmul.msk.bf16.gmra.mxu2 %vm223_vm2, %v172_v53 }
 0x11a   :  { %v239_v54 = vpop.f32.mrf.mxu1 }
 0x11b   :  { %v240_v58 = vadd.f32 %v239_v54, %v181_v56 }
 0x120   :  { %v258_v2 = vpop.f32.mrf.mxu2 }
 0x121   :  { %v259_v28 = vadd.f32 %v258_v2, %v182_v20 }
 0x122   :  { %v241_v57 = vpop.f32.mrf.mxu1 }
 0x123   :  { %v242_v59 = vadd.f32 %v241_v57, %v181_v56  ;;  %v96_v57 = vld [vmem:[%s5281_s2 + $0x20] sm:$0xff] }
 0x125   :  { %v4167_v60 = vpack.c.bf16 %v242_v59, %v240_v58 }
 0x127   :  { %390 = vrot.lane.b32.xlu1 %v4167_v60, %s3971_s25 }
 0x128   :  { %v260_v5 = vpop.f32.mrf.mxu2 }
 0x129   :  { %v261_v25 = vadd.f32 %v260_v5, %v182_v20 }
 0x12a   :  { %v244_v61 = vpop.f32.mrf.mxu1 }
 0x12b   :  { %v245_v63 = vadd.f32 %v244_v61, %v181_v56  ;;  %v4217_v29 = vpack.c.bf16 %v261_v25, %v259_v28 }
 0x12f   :  { %386 = vrot.lane.b32.xlu1 %v4167_v60, %s3972_s26 }
 0x130   :  { %v263_v10 = vpop.f32.mrf.mxu2 }
 0x131   :  { %v264_v22 = vadd.f32 %v263_v10, %v182_v20 }
 0x132   :  { %v246_v62 = vpop.f32.mrf.mxu1 }
 0x133   :  { %v247_v0 = vadd.f32 %v246_v62, %v181_v56 }
 0x135   :  { %v4173_v1 = vpack.c.bf16 %v247_v0, %v245_v63 }
 0x137   :  { %353 = vrot.lane.b32.xlu0 %v4173_v1, %s3973_s27  ;;  %392 = vrot.lane.b32.xlu2 %v4173_v1, %s3971_s25 }
 0x138   :  { %388 = vrot.lane.b32.xlu1 %v4173_v1, %s3972_s26  ;;  %v265_v18 = vpop.f32.mrf.mxu2 }
 0x139   :  { %v266_v21 = vadd.f32 %v265_v18, %v182_v20 }
 0x13b   :  { %v4212_v26 = vpack.c.bf16 %v266_v21, %v264_v22  ;;  %v98_v21 = vld [vmem:[%s5281_s2 + $0x30] sm:$0xff] }
 0x13f   :  { %314 = vrot.lane.b32.xlu2 %v4173_v1, %s3974_s28  ;;  %351 = vrot.lane.b32.xlu0 %v4167_v60, %s3973_s27 }
 0x140   :  { %349 = vrot.lane.b32.xlu1 %v4173_v1, %s3975_s29 }
 0x147   :  { %347 = vrot.lane.b32.xlu0 %v4167_v60, %s3975_s29  ;;  %312 = vrot.lane.b32.xlu2 %v4167_v60, %s3974_s28 }
 0x14f   :  { %274 = vrot.lane.b32.xlu0 %v4173_v1, %s3968_s13  ;;  %308 = vrot.lane.b32.xlu2 %v4167_v60, %s3976_s30 }
 0x157   :  { %310 = vrot.lane.b32.xlu2 %v4173_v1, %s3976_s30 }
 0x15f   :  { %272 = vrot.lane.b32.xlu2 %v4167_v60, %s3968_s13 }
 0x191   :  { %v393_v3 = vpop.permute.xlu2 %392 }
 0x192   :  { %v404_v4 = vsel %vm276_vm3, %v393_v3, 0 }
 0x193   :  { %412 = vmatpush.bf16.xpose.msrb.mxu2 %v404_v4 }
 0x199   :  { %v315_v6 = vpop.permute.xlu2 %314  ;;  %v391_v7 = vpop.permute.xlu1 %390 }
 0x19a   :  { %v326_v8 = vsel %vm276_vm3, %v315_v6, 0  ;;  %v401_v9 = vsel %vm276_vm3, %v391_v7, 0  ;;  %v97_v7 = vld [vmem:[%s5281_s2 + $0x28] sm:$0xff] }
 0x19b   :  { %334 = vmatpush.bf16.xpose.msrb.mxu0 %v326_v8  ;;  %413 = vmatpush.bf16.xpose.msrb.mxu2 %v401_v9 }
 0x1a1   :  { %v313_v11 = vpop.permute.xlu2 %312  ;;  %v387_v12 = vpop.permute.xlu1 %386 }
 0x1a2   :  { %3100 = vmatmul.msk.bf16.vlgmr.msrb.gmra.mxu2 %vm276_vm3, %v387_v12  ;;  %v323_v13 = vsel %vm276_vm3, %v313_v11, 0 }
 0x1a3   :  { %335 = vmatpush.bf16.xpose.msrb.mxu0 %v323_v13 }
 0x1a9   :  { %v354_v15 = vpop.permute.xlu0 %353  ;;  %v309_v16 = vpop.permute.xlu2 %308 }
 0x1aa   :  { %3096 = vmatmul.msk.bf16.vlgmr.msrb.gmra.mxu0 %vm276_vm3, %v309_v16  ;;  %v365_v17 = vsel %vm276_vm3, %v354_v15, 0  ;;  %v389_v23 = vpop.permute.xlu1 %388 }
 0x1ab   :  { %373 = vmatpush.bf16.xpose.msrb.mxu1 %v365_v17 }
 0x1b1   :  { %v352_v24 = vpop.permute.xlu0 %351  ;;  %v311_v30 = vpop.permute.xlu2 %310 }
 0x1b2   :  { %3101 = vmatmul.msk.bf16.gmra.mxu2 %vm276_vm3, %v389_v23  ;;  %v362_v27 = vsel %vm276_vm3, %v352_v24, 0  ;;  %v350_v35 = vpop.permute.xlu1 %349 }
 0x1b3   :  { %374 = vmatpush.bf16.xpose.msrb.mxu1 %v362_v27 }
 0x1b9   :  { %v348_v31 = vpop.permute.xlu0 %347  ;;  %v273_v34 = vpop.permute.xlu2 %272 }
 0x1ba   :  { %3097 = vmatmul.msk.bf16.gmra.mxu0 %vm276_vm3, %v311_v30  ;;  %3098 = vmatmul.msk.bf16.vlgmr.msrb.gmra.mxu1 %vm276_vm3, %v348_v31  ;;  %v284_v36 = vsel %vm276_vm3, %v273_v34, 0  ;;  %v99_v34 = vld [vmem:[%s5281_s2 + $0x38] sm:$0xff] }
 0x1bb   :  { %696 = vmatpush.bf16.msra.mxu1 %v4212_v26 }
 0x1bf   :  { %697 = vmatpush.bf16.msra.mxu1 %v4217_v29 }
 0x1c1   :  { %v275_v32 = vpop.permute.xlu0 %274 }
 0x1c2   :  { %v287_v33 = vsel %vm276_vm3, %v275_v32, 0 }
 0x1c3   :  { %295 = vmatpush.bf16.xpose.msrb.mxu3 %v287_v33 }
 0x1ca   :  { %3099 = vmatmul.msk.bf16.gmra.mxu1 %vm276_vm3, %v350_v35 }
 0x1cb   :  { %296 = vmatpush.bf16.xpose.msrb.mxu3 %v284_v36 }
 0x1d2   :  { %3094 = vmatmul.msk.bf16.vlgmr.msrb.gmra.mxu3 %vm276_vm3, %v4167_v60 }
 0x1d3   :  { %579 = vmatpush.bf16.msra.mxu3 %v4099_v19 }
 0x1e2   :  { %3095 = vmatmul.msk.bf16.gmra.mxu3 %vm276_vm3, %v4173_v1 }
 0x225   :  { %v415_v37 = vpop.f32.mrf.mxu2 }
 0x226   :  { %461 = vrot.lane.b32.xlu1 %v415_v37, %s3975_s29 }
 0x227   :  { %v337_v38 = vpop.f32.mrf.mxu0 }
 0x228   :  { %429 = vrot.lane.b32.xlu0 %v337_v38, %s3973_s27 }
 0x22d   :  { %v417_v39 = vpop.f32.mrf.mxu2 }
 0x22f   :  { %v339_v40 = vpop.f32.mrf.mxu0 }
 0x230   :  { %431 = vrot.lane.b32.xlu1 %v339_v40, %s3973_s27 }
 0x235   :  { %v420_v41 = vpop.f32.mrf.mxu2 }
 0x237   :  { %v342_v42 = vpop.f32.mrf.mxu0  ;;  %v376_v43 = vpop.f32.mrf.mxu1 }
 0x238   :  { %445 = vrot.lane.b32.xlu2 %v376_v43, %s3968_s13  ;;  %465 = vrot.lane.b32.xlu1 %v420_v41, %s3975_s29 }
 0x23d   :  { %v422_v49 = vpop.f32.mrf.mxu2 }
 0x23f   :  { %v344_v46 = vpop.f32.mrf.mxu0  ;;  %v378_v47 = vpop.f32.mrf.mxu1 }
 0x240   :  { %447 = vrot.lane.b32.xlu0 %v378_v47, %s3968_s13  ;;  %463 = vrot.lane.b32.xlu2 %v417_v39, %s3975_s29 }
 0x241   :  { %435 = vrot.lane.b32.xlu1 %v344_v46, %s3973_s27 }
 0x247   :  { %v381_v48 = vpop.f32.mrf.mxu1 }
 0x248   :  { %433 = vrot.lane.b32.xlu0 %v342_v42, %s3973_s27  ;;  %449 = vrot.lane.b32.xlu2 %v381_v48, %s3968_s13  ;;  %v3550_v48 = vld [vmem:[%s5288_s9 + $0x38] sm:$0xff] }
 0x249   :  { %653 = vmatpush.bf16.msra.mxu0 %v3550_v48 }
 0x24f   :  { %v383_v50 = vpop.f32.mrf.mxu1 }
 0x250   :  { %467 = vrot.lane.b32.xlu2 %v422_v49, %s3975_s29  ;;  %451 = vrot.lane.b32.xlu0 %v383_v50, %s3968_s13  ;;  %v3549_v50 = vld [vmem:[%s5288_s9 + $0x30] sm:$0xff] }
 0x251   :  { %654 = vmatpush.bf16.msra.mxu0 %v3549_v50 }
 0x255   :  { %v298_v53 = vpop.f32.mrf.mxu3 }
 0x25d   :  { %v300_v4 = vpop.f32.mrf.mxu3 }
 0x265   :  { %v303_v13 = vpop.f32.mrf.mxu3 }
 0x26d   :  { %v305_v32 = vpop.f32.mrf.mxu3 }
 0x292   :  { %v446_v56 = vpop.permute.xlu2 %445 }
 0x298   :  { %v462_v59 = vpop.permute.xlu1 %461 }
 0x29a   :  { %v430_v54 = vpop.permute.xlu0 %429  ;;  %v464_v5 = vpop.permute.xlu2 %463 }
 0x29b   :  { %v474_v58 = vsel %vm473_vm4, %v298_v53, %v430_v54  ;;  %v3548_v53 = vld [vmem:[%s5288_s9 + $0x28] sm:$0xff] }
 0x29c   :  { %v478_v60 = vsel %vm223_vm2, %v474_v58, %v446_v56  ;;  %655 = vmatpush.bf16.msra.mxu0 %v3548_v53 }
 0x29d   :  { %v483_v61 = vsel %vm482_vm5, %v478_v60, %v462_v59  ;;  %v3545_v60 = vld [vmem:[%s5288_s9 + $0x10] sm:$0xff] }
 0x29e   :  { %v4248_v62 = vadd.f32 %v483_v61, %v96_v57  ;;  %v3546_v57 = vld [vmem:[%s5288_s9 + $0x18] sm:$0xff] }
 0x2a0   :  { %v504_v63 = vsel %vm503_vm6, %v4248_v62, -inf  ;;  %v491_v0 = vsel %vm473_vm4, %v4248_v62, -inf  ;;  %v530_v1 = vsel %vm529_vm7, %v4248_v62, -inf  ;;  %v517_v2 = vsel %vm516_vm8, %v4248_v62, -inf }
 0x2a1   :  { %505 = vmax.xlane.f32.xlu2 %v504_v63  ;;  %492 = vmax.xlane.f32.xlu0 %v491_v0  ;;  %v3544_v63 = vld [vmem:[%s5288_s9 + $0x8] sm:$0xff]  ;;  %v3543_v0 = vld [vmem:[%s5288_s9] sm:$0xff] }
 0x2a2   :  { %v432_v3 = vpop.permute.xlu1 %431  ;;  %v450_v18 = vpop.permute.xlu2 %449 }
 0x2a3   :  { %v475_v6 = vsel %vm473_vm4, %v300_v4, %v432_v3 }
 0x2a9   :  { %531 = vmax.xlane.f32.xlu2 %v530_v1  ;;  %518 = vmax.xlane.f32.xlu0 %v517_v2 }
 0x2aa   :  { %v466_v11 = vpop.permute.xlu1 %465  ;;  %v468_v36 = vpop.permute.xlu2 %467 }
 0x2b2   :  { %v448_v8 = vpop.permute.xlu0 %447 }
 0x2b3   :  { %v479_v9 = vsel %vm223_vm2, %v475_v6, %v448_v8  ;;  %v436_v27 = vpop.permute.xlu1 %435 }
 0x2b4   :  { %v484_v10 = vsel %vm482_vm5, %v479_v9, %v464_v5  ;;  %v477_v33 = vsel %vm473_vm4, %v305_v32, %v436_v27 }
 0x2b5   :  { %v4264_v12 = vadd.f32 %v484_v10, %v97_v7 }
 0x2b7   :  { %v533_v15 = vsel %vm529_vm7, %v4264_v12, -inf  ;;  %v507_v16 = vsel %vm503_vm6, %v4264_v12, -inf  ;;  %v494_v17 = vsel %vm473_vm4, %v4264_v12, -inf  ;;  %v520_v28 = vsel %vm516_vm8, %v4264_v12, -inf }
 0x2b8   :  { %534 = vmax.xlane.f32.xlu0 %v533_v15  ;;  %508 = vmax.xlane.f32.xlu2 %v507_v16 }
 0x2b9   :  { %495 = vmax.xlane.f32.xlu1 %v494_v17 }
 0x2ba   :  { %v434_v20 = vpop.permute.xlu0 %433 }
 0x2bb   :  { %v476_v22 = vsel %vm473_vm4, %v303_v13, %v434_v20 }
 0x2bc   :  { %v480_v23 = vsel %vm223_vm2, %v476_v22, %v450_v18 }
 0x2bd   :  { %v485_v24 = vsel %vm482_vm5, %v480_v23, %v466_v11 }
 0x2be   :  { %v4278_v25 = vadd.f32 %v485_v24, %v98_v21 }
 0x2c0   :  { %v523_v30 = vsel %vm516_vm8, %v4278_v25, -inf  ;;  %v510_v31 = vsel %vm503_vm6, %v4278_v25, -inf  ;;  %v497_v42 = vsel %vm473_vm4, %v4278_v25, -inf  ;;  %v536_v47 = vsel %vm529_vm7, %v4278_v25, -inf }
 0x2c1   :  { %521 = vmax.xlane.f32.xlu1 %v520_v28  ;;  %524 = vmax.xlane.f32.xlu2 %v523_v30 }
 0x2c2   :  { %511 = vmax.xlane.f32.xlu0 %v510_v31  ;;  %v452_v35 = vpop.permute.xlu0 %451 }
 0x2c3   :  { %v481_v37 = vsel %vm223_vm2, %v477_v33, %v452_v35 }
 0x2c4   :  { %v486_v38 = vsel %vm482_vm5, %v481_v37, %v468_v36 }
 0x2c5   :  { %v4292_v39 = vadd.f32 %v486_v38, %v99_v34 }
 0x2c7   :  { %v526_v40 = vsel %vm516_vm8, %v4292_v39, -inf  ;;  %v500_v41 = vsel %vm473_vm4, %v4292_v39, -inf  ;;  %v513_v43 = vsel %vm503_vm6, %v4292_v39, -inf  ;;  %v539_v46 = vsel %vm529_vm7, %v4292_v39, -inf }
 0x2c9   :  { %498 = vmax.xlane.f32.xlu1 %v497_v42  ;;  %501 = vmax.xlane.f32.xlu2 %v500_v41 }
 0x2ca   :  { %527 = vmax.xlane.f32.xlu0 %v526_v40 }
 0x2d1   :  { %514 = vmax.xlane.f32.xlu1 %v513_v43  ;;  %540 = vmax.xlane.f32.xlu2 %v539_v46 }
 0x2d9   :  { %537 = vmax.xlane.f32.xlu1 %v536_v47 }
 0x2de   :  { %719 = vrot.lane.b32.xlu0 %v4212_v26, %s3976_s30 }
 0x2e6   :  { %752 = vrot.lane.b32.xlu0 %v4217_v29, %s3975_s29 }
 0x2e9   :  { %717 = vrot.lane.b32.xlu2 %v4217_v29, %s3976_s30 }
 0x2f1   :  { %789 = vrot.lane.b32.xlu2 %v4212_v26, %s3972_s26 }
 0x2f2   :  { %754 = vrot.lane.b32.xlu1 %v4212_v26, %s3975_s29  ;;  %v3547_v26 = vld [vmem:[%s5288_s9 + $0x20] sm:$0xff] }
 0x2f3   :  { %656 = vmatpush.bf16.msra.mxu0 %v3547_v26 }
 0x2f7   :  { %657 = vmatpush.bf16.msra.mxu0 %v3546_v57 }
 0x2fb   :  { %658 = vmatpush.bf16.msra.mxu0 %v3545_v60 }
 0x2ff   :  { %659 = vmatpush.bf16.msra.mxu0 %v3544_v63 }
 0x303   :  { %660 = vmatpush.bf16.msra.mxu0 %v3543_v0 }
 0x314   :  { %v506_v49 = vpop.xlane.xlu2 %505  ;;  %v493_v54 = vpop.xlane.xlu0 %492 }
 0x315   :  { %v543_v1 = vsel %vm542_vm9, %v493_v54, %v506_v49 }
 0x31c   :  { %v532_v56 = vpop.xlane.xlu2 %531  ;;  %v519_v58 = vpop.xlane.xlu0 %518 }
 0x31d   :  { %v548_v2 = vsel %vm547_vm10, %v543_v1, %v519_v58 }
 0x31e   :  { %v553_v8 = vsel %vm552_vm11, %v548_v2, %v532_v56 }
 0x32b   :  { %v509_v59 = vpop.xlane.xlu2 %508  ;;  %v535_v3 = vpop.xlane.xlu0 %534 }
 0x32c   :  { %v496_v61 = vpop.xlane.xlu1 %495 }
 0x32d   :  { %v544_v4 = vsel %vm542_vm9, %v496_v61, %v509_v59 }
 0x334   :  { %v522_v5 = vpop.xlane.xlu1 %521  ;;  %v525_v6 = vpop.xlane.xlu2 %524 }
 0x335   :  { %v549_v7 = vsel %vm547_vm10, %v544_v4, %v522_v5  ;;  %v512_v15 = vpop.xlane.xlu0 %511 }
 0x336   :  { %v554_v9 = vsel %vm552_vm11, %v549_v7, %v535_v3 }
 0x337   :  { %v557_v10 = vpack.c.bf16 %v554_v9, %v553_v8 }
 0x339   :  { %3102 = vmatmul.msk.bf16.vlgmr.msra.gmra.mxu3 %vm5293_vm1, %v557_v10 }
 0x33c   :  { %v499_v11 = vpop.xlane.xlu1 %498  ;;  %v502_v13 = vpop.xlane.xlu2 %501 }
 0x33d   :  { %v528_v20 = vpop.xlane.xlu0 %527  ;;  %v545_v21 = vsel %vm542_vm9, %v499_v11, %v512_v15 }
 0x33e   :  { %v550_v23 = vsel %vm547_vm10, %v545_v21, %v525_v6 }
 0x344   :  { %v515_v16 = vpop.xlane.xlu1 %514  ;;  %v541_v17 = vpop.xlane.xlu2 %540 }
 0x345   :  { %v546_v18 = vsel %vm542_vm9, %v502_v13, %v515_v16 }
 0x346   :  { %v551_v22 = vsel %vm547_vm10, %v546_v18, %v528_v20 }
 0x347   :  { %v556_v28 = vsel %vm552_vm11, %v551_v22, %v541_v17 }
 0x34c   :  { %v538_v24 = vpop.xlane.xlu1 %537  ;;  %v718_v27 = vpop.permute.xlu2 %717 }
 0x34d   :  { %v555_v30 = vsel %vm552_vm11, %v550_v23, %v538_v24 }
 0x34e   :  { %v558_v31 = vpack.c.bf16 %v556_v28, %v555_v30 }
 0x350   :  { %v720_v32 = vpop.permute.xlu0 %719  ;;  %3103 = vmatmul.msk.bf16.gmra.mxu3 %vm5293_vm1, %v558_v31 }
 0x351   :  { %735 = vmatpush.bf16.msra.mxu2 %v720_v32 }
 0x354   :  { %v790_v33 = vpop.permute.xlu2 %789 }
 0x355   :  { %736 = vmatpush.bf16.msra.mxu2 %v718_v27  ;;  %805 = vmatpush.bf16.msrb.mxu0 %v790_v33 }
 0x358   :  { %v753_v35 = vpop.permute.xlu0 %752 }
 0x364   :  { %v755_v34 = vpop.permute.xlu1 %754 }
 0x365   :  { %770 = vmatpush.bf16.msrb.mxu3 %v755_v34 }
 0x369   :  { %771 = vmatpush.bf16.msrb.mxu3 %v753_v35 }
 0x3bc   :  { %v581_v36 = vpop.f32.mrf.mxu3 }
 0x3bd   :  { %v591_v37 = vsub.f32 %v4248_v62, %v581_v36  ;;  %v3562_v36 = vld [vmem:[%s5285_s6 + $0x18] sm:$0xff] }
 0x3be   :  { %924 = vmatpush.bf16.msrb.mxu1 %v3562_v36 }
 0x3bf   :  { %v595_v38 = vmul.f32 1.442695, %v591_v37  ;;  %v3561_v37 = vld [vmem:[%s5285_s6 + $0x10] sm:$0xff] }
 0x3c1   :  { %3763 = vpow2.f32 %v595_v38  ;;  %v3560_v38 = vld [vmem:[%s5285_s6 + $0x8] sm:$0xff] }
 0x3c2   :  { %925 = vmatpush.bf16.msrb.mxu1 %v3561_v37 }
 0x3c4   :  { %v583_v40 = vpop.f32.mrf.mxu3 }
 0x3c5   :  { %v592_v41 = vsub.f32 %v4264_v12, %v583_v40  ;;  %v3559_v40 = vld [vmem:[%s5285_s6] sm:$0xff] }
 0x3c6   :  { %926 = vmatpush.bf16.msrb.mxu1 %v3560_v38 }
 0x3c7   :  { %v597_v42 = vmul.f32 1.442695, %v592_v41  ;;  %v3764_v43 = vpop.eup %3763 }
 0x3c9   :  { %3765 = vpow2.f32 %v597_v42 }
 0x3ca   :  { %927 = vmatpush.bf16.msrb.mxu1 %v3559_v40 }
 0x3cf   :  { %v3766_v46 = vpop.eup %3765 }
 0x3d0   :  { %v603_v47 = vpack.c.bf16 %v3766_v46, %v3764_v43 }
 0x3d2   :  { %661 = vmatmul.bf16.vlgmr.msra.gmra.mxu0 %v603_v47 }
 0x3d3   :  { %v586_v48 = vpop.f32.mrf.mxu3 }
 0x3d4   :  { %v593_v49 = vsub.f32 %v4278_v25, %v586_v48 }
 0x3d6   :  { %v599_v50 = vmul.f32 1.442695, %v593_v49 }
 0x3d8   :  { %3767 = vpow2.f32 %v599_v50 }
 0x3db   :  { %v588_v53 = vpop.f32.mrf.mxu3 }
 0x3dc   :  { %v594_v54 = vsub.f32 %v4292_v39, %v588_v53 }
 0x3de   :  { %v601_v56 = vmul.f32 1.442695, %v594_v54  ;;  %v3768_v62 = vpop.eup %3767 }
 0x3e0   :  { %3769 = vpow2.f32 %v601_v56 }
 0x3e6   :  { %v3770_v26 = vpop.eup %3769 }
 0x3e7   :  { %v604_v12 = vpack.c.bf16 %v3770_v26, %v3768_v62 }
 0x3e9   :  { %666 = vmatmul.bf16.gmra.mxu0 %v604_v12 }
 0x44f   :  { %v662_v57 = vpop.f32.mrf.mxu0 }
 0x450   :  { %3771 = vrcp.f32 %v662_v57 }
 0x456   :  { %v3772_v59 = vpop.eup %3771 }
 0x457   :  { %v664_v58 = vpop.f32.mrf.mxu0  ;;  %v676_v61 = vmul.f32 %v3772_v59, %v3764_v43 }
 0x458   :  { %3773 = vrcp.f32 %v664_v58 }
 0x45e   :  { %v3774_v60 = vpop.eup %3773 }
 0x45f   :  { %v677_v63 = vmul.f32 %v3774_v60, %v3766_v46 }
 0x461   :  { %v680_v25 = vpack.c.bf16 %v677_v63, %v676_v61 }
 0x463   :  { %748 = vrot.lane.b32.xlu0 %v680_v25, %s3968_s13  ;;  %711 = vrot.lane.b32.xlu1 %v680_v25, %s3975_s29 }
 0x464   :  { %3136 = vmatmul.msk.bf16.vlgmr.msra.gmra.mxu1 %vm473_vm4, %v680_v25 }
 0x466   :  { %v667_v39 = vpop.f32.mrf.mxu0 }
 0x467   :  { %3775 = vrcp.f32 %v667_v39 }
 0x46b   :  { %783 = vrot.lane.b32.xlu0 %v680_v25, %s3973_s27  ;;  %787 = vrot.lane.b32.xlu1 %v4217_v29, %s3972_s26 }
 0x46d   :  { %v3776_v1 = vpop.eup %3775 }
 0x46e   :  { %v669_v0 = vpop.f32.mrf.mxu0  ;;  %v678_v3 = vmul.f32 %v3776_v1, %v3768_v62 }
 0x46f   :  { %3777 = vrcp.f32 %v669_v0 }
 0x475   :  { %v3778_v2 = vpop.eup %3777 }
 0x476   :  { %v679_v4 = vmul.f32 %v3778_v2, %v3770_v26 }
 0x478   :  { %v681_v5 = vpack.c.bf16 %v679_v4, %v678_v3 }
 0x47a   :  { %785 = vrot.lane.b32.xlu0 %v681_v5, %s3973_s27  ;;  %750 = vrot.lane.b32.xlu1 %v681_v5, %s3968_s13 }
 0x47b   :  { %713 = vrot.lane.b32.xlu2 %v681_v5, %s3975_s29  ;;  %3137 = vmatmul.msk.bf16.gmra.mxu1 %vm473_vm4, %v681_v5 }
 0x4d5   :  { %v749_v6 = vpop.permute.xlu0 %748  ;;  %v712_v7 = vpop.permute.xlu1 %711 }
 0x4d6   :  { %3140 = vmatmul.msk.bf16.vlgmr.msrb.gmra.mxu3 %vm473_vm4, %v749_v6  ;;  %3138 = vmatmul.msk.bf16.vlgmr.msra.gmra.mxu2 %vm473_vm4, %v712_v7  ;;  %v714_v9 = vpop.permute.xlu2 %713 }
 0x4dd   :  { %v788_v29 = vpop.permute.xlu1 %787  ;;  %v784_v8 = vpop.permute.xlu0 %783 }
 0x4de   :  { %806 = vmatpush.bf16.msrb.mxu0 %v788_v29 }
 0x4e1   :  { %3142 = vmatmul.msk.bf16.vlgmr.msrb.gmra.mxu0 %vm473_vm4, %v784_v8  ;;  %v699_v41 = vpop.f32.mrf.mxu1 }
 0x4e6   :  { %3139 = vmatmul.msk.bf16.gmra.mxu2 %vm473_vm4, %v714_v9 }
 0x4e9   :  { %v701_v50 = vpop.f32.mrf.mxu1 }
 0x4ec   :  { %v751_v10 = vpop.permute.xlu1 %750  ;;  %v786_v11 = vpop.permute.xlu0 %785 }
 0x4ed   :  { %3141 = vmatmul.msk.bf16.gmra.mxu3 %vm473_vm4, %v751_v10 }
 0x4f1   :  { %3143 = vmatmul.msk.bf16.gmra.mxu0 %vm473_vm4, %v786_v11 }
 0x4f8   :  { %v704_v61 = vpop.f32.mrf.mxu1 }
 0x500   :  { %v706_v2 = vpop.f32.mrf.mxu1 }
 0x559   :  { %v773_v13 = vpop.f32.mrf.mxu3  ;;  %v738_v15 = vpop.f32.mrf.mxu2 }
 0x55e   :  { %v808_v16 = vpop.f32.mrf.mxu0 }
 0x561   :  { %v775_v17 = vpop.f32.mrf.mxu3  ;;  %v740_v18 = vpop.f32.mrf.mxu2 }
 0x562   :  { %v3658_v20 = vpack.i.bf16 %v775_v17, %v773_v13  ;;  %v3653_v21 = vpack.i.bf16 %v740_v18, %v738_v15  ;;  %v889_v15 = vperm.slane %v4164_v55, 2 }
 0x564   :  { %3659 = vrot.lane.b32.xlu1 %v3658_v20, %s3973_s27  ;;  %3654 = vrot.lane.b32.xlu2 %v3653_v21, %s3971_s25 }
 0x566   :  { %v810_v22 = vpop.f32.mrf.mxu0 }
 0x567   :  { %v3663_v23 = vpack.i.bf16 %v810_v22, %v808_v16 }
 0x569   :  { %v743_v24 = vpop.f32.mrf.mxu2  ;;  %3664 = vrot.lane.b32.xlu0 %v3663_v23, %s3974_s28 }
 0x56e   :  { %v813_v27 = vpop.f32.mrf.mxu0 }
 0x570   :  { %v778_v28 = vpop.f32.mrf.mxu3 }
 0x571   :  { %v745_v30 = vpop.f32.mrf.mxu2 }
 0x572   :  { %v3668_v31 = vpack.i.bf16 %v745_v30, %v743_v24 }
 0x574   :  { %3669 = vrot.lane.b32.xlu2 %v3668_v31, %s3971_s25 }
 0x576   :  { %v815_v32 = vpop.f32.mrf.mxu0 }
 0x577   :  { %v3678_v33 = vpack.i.bf16 %v815_v32, %v813_v27 }
 0x578   :  { %v780_v34 = vpop.f32.mrf.mxu3 }
 0x579   :  { %v3673_v35 = vpack.i.bf16 %v780_v34, %v778_v28  ;;  %3679 = vrot.lane.b32.xlu0 %v3678_v33, %s3974_s28  ;;  %v3977_v34 = vmov 64.0  }
 0x57a   :  { %3779 = vrcp.f32 %v3977_v34 }
 0x57b   :  { %3674 = vrot.lane.b32.xlu1 %v3673_v35, %s3973_s27 }
 0x5be   :  { %v3655_v42 = vpop.permute.xlu2 %3654 }
 0x5bf   :  { %v3657_v46 = vunpack.i.h.bf16 %v3655_v42  ;;  %v3656_v47 = vunpack.i.l.bf16 %v3655_v42 }
 0x5c1   :  { %v867_v54 = vsel %vm276_vm3, %v701_v50, %v3657_v46  ;;  %v866_v56 = vsel %vm276_vm3, %v699_v41, %v3656_v47 }
 0x5ce   :  { %v3670_v63 = vpop.permute.xlu2 %3669 }
 0x5cf   :  { %v3672_v25 = vunpack.i.h.bf16 %v3670_v63  ;;  %v3671_v39 = vunpack.i.l.bf16 %v3670_v63  ;;  %v3188_v63 = vld [vmem:[%s5286_s7 + $0x30] sm:$0xf] }
 0x5d1   :  { %v869_v5 = vsel %vm276_vm3, %v706_v2, %v3672_v25  ;;  %v868_v6 = vsel %vm276_vm3, %v704_v61, %v3671_v39  ;;  %v3570_v25 = vld [vmem:[%s5286_s7 + $0x34] sm:$0xf0]  ;;  %v3180_v2 = vld [vmem:[%s5286_s7 + $0x20] sm:$0xf] }
 0x5d2   :  { %v3189_v39 = vor.u32 %v3570_v25, %v3188_v63  ;;  %v3576_v25 = vld [vmem:[%s5287_s8 + $0x28] sm:$0xff] }
 0x5d4   :  { %1113 = vmatpush.bf16.msrb.mxu2 %v3189_v39 }
 0x5d6   :  { %v3660_v43 = vpop.permute.xlu1 %3659 }
 0x5d7   :  { %v3662_v48 = vunpack.i.h.bf16 %v3660_v43  ;;  %v3661_v49 = vunpack.i.l.bf16 %v3660_v43 }
 0x5d9   :  { %v871_v12 = vsel %vm473_vm4, %v867_v54, %v3662_v48  ;;  %v870_v57 = vsel %vm473_vm4, %v866_v56, %v3661_v49 }
 0x5db   :  { %v3665_v53 = vpop.permute.xlu0 %3664 }
 0x5dc   :  { %v3667_v62 = vunpack.i.h.bf16 %v3665_v53  ;;  %v3666_v26 = vunpack.i.l.bf16 %v3665_v53 }
 0x5de   :  { %v875_v58 = vsel %vm5292_vm12, %v870_v57, %v3666_v26  ;;  %v876_v59 = vsel %vm5292_vm12, %v871_v12, %v3667_v62 }
 0x5df   :  { %v879_v60 = vpack.c.bf16 %v876_v59, %v875_v58 }
 0x5e1   :  { %3160 = vmatmul.msk.bf16.vlgmr.msrb.gmra.mxu1 %vm223_vm2, %v879_v60  ;;  %v4441_v60 = vperm.slane %v4207_v14, 2  ;;  %v3569_v14 = vld [vmem:[%s5286_s7 + $0x34] sm:$0xf] }
 0x5eb   :  { %v3680_v0 = vpop.permute.xlu0 %3679 }
 0x5ec   :  { %v3682_v7 = vunpack.i.h.bf16 %v3680_v0  ;;  %v3681_v29 = vunpack.i.l.bf16 %v3680_v0  ;;  %v3190_v0 = vld [vmem:[%s5286_s7 + $0x38] sm:$0xf0] }
 0x5ed   :  { %v3675_v1 = vpop.permute.xlu1 %3674 }
 0x5ee   :  { %v3677_v3 = vunpack.i.h.bf16 %v3675_v1  ;;  %v3676_v4 = vunpack.i.l.bf16 %v3675_v1  ;;  %v3193_v1 = vor.u32 %v3569_v14, %v3190_v0  ;;  %v3584_v14 = vld [vmem:[%s5287_s8 + $0x68] sm:$0xff] }
 0x5f0   :  { %v873_v8 = vsel %vm473_vm4, %v869_v5, %v3677_v3  ;;  %v872_v9 = vsel %vm473_vm4, %v868_v6, %v3676_v4  ;;  %1132 = vmatpush.bf16.msra.mxu3 %v3193_v1  ;;  %v3568_v3 = vld [vmem:[%s5286_s7 + $0x24] sm:$0xf0]  ;;  %v3567_v4 = vld [vmem:[%s5286_s7 + $0x24] sm:$0xf]  ;;  %v3182_v6 = vld [vmem:[%s5286_s7 + $0x28] sm:$0xf0] }
 0x5f1   :  { %v877_v10 = vsel %vm5292_vm12, %v872_v9, %v3681_v29  ;;  %v878_v11 = vsel %vm5292_vm12, %v873_v8, %v3682_v7  ;;  %v3181_v5 = vor.u32 %v3568_v3, %v3180_v2  ;;  %v3185_v7 = vor.u32 %v3567_v4, %v3182_v6  ;;  %v3172_v29 = vld [vmem:[%s5286_s7 + $0x10] sm:$0xf]  ;;  %v3566_v8 = vld [vmem:[%s5286_s7 + $0x14] sm:$0xf0]  ;;  %v3565_v9 = vld [vmem:[%s5286_s7 + $0x14] sm:$0xf] }
 0x5f2   :  { %v880_v13 = vpack.c.bf16 %v878_v11, %v877_v10  ;;  %v3173_v10 = vor.u32 %v3566_v8, %v3172_v29  ;;  %v3174_v11 = vld [vmem:[%s5286_s7 + $0x18] sm:$0xf0]  ;;  %v3583_v6 = vld [vmem:[%s5287_s8 + $0x60] sm:$0xff] }
 0x5f3   :  { %1114 = vmatpush.bf16.msrb.mxu2 %v3181_v5  ;;  %v3575_v5 = vld [vmem:[%s5287_s8 + $0x20] sm:$0xff] }
 0x5f4   :  { %3161 = vmatmul.msk.bf16.gmra.mxu1 %vm223_vm2, %v880_v13  ;;  %1133 = vmatpush.bf16.msra.mxu3 %v3185_v7  ;;  %v3177_v13 = vor.u32 %v3565_v9, %v3174_v11 }
 0x5f7   :  { %1115 = vmatpush.bf16.msrb.mxu2 %v3173_v10 }
 0x5f8   :  { %1134 = vmatpush.bf16.msra.mxu3 %v3177_v13 }
 0x65e   :  { %v929_v16 = vpop.f32.mrf.mxu1 }
 0x65f   :  { %v930_v17 = vadd.f32 %v929_v16, %v889_v15 }
 0x661   :  { %v939_v18 = vadd.f32 %v930_v17, %v4145_v44  ;;  %v3164_v17 = vld [vmem:[%s5286_s7] sm:$0xf] }
 0x663   :  { %v943_v20 = vsel %vm223_vm2, %v939_v18, 0.0 }
 0x664   :  { %944 = vadd.xlane.f32.xlu2 %v943_v20  ;;  %v3563_v20 = vld [vmem:[%s5286_s7 + $0x4] sm:$0xf] }
 0x666   :  { %v931_v21 = vpop.f32.mrf.mxu1 }
 0x667   :  { %v932_v22 = vadd.f32 %v931_v21, %v889_v15 }
 0x669   :  { %v940_v23 = vadd.f32 %v932_v22, %v4147_v45  ;;  %v3780_v45 = vpop.eup %3779  ;;  %v3166_v22 = vld [vmem:[%s5286_s7 + $0x8] sm:$0xf0] }
 0x66a   :  { %v956_v35 = vmul.f32 64.0, %v3780_v45  ;;  %vm960_vm13 = vweird.f32 %v3780_v45 }
 0x66b   :  { %v946_v24 = vsel %vm223_vm2, %v940_v23, 0.0 }
 0x66c   :  { %947 = vadd.xlane.f32.xlu1 %v946_v24  ;;  %v957_v36 = vsub.f32 1.0, %v956_v35  ;;  %v3169_v24 = vor.u32 %v3563_v20, %v3166_v22 }
 0x66e   :  { %v958_v37 = vmul.f32 %v3780_v45, %v957_v36  ;;  %1135 = vmatpush.bf16.msra.mxu3 %v3169_v24 }
 0x670   :  { %v959_v38 = vadd.f32 %v3780_v45, %v958_v37 }
 0x671   :  { %v934_v27 = vpop.f32.mrf.mxu1 }
 0x672   :  { %v935_v28 = vadd.f32 %v934_v27, %v889_v15  ;;  %v4415_v40 = vsel %vm960_vm13, %v3780_v45, %v959_v38 }
 0x674   :  { %v941_v30 = vadd.f32 %v935_v28, %v4153_v51 }
 0x676   :  { %v949_v55 = vsel %vm223_vm2, %v941_v30, 0.0 }
 0x677   :  { %950 = vadd.xlane.f32.xlu0 %v949_v55 }
 0x679   :  { %v936_v31 = vpop.f32.mrf.mxu1 }
 0x67a   :  { %v937_v32 = vadd.f32 %v936_v31, %v889_v15 }
 0x67c   :  { %v942_v44 = vadd.f32 %v937_v32, %v4155_v52 }
 0x67e   :  { %v952_v33 = vsel %vm223_vm2, %v942_v44, 0.0 }
 0x67f   :  { %953 = vadd.xlane.f32.xlu2 %v952_v33 }
 0x6d7   :  { %v945_v51 = vpop.xlane.xlu2 %944 }
 0x6d8   :  { %v962_v41 = vmul.f32 %v4415_v40, %v945_v51 }
 0x6da   :  { %v4418_v42 = vsub.f32 %v939_v18, %v962_v41  ;;  %v3564_v18 = vld [vmem:[%s5286_s7 + $0x4] sm:$0xf0] }
 0x6db   :  { %v3165_v21 = vor.u32 %v3564_v18, %v3164_v17 }
 0x6dc   :  { %v970_v52 = vmul.f32 %v4418_v42, %v4418_v42 }
 0x6dd   :  { %1116 = vmatpush.bf16.msrb.mxu2 %v3165_v21 }
 0x6de   :  { %v974_v43 = vsel %vm223_vm2, %v970_v52, 0.0 }
 0x6df   :  { %v948_v46 = vpop.xlane.xlu1 %947  ;;  %975 = vadd.xlane.f32.xlu1 %v974_v43  ;;  %v3578_v43 = vld [vmem:[%s5287_s8 + $0x38] sm:$0xff] }
 0x6e0   :  { %v963_v47 = vmul.f32 %v4415_v40, %v948_v46  ;;  %v3586_v46 = vld [vmem:[%s5287_s8 + $0x78] sm:$0xff]  ;;  %1291 = vmatpush.bf16.msra.mxu0 %v3578_v43 }
 0x6e1   :  { %1310 = vmatpush.bf16.msra.mxu1 %v3586_v46 }
 0x6e2   :  { %v4424_v48 = vsub.f32 %v940_v23, %v963_v47 }
 0x6e4   :  { %v971_v49 = vmul.f32 %v4424_v48, %v4424_v48 }
 0x6e6   :  { %v977_v50 = vsel %vm223_vm2, %v971_v49, 0.0 }
 0x6e7   :  { %978 = vadd.xlane.f32.xlu0 %v977_v50 }
 0x6ea   :  { %v951_v53 = vpop.xlane.xlu0 %950 }
 0x6eb   :  { %v964_v54 = vmul.f32 %v4415_v40, %v951_v53 }
 0x6ed   :  { %v4430_v56 = vsub.f32 %v941_v30, %v964_v54  ;;  %v3577_v54 = vld [vmem:[%s5287_s8 + $0x30] sm:$0xff] }
 0x6ee   :  { %1292 = vmatpush.bf16.msra.mxu0 %v3577_v54 }
 0x6ef   :  { %v972_v62 = vmul.f32 %v4430_v56, %v4430_v56 }
 0x6f1   :  { %v980_v26 = vsel %vm223_vm2, %v972_v62, 0.0  ;;  %v3585_v62 = vld [vmem:[%s5287_s8 + $0x70] sm:$0xff] }
 0x6f2   :  { %981 = vadd.xlane.f32.xlu2 %v980_v26  ;;  %v954_v12 = vpop.xlane.xlu2 %953  ;;  %1311 = vmatpush.bf16.msra.mxu1 %v3585_v62 }
 0x6f3   :  { %v965_v57 = vmul.f32 %v4415_v40, %v954_v12  ;;  %1293 = vmatpush.bf16.msra.mxu0 %v3576_v25 }
 0x6f5   :  { %v4436_v58 = vsub.f32 %v942_v44, %v965_v57 }
 0x6f6   :  { %1312 = vmatpush.bf16.msra.mxu1 %v3584_v14 }
 0x6f7   :  { %v973_v59 = vmul.f32 %v4436_v58, %v4436_v58  ;;  %1294 = vmatpush.bf16.msra.mxu0 %v3575_v5 }
 0x6f9   :  { %v983_v61 = vsel %vm223_vm2, %v973_v59, 0.0 }
 0x6fa   :  { %984 = vadd.xlane.f32.xlu1 %v983_v61  ;;  %1313 = vmatpush.bf16.msra.mxu1 %v3583_v6 }
 0x6fb   :  { %1044 = vrot.lane.b32.xlu0 %v4441_v60, %s3968_s13 }
 0x70a   :  { %1288 = vrot.lane.b32.xlu2 %v889_v15, %s3968_s13 }
 0x752   :  { %v976_v15 = vpop.xlane.xlu1 %975 }
 0x753   :  { %v986_v16 = vmul.f32 %v976_v15, %v4415_v40 }
 0x755   :  { %v990_v23 = vadd.f32 1e-05, %v986_v16 }
 0x757   :  { %3781 = vrsqrt.f32 %v990_v23  ;;  %vm1000_vm15 = vweird.f32 %v990_v23 }
 0x75a   :  { %v979_v27 = vpop.xlane.xlu0 %978 }
 0x75b   :  { %v987_v28 = vmul.f32 %v979_v27, %v4415_v40 }
 0x75d   :  { %v3782_v30 = vpop.eup %3781  ;;  %v991_v55 = vadd.f32 1e-05, %v987_v28  ;;  %v3581_v28 = vld [vmem:[%s5287_s8 + $0x50] sm:$0xff] }
 0x75e   :  { %v995_v31 = vmul.f32 %v3782_v30, %v990_v23  ;;  %vm1001_vm14 = vweird.f32 %v3782_v30 }
 0x75f   :  { %3783 = vrsqrt.f32 %v991_v55  ;;  %vm1002_vm0 = vmor %vm1000_vm15, %vm1001_vm14  ;;  %vm1010_vm14 = vweird.f32 %v991_v55 }
 0x760   :  { %v996_v32 = vmul.f32 %v3782_v30, %v995_v31  ;;  %v3571_v31 = vld [vmem:[%s5287_s8] sm:$0xff] }
 0x762   :  { %v997_v44 = vmul.f32 0.5, %v996_v32  ;;  %v3579_v32 = vld [vmem:[%s5287_s8 + $0x40] sm:$0xff] }
 0x764   :  { %v998_v33 = vsub.f32 1.5, %v997_v44 }
 0x765   :  { %v982_v34 = vpop.xlane.xlu2 %981  ;;  %v3784_v45 = vpop.eup %3783 }
 0x766   :  { %v988_v35 = vmul.f32 %v982_v34, %v4415_v40  ;;  %v999_v36 = vmul.f32 %v3782_v30, %v998_v33  ;;  %v1005_v37 = vmul.f32 %v3784_v45, %v991_v55  ;;  %vm1011_vm13 = vweird.f32 %v3784_v45  ;;  %v3580_v55 = vld [vmem:[%s5287_s8 + $0x48] sm:$0xff]  ;;  %v4574_v34 = vld [vmem:[%s5283_s4] sm:$0xff] }
 0x767   :  { %vm1012_vm15 = vmor %vm1010_vm14, %vm1011_vm13 }
 0x768   :  { %v992_v38 = vadd.f32 1e-05, %v988_v35  ;;  %v1006_v51 = vmul.f32 %v3784_v45, %v1005_v37  ;;  %v1003_v41 = vsel %vm1002_vm0, %v3782_v30, %v999_v36  ;;  %v3572_v30 = vld [vmem:[%s5287_s8 + $0x8] sm:$0xff] }
 0x769   :  { %v1034_v50 = vmul.f32 %v1003_v41, %v4418_v42  ;;  %v3846_v35 = vld [vmem:[%s5283_s4 + $0x8] sm:$0xff] }
 0x76a   :  { %3785 = vrsqrt.f32 %v992_v38  ;;  %v1007_v52 = vmul.f32 0.5, %v1006_v51  ;;  %vm1020_vm13 = vweird.f32 %v992_v38  ;;  %v1062_v36 = vperm.slane %v3846_v35, 1 }
 0x76b   :  { %v1039_v63 = vmul.f32 %v4441_v60, %v1034_v50 }
 0x76c   :  { %v1008_v47 = vsub.f32 1.5, %v1007_v52 }
 0x76d   :  { %v985_v49 = vpop.xlane.xlu1 %984  ;;  %v1045_v0 = vpop.permute.xlu0 %1044 }
 0x76e   :  { %v989_v53 = vmul.f32 %v985_v49, %v4415_v40  ;;  %v1009_v26 = vmul.f32 %v3784_v45, %v1008_v47  ;;  %v4521_v3 = vadd.f32 %v1045_v0, %v1039_v63 }
 0x770   :  { %v3786_v12 = vpop.eup %3785  ;;  %v993_v57 = vadd.f32 1e-05, %v989_v53  ;;  %v1013_v59 = vsel %vm1012_vm15, %v3784_v45, %v1009_v26  ;;  %v1061_v45 = vperm.slane %v4574_v34, 1 }
 0x771   :  { %v1015_v61 = vmul.f32 %v3786_v12, %v992_v38  ;;  %v1035_v42 = vmul.f32 %v1013_v59, %v4424_v48  ;;  %vm1021_vm0 = vweird.f32 %v3786_v12 }
 0x772   :  { %3787 = vrsqrt.f32 %v993_v57  ;;  %vm1022_vm14 = vmor %vm1020_vm13, %vm1021_vm0  ;;  %vm1030_vm12 = vweird.f32 %v993_v57 }
 0x773   :  { %v1016_v39 = vmul.f32 %v3786_v12, %v1015_v61  ;;  %v1040_v1 = vmul.f32 %v4441_v60, %v1035_v42 }
 0x775   :  { %v1017_v2 = vmul.f32 0.5, %v1016_v39  ;;  %v4523_v48 = vadd.f32 %v1045_v0, %v1040_v1 }
 0x777   :  { %v1018_v4 = vsub.f32 1.5, %v1017_v2  ;;  %v1051_v29 = vpack.c.bf16 %v4523_v48, %v4521_v3 }
 0x778   :  { %v3788_v7 = vpop.eup %3787 }
 0x779   :  { %v1019_v8 = vmul.f32 %v3786_v12, %v1018_v4  ;;  %v1025_v9 = vmul.f32 %v3788_v7, %v993_v57  ;;  %3194 = vmatmul.msk.bf16.vlgmr.msrb.gmra.mxu2 %vm223_vm2, %v1051_v29  ;;  %3196 = vmatmul.msk.bf16.vlgmr.msra.gmra.mxu3 %vm223_vm2, %v1051_v29  ;;  %vm1031_vm15 = vweird.f32 %v3788_v7  ;;  %v1289_v4 = vpop.permute.xlu2 %1288 }
 0x77a   :  { %vm1032_vm1 = vmor %vm1030_vm12, %vm1031_vm15 }
 0x77b   :  { %v1026_v10 = vmul.f32 %v3788_v7, %v1025_v9  ;;  %v1023_v11 = vsel %vm1022_vm14, %v3786_v12, %v1019_v8 }
 0x77c   :  { %v1036_v16 = vmul.f32 %v1023_v11, %v4430_v56  ;;  %v3574_v56 = vld [vmem:[%s5287_s8 + $0x18] sm:$0xff] }
 0x77d   :  { %v1027_v13 = vmul.f32 0.5, %v1026_v10  ;;  %1295 = vmatpush.bf16.msra.mxu0 %v3574_v56 }
 0x77e   :  { %v1041_v20 = vmul.f32 %v4441_v60, %v1036_v16 }
 0x77f   :  { %v1028_v15 = vsub.f32 1.5, %v1027_v13 }
 0x780   :  { %v4539_v23 = vadd.f32 %v1045_v0, %v1041_v20 }
 0x781   :  { %v1029_v17 = vmul.f32 %v3788_v7, %v1028_v15 }
 0x783   :  { %v1033_v18 = vsel %vm1032_vm1, %v3788_v7, %v1029_v17 }
 0x784   :  { %v1037_v21 = vmul.f32 %v1033_v18, %v4436_v58  ;;  %v3582_v58 = vld [vmem:[%s5287_s8 + $0x58] sm:$0xff] }
 0x785   :  { %1314 = vmatpush.bf16.msra.mxu1 %v3582_v58 }
 0x786   :  { %v1042_v22 = vmul.f32 %v4441_v60, %v1037_v21  ;;  %v3573_v60 = vld [vmem:[%s5287_s8 + $0x10] sm:$0xff] }
 0x787   :  { %1296 = vmatpush.bf16.msra.mxu0 %v3573_v60 }
 0x788   :  { %v4541_v24 = vadd.f32 %v1045_v0, %v1042_v22 }
 0x789   :  { %1315 = vmatpush.bf16.msra.mxu1 %v3581_v28 }
 0x78a   :  { %v1052_v27 = vpack.c.bf16 %v4541_v24, %v4539_v23 }
 0x78b   :  { %1297 = vmatpush.bf16.msra.mxu0 %v3572_v30 }
 0x78c   :  { %3195 = vmatmul.msk.bf16.gmra.mxu2 %vm223_vm2, %v1052_v27  ;;  %3197 = vmatmul.msk.bf16.gmra.mxu3 %vm223_vm2, %v1052_v27 }
 0x78d   :  { %1316 = vmatpush.bf16.msra.mxu1 %v3580_v55 }
 0x78f   :  { %1298 = vmatpush.bf16.msra.mxu0 %v3571_v31 }
 0x791   :  { %1317 = vmatpush.bf16.msra.mxu1 %v3579_v32 }
 0x7fc   :  { %v1118_v44 = vpop.f32.mrf.mxu2  ;;  %v1137_v33 = vpop.f32.mrf.mxu3 }
 0x7fd   :  { %v1119_v37 = vadd.f32 %v1118_v44, %v1061_v45  ;;  %v1138_v38 = vadd.f32 %v1137_v33, %v1062_v36 }
 0x7ff   :  { %v1147_v46 = vmax.f32 %v1119_v37, 0.0  ;;  %v1148_v47 = vmax.f32 %v1138_v38, 0.0 }
 0x804   :  { %v1120_v51 = vpop.f32.mrf.mxu2  ;;  %v1139_v41 = vpop.f32.mrf.mxu3 }
 0x805   :  { %v1121_v52 = vadd.f32 %v1120_v51, %v1061_v45  ;;  %v1140_v43 = vadd.f32 %v1139_v41, %v1062_v36 }
 0x807   :  { %v1149_v49 = vmax.f32 %v1121_v52, 0.0  ;;  %v1150_v50 = vmax.f32 %v1140_v43, 0.0 }
 0x809   :  { %v1155_v53 = vpack.c.bf16 %v1149_v49, %v1147_v46  ;;  %v1156_v54 = vpack.c.bf16 %v1150_v50, %v1148_v47 }
 0x80b   :  { %1299 = vmatmul.bf16.vlgmr.msra.gmra.mxu0 %v1155_v53  ;;  %1318 = vmatmul.bf16.vlgmr.msra.gmra.mxu1 %v1156_v54  ;;  %v4613_v53 = vperm.slane %v4574_v34, 3 }
 0x80f   :  { %v1123_v62 = vpop.f32.mrf.mxu2  ;;  %v1142_v26 = vpop.f32.mrf.mxu3 }
 0x810   :  { %v1124_v12 = vadd.f32 %v1123_v62, %v1061_v45  ;;  %v1143_v57 = vadd.f32 %v1142_v26, %v1062_v36  ;;  %v3298_v26 = vld [vmem:[%s5284_s5 + $0x70] sm:$0xf] }
 0x812   :  { %v1151_v25 = vmax.f32 %v1124_v12, 0.0  ;;  %v1152_v14 = vmax.f32 %v1143_v57, 0.0  ;;  %v3594_v12 = vld [vmem:[%s5284_s5 + $0x74] sm:$0xf0]  ;;  %v3593_v57 = vld [vmem:[%s5284_s5 + $0x74] sm:$0xf] }
 0x813   :  { %v3299_v34 = vor.u32 %v3594_v12, %v3298_v26 }
 0x815   :  { %1500 = vmatpush.bf16.msra.mxu2 %v3299_v34 }
 0x817   :  { %v1125_v59 = vpop.f32.mrf.mxu2  ;;  %v1144_v61 = vpop.f32.mrf.mxu3 }
 0x818   :  { %v1126_v42 = vadd.f32 %v1125_v59, %v1061_v45  ;;  %v1145_v63 = vadd.f32 %v1144_v61, %v1062_v36  ;;  %v3300_v59 = vld [vmem:[%s5284_s5 + $0x78] sm:$0xf0] }
 0x81a   :  { %v1153_v39 = vmax.f32 %v1126_v42, 0.0  ;;  %v1154_v0 = vmax.f32 %v1145_v63, 0.0  ;;  %v3303_v63 = vor.u32 %v3593_v57, %v3300_v59 }
 0x81c   :  { %v1157_v1 = vpack.c.bf16 %v1153_v39, %v1151_v25  ;;  %v1158_v2 = vpack.c.bf16 %v1154_v0, %v1152_v14  ;;  %1519 = vmatpush.bf16.msrb.mxu3 %v3303_v63  ;;  %v3290_v14 = vld [vmem:[%s5284_s5 + $0x60] sm:$0xf]  ;;  %v3592_v39 = vld [vmem:[%s5284_s5 + $0x64] sm:$0xf0]  ;;  %v3591_v0 = vld [vmem:[%s5284_s5 + $0x64] sm:$0xf] }
 0x81e   :  { %1304 = vmatmul.bf16.gmra.mxu0 %v1157_v1  ;;  %1323 = vmatmul.bf16.gmra.mxu1 %v1158_v2  ;;  %v3291_v2 = vor.u32 %v3592_v39, %v3290_v14 }
 0x820   :  { %1501 = vmatpush.bf16.msra.mxu2 %v3291_v2 }
 0x888   :  { %v1300_v5 = vpop.f32.mrf.mxu0  ;;  %v1319_v6 = vpop.f32.mrf.mxu1 }
 0x889   :  { %v1301_v7 = vadd.f32 %v1300_v5, %v1289_v4 }
 0x88b   :  { %v1320_v29 = vadd.f32 %v1319_v6, %v1301_v7  ;;  %v3282_v6 = vld [vmem:[%s5284_s5 + $0x50] sm:$0xf]  ;;  %v3590_v7 = vld [vmem:[%s5284_s5 + $0x54] sm:$0xf0] }
 0x88d   :  { %v1329_v8 = vadd.f32 %v1320_v29, %v4521_v3  ;;  %v3589_v29 = vld [vmem:[%s5284_s5 + $0x54] sm:$0xf] }
 0x88f   :  { %v1333_v9 = vsel %vm223_vm2, %v1329_v8, 0.0 }
 0x890   :  { %v1302_v10 = vpop.f32.mrf.mxu0  ;;  %1334 = vadd.xlane.f32.xlu1 %v1333_v9  ;;  %v1321_v13 = vpop.f32.mrf.mxu1  ;;  %v3284_v9 = vld [vmem:[%s5284_s5 + $0x58] sm:$0xf0] }
 0x891   :  { %v1303_v11 = vadd.f32 %v1302_v10, %v1289_v4  ;;  %v3287_v10 = vor.u32 %v3589_v29, %v3284_v9 }
 0x893   :  { %v1322_v15 = vadd.f32 %v1321_v13, %v1303_v11 }
 0x895   :  { %v1330_v16 = vadd.f32 %v1322_v15, %v4523_v48  ;;  %v3274_v15 = vld [vmem:[%s5284_s5 + $0x40] sm:$0xf] }
 0x897   :  { %v1336_v17 = vsel %vm223_vm2, %v1330_v16, 0.0 }
 0x898   :  { %1337 = vadd.xlane.f32.xlu1 %v1336_v17 }
 0x89b   :  { %v1305_v18 = vpop.f32.mrf.mxu0  ;;  %v1324_v20 = vpop.f32.mrf.mxu1 }
 0x89c   :  { %v1306_v21 = vadd.f32 %v1305_v18, %v1289_v4 }
 0x89e   :  { %v1325_v22 = vadd.f32 %v1324_v20, %v1306_v21  ;;  %v3587_v20 = vld [vmem:[%s5284_s5 + $0x44] sm:$0xf]  ;;  %v3276_v21 = vld [vmem:[%s5284_s5 + $0x48] sm:$0xf0] }
 0x8a0   :  { %v1331_v27 = vadd.f32 %v1325_v22, %v4539_v23  ;;  %v3279_v22 = vor.u32 %v3587_v20, %v3276_v21 }
 0x8a2   :  { %v1339_v3 = vsel %vm223_vm2, %v1331_v27, 0.0 }
 0x8a3   :  { %v1307_v56 = vpop.f32.mrf.mxu0  ;;  %1340 = vadd.xlane.f32.xlu0 %v1339_v3  ;;  %v1326_v60 = vpop.f32.mrf.mxu1 }
 0x8a4   :  { %v1308_v58 = vadd.f32 %v1307_v56, %v1289_v4  ;;  %v3292_v4 = vld [vmem:[%s5284_s5 + $0x68] sm:$0xf0] }
 0x8a5   :  { %v3295_v5 = vor.u32 %v3591_v0, %v3292_v4 }
 0x8a6   :  { %v1327_v28 = vadd.f32 %v1326_v60, %v1308_v58 }
 0x8a7   :  { %1520 = vmatpush.bf16.msrb.mxu3 %v3295_v5 }
 0x8a8   :  { %v1332_v30 = vadd.f32 %v1327_v28, %v4541_v24 }
 0x8aa   :  { %v1342_v48 = vsel %vm223_vm2, %v1332_v30, 0.0 }
 0x8ab   :  { %1343 = vadd.xlane.f32.xlu1 %v1342_v48  ;;  %1521 = vmatpush.bf16.msrb.mxu3 %v3287_v10 }
 0x8af   :  { %1522 = vmatpush.bf16.msrb.mxu3 %v3279_v22 }
 0x903   :  { %v1335_v55 = vpop.xlane.xlu1 %1334 }
 0x904   :  { %v1345_v31 = vmul.f32 %v1335_v55, %v4415_v40 }
 0x906   :  { %v4589_v32 = vsub.f32 %v1329_v8, %v1345_v31  ;;  %v3283_v8 = vor.u32 %v3590_v7, %v3282_v6 }
 0x908   :  { %v1353_v23 = vmul.f32 %v4589_v32, %v4589_v32  ;;  %1502 = vmatpush.bf16.msra.mxu2 %v3283_v8 }
 0x90a   :  { %v1357_v44 = vsel %vm223_vm2, %v1353_v23, 0.0 }
 0x90b   :  { %1358 = vadd.xlane.f32.xlu2 %v1357_v44  ;;  %v1338_v33 = vpop.xlane.xlu1 %1337 }
 0x90c   :  { %v1346_v45 = vmul.f32 %v1338_v33, %v4415_v40 }
 0x90e   :  { %v4595_v35 = vsub.f32 %v1330_v16, %v1346_v45  ;;  %v3588_v16 = vld [vmem:[%s5284_s5 + $0x44] sm:$0xf0] }
 0x90f   :  { %v3275_v18 = vor.u32 %v3588_v16, %v3274_v15 }
 0x910   :  { %v1354_v24 = vmul.f32 %v4595_v35, %v4595_v35 }
 0x911   :  { %1503 = vmatpush.bf16.msra.mxu2 %v3275_v18 }
 0x912   :  { %v1360_v36 = vsel %vm223_vm2, %v1354_v24, 0.0 }
 0x913   :  { %1361 = vadd.xlane.f32.xlu1 %v1360_v36 }
 0x916   :  { %v1341_v37 = vpop.xlane.xlu0 %1340 }
 0x917   :  { %v1347_v38 = vmul.f32 %v1341_v37, %v4415_v40 }
 0x919   :  { %v4601_v51 = vsub.f32 %v1331_v27, %v1347_v38 }
 0x91b   :  { %v1355_v41 = vmul.f32 %v4601_v51, %v4601_v51 }
 0x91d   :  { %v1363_v52 = vsel %vm223_vm2, %v1355_v41, 0.0 }
 0x91e   :  { %1364 = vadd.xlane.f32.xlu1 %v1363_v52  ;;  %v1344_v43 = vpop.xlane.xlu1 %1343 }
 0x91f   :  { %v1348_v46 = vmul.f32 %v1344_v43, %v4415_v40 }
 0x921   :  { %v4607_v47 = vsub.f32 %v1332_v30, %v1348_v46 }
 0x923   :  { %v1356_v49 = vmul.f32 %v4607_v47, %v4607_v47 }
 0x925   :  { %v1366_v50 = vsel %vm223_vm2, %v1356_v49, 0.0 }
 0x926   :  { %1367 = vadd.xlane.f32.xlu1 %v1366_v50 }
 0x93f   :  { %1427 = vrot.lane.b32.xlu1 %v4613_v53, %s3968_s13 }
 0x97e   :  { %v1359_v54 = vpop.xlane.xlu2 %1358 }
 0x97f   :  { %v1369_v62 = vmul.f32 %v1359_v54, %v4415_v40 }
 0x981   :  { %v1373_v61 = vadd.f32 1e-05, %v1369_v62 }
 0x983   :  { %3789 = vrsqrt.f32 %v1373_v61  ;;  %vm1383_vm0 = vweird.f32 %v1373_v61 }
 0x986   :  { %v1362_v42 = vpop.xlane.xlu1 %1361 }
 0x987   :  { %v1370_v25 = vmul.f32 %v1362_v42, %v4415_v40 }
 0x989   :  { %v1374_v1 = vadd.f32 1e-05, %v1370_v25  ;;  %v3790_v11 = vpop.eup %3789 }
 0x98a   :  { %v1378_v27 = vmul.f32 %v3790_v11, %v1373_v61  ;;  %vm1384_vm1 = vweird.f32 %v3790_v11 }
 0x98b   :  { %3791 = vrsqrt.f32 %v1374_v1  ;;  %vm1385_vm13 = vmor %vm1383_vm0, %vm1384_vm1  ;;  %vm1393_vm14 = vweird.f32 %v1374_v1 }
 0x98c   :  { %v1379_v58 = vmul.f32 %v3790_v11, %v1378_v27 }
 0x98e   :  { %v1380_v55 = vmul.f32 0.5, %v1379_v58 }
 0x990   :  { %v1381_v44 = vsub.f32 1.5, %v1380_v55 }
 0x991   :  { %v1365_v13 = vpop.xlane.xlu1 %1364  ;;  %v3792_v17 = vpop.eup %3791 }
 0x992   :  { %v1371_v3 = vmul.f32 %v1365_v13, %v4415_v40  ;;  %v1388_v56 = vmul.f32 %v3792_v17, %v1374_v1  ;;  %v1382_v36 = vmul.f32 %v3790_v11, %v1381_v44  ;;  %vm1394_vm12 = vweird.f32 %v3792_v17 }
 0x993   :  { %vm1395_vm15 = vmor %vm1393_vm14, %vm1394_vm12 }
 0x994   :  { %v1375_v60 = vadd.f32 1e-05, %v1371_v3  ;;  %v1389_v28 = vmul.f32 %v3792_v17, %v1388_v56  ;;  %v1386_v43 = vsel %vm1385_vm13, %v3790_v11, %v1382_v36 }
 0x995   :  { %v1417_v54 = vmul.f32 %v1386_v43, %v4589_v32 }
 0x996   :  { %3793 = vrsqrt.f32 %v1375_v60  ;;  %v1390_v23 = vmul.f32 0.5, %v1389_v28  ;;  %vm1403_vm14 = vweird.f32 %v1375_v60  ;;  %v4735_v28 = vld [vmem:[%s5283_s4 + $0x18] sm:$0xff] }
 0x997   :  { %v1422_v57 = vmul.f32 %v4613_v53, %v1417_v54  ;;  %v1449_v44 = vperm.slane %v4735_v28, 0 }
 0x998   :  { %v1391_v33 = vsub.f32 1.5, %v1390_v23 }
 0x999   :  { %v1368_v30 = vpop.xlane.xlu1 %1367 }
 0x99a   :  { %v1372_v48 = vmul.f32 %v1368_v30, %v4415_v40  ;;  %v1392_v37 = vmul.f32 %v3792_v17, %v1391_v33 }
 0x99c   :  { %v1376_v31 = vadd.f32 1e-05, %v1372_v48  ;;  %v3794_v45 = vpop.eup %3793  ;;  %v1396_v46 = vsel %vm1395_vm15, %v3792_v17, %v1392_v37 }
 0x99d   :  { %v1398_v38 = vmul.f32 %v3794_v45, %v1375_v60  ;;  %v1418_v62 = vmul.f32 %v1396_v46, %v4595_v35  ;;  %vm1404_vm13 = vweird.f32 %v3794_v45 }
 0x99e   :  { %3795 = vrsqrt.f32 %v1376_v31  ;;  %vm1413_vm12 = vweird.f32 %v1376_v31  ;;  %vm1405_vm15 = vmor %vm1403_vm14, %vm1404_vm13 }
 0x99f   :  { %v1399_v49 = vmul.f32 %v3794_v45, %v1398_v38  ;;  %v1423_v34 = vmul.f32 %v4613_v53, %v1418_v62  ;;  %v3847_v62 = vld [vmem:[%s5288_s9 + $0x38] sm:$0xff] }
 0x9a1   :  { %v1400_v26 = vmul.f32 0.5, %v1399_v49 }
 0x9a3   :  { %v1401_v59 = vsub.f32 1.5, %v1400_v26 }
 0x9a4   :  { %v3796_v24 = vpop.eup %3795 }
 0x9a5   :  { %v1408_v41 = vmul.f32 %v3796_v24, %v1376_v31  ;;  %vm1414_vm1 = vweird.f32 %v3796_v24  ;;  %v1402_v35 = vmul.f32 %v3794_v45, %v1401_v59 }
 0x9a6   :  { %vm1415_vm0 = vmor %vm1413_vm12, %vm1414_vm1 }
 0x9a7   :  { %v1409_v52 = vmul.f32 %v3796_v24, %v1408_v41  ;;  %v1406_v0 = vsel %vm1405_vm15, %v3794_v45, %v1402_v35  ;;  %v3852_v35 = vld [vmem:[%s5288_s9 + $0x10] sm:$0xff] }
 0x9a8   :  { %v1419_v1 = vmul.f32 %v1406_v0, %v4601_v51  ;;  %v4696_v51 = vld [vmem:[%s5283_s4 + $0x10] sm:$0xff] }
 0x9a9   :  { %v1410_v50 = vmul.f32 0.5, %v1409_v52 }
 0x9aa   :  { %v1424_v4 = vmul.f32 %v4613_v53, %v1419_v1 }
 0x9ab   :  { %v1411_v12 = vsub.f32 1.5, %v1410_v50 }
 0x9ad   :  { %v1412_v61 = vmul.f32 %v3796_v24, %v1411_v12  ;;  %v3848_v12 = vld [vmem:[%s5288_s9 + $0x30] sm:$0xff] }
 0x9af   :  { %v1416_v14 = vsel %vm1415_vm0, %v3796_v24, %v1412_v61  ;;  %v3850_v61 = vld [vmem:[%s5288_s9 + $0x20] sm:$0xff] }
 0x9b0   :  { %v1420_v39 = vmul.f32 %v1416_v14, %v4607_v47 }
 0x9b1   :  { %v1428_v42 = vpop.permute.xlu1 %1427 }
 0x9b2   :  { %v4673_v63 = vadd.f32 %v1428_v42, %v1422_v57  ;;  %v4675_v25 = vadd.f32 %v1428_v42, %v1423_v34  ;;  %v1425_v2 = vmul.f32 %v4613_v53, %v1420_v39  ;;  %v4687_v6 = vadd.f32 %v1428_v42, %v1424_v4  ;;  %v3849_v34 = vld [vmem:[%s5288_s9 + $0x28] sm:$0xff]  ;;  %v3854_v39 = vld [vmem:[%s5288_s9] sm:$0xff] }
 0x9b3   :  { %v1448_v53 = vperm.slane %v4696_v51, 0 }
 0x9b4   :  { %v1437_v32 = vpack.c.bf16 %v4675_v25, %v4673_v63  ;;  %v4685_v5 = vadd.f32 %v1428_v42, %v1425_v2 }
 0x9b6   :  { %3304 = vmatmul.msk.bf16.vlgmr.msra.gmra.mxu2 %vm223_vm2, %v1437_v32  ;;  %3306 = vmatmul.msk.bf16.vlgmr.msrb.gmra.mxu3 %vm223_vm2, %v1437_v32  ;;  %v1438_v7 = vpack.c.bf16 %v4685_v5, %v4687_v6  ;;  %v3851_v32 = vld [vmem:[%s5288_s9 + $0x18] sm:$0xff] }
 0x9c6   :  { %3305 = vmatmul.msk.bf16.gmra.mxu2 %vm223_vm2, %v1438_v7  ;;  %3307 = vmatmul.msk.bf16.gmra.mxu3 %vm223_vm2, %v1438_v7 }
 0xa39   :  { %v1505_v29 = vpop.f32.mrf.mxu2  ;;  %v1524_v18 = vpop.f32.mrf.mxu3 }
 0xa3a   :  { %v1506_v16 = vadd.f32 %v1505_v29, %v1448_v53  ;;  %v1525_v43 = vadd.f32 %v1524_v18, %v1449_v44 }
 0xa41   :  { %v1507_v47 = vpop.f32.mrf.mxu2  ;;  %v1526_v22 = vpop.f32.mrf.mxu3 }
 0xa42   :  { %v1508_v15 = vadd.f32 %v1507_v47, %v1448_v53  ;;  %v1527_v38 = vadd.f32 %v1526_v22, %v1449_v44 }
 0xa44   :  { %v4707_v17 = vpack.c.bf16 %v1508_v15, %v1506_v16  ;;  %v4746_v46 = vpack.c.bf16 %v1527_v38, %v1525_v43 }
 0xa49   :  { %v1510_v8 = vpop.f32.mrf.mxu2  ;;  %v1529_v56 = vpop.f32.mrf.mxu3 }
 0xa4a   :  { %v1511_v10 = vadd.f32 %v1510_v8, %v1448_v53  ;;  %v1530_v45 = vadd.f32 %v1529_v56, %v1449_v44 }
 0xa51   :  { %v1512_v9 = vpop.f32.mrf.mxu2  ;;  %v1531_v23 = vpop.f32.mrf.mxu3 }
 0xa52   :  { %v1513_v11 = vadd.f32 %v1512_v9, %v1448_v53  ;;  %v1532_v33 = vadd.f32 %v1531_v23, %v1449_v44 }
 0xa54   :  { %v4699_v13 = vpack.c.bf16 %v1513_v11, %v1511_v10  ;;  %v4742_v41 = vpack.c.bf16 %v1532_v33, %v1530_v45  ;;  %v3856_v45 = vld [vmem:[%s5281_s2 + $0x28] sm:$0xff] }
 0xa56   :  { %1579 = vrot.lane.b32.xlu1 %v4699_v13, %s3974_s28  ;;  %1657 = vrot.lane.b32.xlu2 %v4699_v13, %s3971_s25 }
 0xa57   :  { %1618 = vrot.lane.b32.xlu0 %v4699_v13, %s3973_s27 }
 0xa5e   :  { %1612 = vrot.lane.b32.xlu2 %v4707_v17, %s3975_s29  ;;  %1655 = vrot.lane.b32.xlu1 %v4707_v17, %s3971_s25 }
 0xa5f   :  { %1616 = vrot.lane.b32.xlu0 %v4707_v17, %s3973_s27 }
 0xa66   :  { %1614 = vrot.lane.b32.xlu2 %v4699_v13, %s3975_s29  ;;  %1651 = vrot.lane.b32.xlu1 %v4707_v17, %s3972_s26 }
 0xa67   :  { %1577 = vrot.lane.b32.xlu0 %v4707_v17, %s3974_s28 }
 0xa6e   :  { %1540 = vrot.lane.b32.xlu2 %v4699_v13, %s3968_s13  ;;  %1653 = vrot.lane.b32.xlu1 %v4699_v13, %s3972_s26 }
 0xa6f   :  { %1573 = vrot.lane.b32.xlu0 %v4707_v17, %s3976_s30 }
 0xa76   :  { %1538 = vrot.lane.b32.xlu1 %v4707_v17, %s3968_s13 }
 0xa77   :  { %1575 = vrot.lane.b32.xlu0 %v4699_v13, %s3976_s30 }
 0xab0   :  { %v1658_v20 = vpop.permute.xlu2 %1657 }
 0xab1   :  { %v1669_v21 = vsel %vm276_vm3, %v1658_v20, 0 }
 0xab2   :  { %1677 = vmatpush.bf16.xpose.msra.mxu3 %v1669_v21 }
 0xab8   :  { %v1613_v27 = vpop.permute.xlu2 %1612 }
 0xac0   :  { %v1615_v3 = vpop.permute.xlu2 %1614 }
 0xac8   :  { %v1580_v58 = vpop.permute.xlu1 %1579  ;;  %v1541_v60 = vpop.permute.xlu2 %1540 }
 0xac9   :  { %v1591_v30 = vsel %vm276_vm3, %v1580_v58, 0  ;;  %v1619_v48 = vpop.permute.xlu0 %1618  ;;  %v1552_v55 = vsel %vm276_vm3, %v1541_v60, 0 }
 0xaca   :  { %v1630_v31 = vsel %vm276_vm3, %v1619_v48, 0  ;;  %1560 = vmatpush.bf16.xpose.msrb.mxu0 %v1552_v55  ;;  %1599 = vmatpush.bf16.xpose.msrb.mxu1 %v1591_v30 }
 0xacb   :  { %1638 = vmatpush.bf16.xpose.msrb.mxu2 %v1630_v31 }
 0xad0   :  { %v1656_v24 = vpop.permute.xlu1 %1655 }
 0xad1   :  { %v1666_v36 = vsel %vm276_vm3, %v1656_v24, 0  ;;  %v1617_v37 = vpop.permute.xlu0 %1616 }
 0xad2   :  { %v1627_v52 = vsel %vm276_vm3, %v1617_v37, 0  ;;  %1678 = vmatpush.bf16.xpose.msra.mxu3 %v1666_v36 }
 0xad3   :  { %1639 = vmatpush.bf16.xpose.msrb.mxu2 %v1627_v52 }
 0xad8   :  { %v1652_v49 = vpop.permute.xlu1 %1651 }
 0xad9   :  { %v1578_v50 = vpop.permute.xlu0 %1577  ;;  %3314 = vmatmul.msk.bf16.vlgmr.msra.gmra.mxu3 %vm276_vm3, %v1652_v49 }
 0xada   :  { %v1588_v54 = vsel %vm276_vm3, %v1578_v50, 0  ;;  %3312 = vmatmul.msk.bf16.vlgmr.msrb.gmra.mxu2 %vm276_vm3, %v1613_v27 }
 0xadb   :  { %1898 = vmatpush.bf16.msra.mxu2 %v4742_v41  ;;  %1600 = vmatpush.bf16.xpose.msrb.mxu1 %v1588_v54 }
 0xadf   :  { %1899 = vmatpush.bf16.msra.mxu2 %v4746_v46 }
 0xae0   :  { %v1654_v26 = vpop.permute.xlu1 %1653 }
 0xae1   :  { %v1574_v57 = vpop.permute.xlu0 %1573 }
 0xae2   :  { %3310 = vmatmul.msk.bf16.vlgmr.msrb.gmra.mxu1 %vm276_vm3, %v1574_v57 }
 0xae3   :  { %1855 = vmatpush.bf16.msra.mxu1 %v3847_v62 }
 0xae7   :  { %1856 = vmatpush.bf16.msra.mxu1 %v3848_v12 }
 0xae8   :  { %v1539_v59 = vpop.permute.xlu1 %1538 }
 0xae9   :  { %v1549_v42 = vsel %vm276_vm3, %v1539_v59, 0  ;;  %3315 = vmatmul.msk.bf16.gmra.mxu3 %vm276_vm3, %v1654_v26  ;;  %v1576_v14 = vpop.permute.xlu0 %1575  ;;  %v3857_v26 = vld [vmem:[%s5281_s2 + $0x30] sm:$0xff] }
 0xaea   :  { %3313 = vmatmul.msk.bf16.gmra.mxu2 %vm276_vm3, %v1615_v3  ;;  %1561 = vmatpush.bf16.xpose.msrb.mxu0 %v1549_v42  ;;  %v3855_v3 = vld [vmem:[%s5281_s2 + $0x20] sm:$0xff] }
 0xaeb   :  { %1857 = vmatpush.bf16.msra.mxu1 %v3849_v34 }
 0xaef   :  { %1858 = vmatpush.bf16.msra.mxu1 %v3850_v61 }
 0xaf1   :  { %3308 = vmatmul.msk.bf16.vlgmr.msrb.gmra.mxu0 %vm276_vm3, %v4707_v17 }
 0xaf2   :  { %1829 = vmatpush.bf16.msra.mxu0 %v4099_v19  ;;  %3311 = vmatmul.msk.bf16.gmra.mxu1 %vm276_vm3, %v1576_v14  ;;  %v3853_v19 = vld [vmem:[%s5288_s9 + $0x8] sm:$0xff] }
 0xaf3   :  { %1859 = vmatpush.bf16.msra.mxu1 %v3851_v32 }
 0xaf7   :  { %1860 = vmatpush.bf16.msra.mxu1 %v3852_v35 }
 0xafb   :  { %1861 = vmatpush.bf16.msra.mxu1 %v3853_v19 }
 0xaff   :  { %1862 = vmatpush.bf16.msra.mxu1 %v3854_v39 }
 0xb01   :  { %3309 = vmatmul.msk.bf16.gmra.mxu0 %vm276_vm3, %v4699_v13 }
 0xb5c   :  { %v1680_v0 = vpop.f32.mrf.mxu3 }
 0xb5d   :  { %v1641_v1 = vpop.f32.mrf.mxu2  ;;  %1726 = vrot.lane.b32.xlu2 %v1680_v0, %s3975_s29  ;;  %v3858_v0 = vld [vmem:[%s5281_s2 + $0x38] sm:$0xff] }
 0xb5e   :  { %1710 = vrot.lane.b32.xlu1 %v1641_v1, %s3968_s13 }
 0xb5f   :  { %v1602_v2 = vpop.f32.mrf.mxu1 }
 0xb60   :  { %1694 = vrot.lane.b32.xlu0 %v1602_v2, %s3973_s27 }
 0xb64   :  { %v1682_v4 = vpop.f32.mrf.mxu3 }
 0xb65   :  { %v1643_v7 = vpop.f32.mrf.mxu2 }
 0xb66   :  { %1728 = vrot.lane.b32.xlu1 %v1682_v4, %s3975_s29 }
 0xb67   :  { %v1604_v29 = vpop.f32.mrf.mxu1 }
 0xb68   :  { %1712 = vrot.lane.b32.xlu0 %v1643_v7, %s3968_s13  ;;  %1696 = vrot.lane.b32.xlu2 %v1604_v29, %s3973_s27 }
 0xb6c   :  { %v1685_v47 = vpop.f32.mrf.mxu3 }
 0xb6d   :  { %v1646_v8 = vpop.f32.mrf.mxu2 }
 0xb6e   :  { %1714 = vrot.lane.b32.xlu1 %v1646_v8, %s3968_s13  ;;  %v1563_v13 = vpop.f32.mrf.mxu0 }
 0xb6f   :  { %v1607_v53 = vpop.f32.mrf.mxu1 }
 0xb70   :  { %1730 = vrot.lane.b32.xlu2 %v1685_v47, %s3975_s29  ;;  %1698 = vrot.lane.b32.xlu0 %v1607_v53, %s3973_s27 }
 0xb74   :  { %v1687_v9 = vpop.f32.mrf.mxu3 }
 0xb75   :  { %v1648_v10 = vpop.f32.mrf.mxu2 }
 0xb76   :  { %1732 = vrot.lane.b32.xlu1 %v1687_v9, %s3975_s29  ;;  %v1565_v22 = vpop.f32.mrf.mxu0 }
 0xb77   :  { %v1609_v11 = vpop.f32.mrf.mxu1 }
 0xb78   :  { %1716 = vrot.lane.b32.xlu0 %v1648_v10, %s3968_s13  ;;  %1700 = vrot.lane.b32.xlu2 %v1609_v11, %s3973_s27 }
 0xb7e   :  { %v1568_v36 = vpop.f32.mrf.mxu0 }
 0xb86   :  { %v1570_v61 = vpop.f32.mrf.mxu0 }
 0xbb7   :  { %v1727_v15 = vpop.permute.xlu2 %1726 }
 0xbc2   :  { %v1697_v18 = vpop.permute.xlu2 %1696 }
 0xbc3   :  { %v1739_v55 = vsel %vm473_vm4, %v1565_v22, %v1697_v18 }
 0xbca   :  { %v1731_v33 = vpop.permute.xlu2 %1730 }
 0xbd0   :  { %v1711_v16 = vpop.permute.xlu1 %1710 }
 0xbd2   :  { %v1695_v17 = vpop.permute.xlu0 %1694  ;;  %v1701_v57 = vpop.permute.xlu2 %1700 }
 0xbd3   :  { %v1738_v20 = vsel %vm473_vm4, %v1563_v13, %v1695_v17  ;;  %v1741_v32 = vsel %vm473_vm4, %v1570_v61, %v1701_v57 }
 0xbd4   :  { %v1742_v21 = vsel %vm223_vm2, %v1738_v20, %v1711_v16 }
 0xbd5   :  { %v1746_v27 = vsel %vm482_vm5, %v1742_v21, %v1727_v15 }
 0xbd6   :  { %v4804_v56 = vadd.f32 %v3855_v3, %v1746_v27 }
 0xbd8   :  { %v1729_v58 = vpop.permute.xlu1 %1728  ;;  %v1778_v60 = vsel %vm516_vm8, %v4804_v56, -inf  ;;  %v1766_v30 = vsel %vm503_vm6, %v4804_v56, -inf  ;;  %v1754_v48 = vsel %vm473_vm4, %v4804_v56, -inf  ;;  %v1790_v43 = vsel %vm529_vm7, %v4804_v56, -inf }
 0xbd9   :  { %1779 = vmax.xlane.f32.xlu2 %v1778_v60  ;;  %1767 = vmax.xlane.f32.xlu1 %v1766_v30 }
 0xbda   :  { %1755 = vmax.xlane.f32.xlu0 %v1754_v48  ;;  %v1713_v31 = vpop.permute.xlu0 %1712 }
 0xbdb   :  { %v1743_v23 = vsel %vm223_vm2, %v1739_v55, %v1713_v31 }
 0xbdc   :  { %v1747_v44 = vsel %vm482_vm5, %v1743_v23, %v1729_v58 }
 0xbdd   :  { %v4818_v24 = vadd.f32 %v3856_v45, %v1747_v44 }
 0xbdf   :  { %v1781_v37 = vsel %vm516_vm8, %v4818_v24, -inf  ;;  %v1757_v38 = vsel %vm473_vm4, %v4818_v24, -inf  ;;  %v1793_v34 = vsel %vm529_vm7, %v4818_v24, -inf  ;;  %v1769_v42 = vsel %vm503_vm6, %v4818_v24, -inf }
 0xbe0   :  { %v1715_v52 = vpop.permute.xlu1 %1714 }
 0xbe1   :  { %1782 = vmax.xlane.f32.xlu1 %v1781_v37  ;;  %1758 = vmax.xlane.f32.xlu2 %v1757_v38 }
 0xbe2   :  { %1791 = vmax.xlane.f32.xlu0 %v1790_v43  ;;  %v1699_v49 = vpop.permute.xlu0 %1698 }
 0xbe3   :  { %v1740_v50 = vsel %vm473_vm4, %v1568_v36, %v1699_v49 }
 0xbe4   :  { %v1744_v54 = vsel %vm223_vm2, %v1740_v50, %v1715_v52 }
 0xbe5   :  { %v1748_v62 = vsel %vm482_vm5, %v1744_v54, %v1731_v33 }
 0xbe6   :  { %v4832_v12 = vadd.f32 %v3857_v26, %v1748_v62 }
 0xbe8   :  { %v1760_v59 = vsel %vm473_vm4, %v4832_v12, -inf  ;;  %v1733_v14 = vpop.permute.xlu1 %1732  ;;  %v1772_v4 = vsel %vm503_vm6, %v4832_v12, -inf  ;;  %v1784_v7 = vsel %vm516_vm8, %v4832_v12, -inf  ;;  %v1796_v47 = vsel %vm529_vm7, %v4832_v12, -inf }
 0xbe9   :  { %1794 = vmax.xlane.f32.xlu2 %v1793_v34  ;;  %1761 = vmax.xlane.f32.xlu1 %v1760_v59 }
 0xbea   :  { %1770 = vmax.xlane.f32.xlu0 %v1769_v42  ;;  %v1717_v35 = vpop.permute.xlu0 %1716 }
 0xbeb   :  { %v1745_v19 = vsel %vm223_vm2, %v1741_v32, %v1717_v35 }
 0xbec   :  { %v1749_v39 = vsel %vm482_vm5, %v1745_v19, %v1733_v14 }
 0xbed   :  { %v4846_v1 = vadd.f32 %v3858_v0, %v1749_v39 }
 0xbef   :  { %v1775_v2 = vsel %vm503_vm6, %v4846_v1, -inf  ;;  %v1787_v29 = vsel %vm516_vm8, %v4846_v1, -inf  ;;  %v1763_v8 = vsel %vm473_vm4, %v4846_v1, -inf  ;;  %v1799_v53 = vsel %vm529_vm7, %v4846_v1, -inf }
 0xbf0   :  { %vm5294_vm6 = vcmask 31744   ;;  %vm5296_vm8 = vcmask 392192  }
 0xbf1   :  { %1773 = vmax.xlane.f32.xlu2 %v1772_v4  ;;  %1776 = vmax.xlane.f32.xlu1 %v1775_v2  ;;  %vm5295_vm7 = vmmov %vm5294_vm6 }
 0xbf2   :  { %1785 = vmax.xlane.f32.xlu0 %v1784_v7 }
 0xbf9   :  { %1788 = vmax.xlane.f32.xlu2 %v1787_v29  ;;  %1797 = vmax.xlane.f32.xlu1 %v1796_v47 }
 0xbfa   :  { %1764 = vmax.xlane.f32.xlu0 %v1763_v8 }
 0xc02   :  { %1800 = vmax.xlane.f32.xlu0 %v1799_v53 }
 0xc11   :  { %1921 = vrot.lane.b32.xlu2 %v4742_v41, %s3976_s30 }
 0xc12   :  { %1919 = vrot.lane.b32.xlu1 %v4746_v46, %s3976_s30 }
 0xc16   :  { %1991 = vrot.lane.b32.xlu0 %v4742_v41, %s3972_s26 }
 0xc19   :  { %1956 = vrot.lane.b32.xlu2 %v4742_v41, %s3975_s29 }
 0xc1a   :  { %1954 = vrot.lane.b32.xlu1 %v4746_v46, %s3975_s29 }
 0xc21   :  { %1989 = vrot.lane.b32.xlu2 %v4746_v46, %s3972_s26 }
 0xc4c   :  { %v1780_v9 = vpop.xlane.xlu2 %1779  ;;  %v1768_v10 = vpop.xlane.xlu1 %1767 }
 0xc4d   :  { %v1756_v11 = vpop.xlane.xlu0 %1755 }
 0xc4e   :  { %v1802_v17 = vsel %vm542_vm9, %v1756_v11, %v1768_v10 }
 0xc4f   :  { %v1806_v41 = vsel %vm547_vm10, %v1802_v17, %v1780_v9 }
 0xc54   :  { %v1759_v13 = vpop.xlane.xlu2 %1758  ;;  %v1783_v15 = vpop.xlane.xlu1 %1782 }
 0xc55   :  { %v1792_v16 = vpop.xlane.xlu0 %1791 }
 0xc56   :  { %v1810_v3 = vsel %vm552_vm11, %v1806_v41, %v1792_v16 }
 0xc5c   :  { %v1795_v18 = vpop.xlane.xlu2 %1794  ;;  %v1762_v22 = vpop.xlane.xlu1 %1761 }
 0xc5d   :  { %v1771_v20 = vpop.xlane.xlu0 %1770 }
 0xc5e   :  { %v1803_v21 = vsel %vm542_vm9, %v1759_v13, %v1771_v20 }
 0xc5f   :  { %v1807_v27 = vsel %vm547_vm10, %v1803_v21, %v1783_v15 }
 0xc60   :  { %v1811_v46 = vsel %vm552_vm11, %v1807_v27, %v1795_v18 }
 0xc61   :  { %v1814_v58 = vpack.c.bf16 %v1811_v46, %v1810_v3 }
 0xc63   :  { %3316 = vmatmul.msk.bf16.vlgmr.msra.gmra.mxu0 %vm5294_vm6, %v1814_v58 }
 0xc64   :  { %v1774_v60 = vpop.xlane.xlu2 %1773  ;;  %v1777_v48 = vpop.xlane.xlu1 %1776 }
 0xc65   :  { %v1786_v30 = vpop.xlane.xlu0 %1785  ;;  %v1804_v23 = vsel %vm542_vm9, %v1762_v22, %v1774_v60 }
 0xc66   :  { %v1808_v36 = vsel %vm547_vm10, %v1804_v23, %v1786_v30 }
 0xc6c   :  { %v1789_v55 = vpop.xlane.xlu2 %1788  ;;  %v1798_v33 = vpop.xlane.xlu1 %1797 }
 0xc6d   :  { %v1765_v31 = vpop.xlane.xlu0 %1764  ;;  %v1812_v52 = vsel %vm552_vm11, %v1808_v36, %v1798_v33 }
 0xc6e   :  { %v1805_v44 = vsel %vm542_vm9, %v1765_v31, %v1777_v48  ;;  %vm5297_vm9 = vmmov %vm5296_vm8 }
 0xc6f   :  { %v1809_v37 = vsel %vm547_vm10, %v1805_v44, %v1789_v55  ;;  %vm5298_vm10 = vmmov %vm5296_vm8 }
 0xc74   :  { %v1922_v45 = vpop.permute.xlu2 %1921 }
 0xc75   :  { %v1801_v38 = vpop.xlane.xlu0 %1800  ;;  %1937 = vmatpush.bf16.msrb.mxu3 %v1922_v45 }
 0xc76   :  { %v1813_v43 = vsel %vm552_vm11, %v1809_v37, %v1801_v38  ;;  %vm5299_vm11 = vmmov %vm5296_vm8 }
 0xc77   :  { %v1815_v49 = vpack.c.bf16 %v1813_v43, %v1812_v52 }
 0xc79   :  { %3317 = vmatmul.msk.bf16.gmra.mxu0 %vm5295_vm7, %v1815_v49 }
 0xc7c   :  { %v1957_v50 = vpop.permute.xlu2 %1956 }
 0xc7d   :  { %1972 = vmatpush.bf16.msrb.mxu0 %v1957_v50 }
 0xc84   :  { %v1920_v54 = vpop.permute.xlu1 %1919  ;;  %v1990_v26 = vpop.permute.xlu2 %1989 }
 0xc85   :  { %1938 = vmatpush.bf16.msrb.mxu3 %v1920_v54 }
 0xc88   :  { %v1992_v62 = vpop.permute.xlu0 %1991 }
 0xc89   :  { %2007 = vmatpush.bf16.msrb.mxu1 %v1992_v62 }
 0xc8c   :  { %v1955_v57 = vpop.permute.xlu1 %1954 }
 0xc8d   :  { %2008 = vmatpush.bf16.msrb.mxu1 %v1990_v26  ;;  %1973 = vmatpush.bf16.msrb.mxu0 %v1955_v57  ;;  %v3598_v57 = vld [vmem:[%s5285_s6 + $0x38] sm:$0xff] }
 0xc8e   :  { %2126 = vmatpush.bf16.msrb.mxu2 %v3598_v57 }
 0xce0   :  { %v1831_v34 = vpop.f32.mrf.mxu0 }
 0xce1   :  { %v1841_v59 = vsub.f32 %v4804_v56, %v1831_v34  ;;  %v3597_v34 = vld [vmem:[%s5285_s6 + $0x30] sm:$0xff] }
 0xce2   :  { %2127 = vmatpush.bf16.msrb.mxu2 %v3597_v34 }
 0xce3   :  { %v1845_v61 = vmul.f32 1.442695, %v1841_v59  ;;  %v3596_v59 = vld [vmem:[%s5285_s6 + $0x28] sm:$0xff] }
 0xce5   :  { %3797 = vpow2.f32 %v1845_v61  ;;  %v3595_v61 = vld [vmem:[%s5285_s6 + $0x20] sm:$0xff] }
 0xce6   :  { %2128 = vmatpush.bf16.msrb.mxu2 %v3596_v59 }
 0xce8   :  { %v1833_v42 = vpop.f32.mrf.mxu0 }
 0xce9   :  { %v1842_v32 = vsub.f32 %v4818_v24, %v1833_v42 }
 0xcea   :  { %2129 = vmatpush.bf16.msrb.mxu2 %v3595_v61 }
 0xceb   :  { %v1847_v35 = vmul.f32 1.442695, %v1842_v32  ;;  %v3798_v14 = vpop.eup %3797 }
 0xced   :  { %3799 = vpow2.f32 %v1847_v35 }
 0xcf3   :  { %v3800_v19 = vpop.eup %3799 }
 0xcf4   :  { %v1853_v39 = vpack.c.bf16 %v3800_v19, %v3798_v14 }
 0xcf6   :  { %v1836_v0 = vpop.f32.mrf.mxu0  ;;  %1863 = vmatmul.bf16.vlgmr.msra.gmra.mxu1 %v1853_v39 }
 0xcf7   :  { %v1843_v2 = vsub.f32 %v4832_v12, %v1836_v0 }
 0xcf9   :  { %v1849_v4 = vmul.f32 1.442695, %v1843_v2 }
 0xcfb   :  { %3801 = vpow2.f32 %v1849_v4 }
 0xcfe   :  { %v1838_v7 = vpop.f32.mrf.mxu0 }
 0xcff   :  { %v1844_v29 = vsub.f32 %v4846_v1, %v1838_v7 }
 0xd01   :  { %v1851_v47 = vmul.f32 1.442695, %v1844_v29  ;;  %v3802_v56 = vpop.eup %3801 }
 0xd03   :  { %3803 = vpow2.f32 %v1851_v47 }
 0xd09   :  { %v3804_v8 = vpop.eup %3803 }
 0xd0a   :  { %v1854_v24 = vpack.c.bf16 %v3804_v8, %v3802_v56 }
 0xd0c   :  { %1868 = vmatmul.bf16.gmra.mxu1 %v1854_v24 }
 0xd73   :  { %v1864_v53 = vpop.f32.mrf.mxu1 }
 0xd74   :  { %3805 = vrcp.f32 %v1864_v53 }
 0xd7a   :  { %v3806_v10 = vpop.eup %3805 }
 0xd7b   :  { %v1866_v9 = vpop.f32.mrf.mxu1  ;;  %v1878_v13 = vmul.f32 %v3806_v10, %v3798_v14 }
 0xd7c   :  { %3807 = vrcp.f32 %v1866_v9 }
 0xd82   :  { %v3808_v11 = vpop.eup %3807 }
 0xd83   :  { %v1879_v15 = vmul.f32 %v3808_v11, %v3800_v19 }
 0xd85   :  { %v1882_v12 = vpack.c.bf16 %v1879_v15, %v1878_v13 }
 0xd87   :  { %1985 = vrot.lane.b32.xlu1 %v1882_v12, %s3973_s27  ;;  %1913 = vrot.lane.b32.xlu0 %v1882_v12, %s3975_s29 }
 0xd88   :  { %3318 = vmatmul.msk.bf16.vlgmr.msra.gmra.mxu2 %vm473_vm4, %v1882_v12 }
 0xd89   :  { %v1869_v1 = vpop.f32.mrf.mxu1 }
 0xd8a   :  { %3809 = vrcp.f32 %v1869_v1 }
 0xd8f   :  { %1950 = vrot.lane.b32.xlu0 %v1882_v12, %s3968_s13 }
 0xd90   :  { %v3810_v17 = vpop.eup %3809 }
 0xd91   :  { %v1871_v16 = vpop.f32.mrf.mxu1  ;;  %v1880_v20 = vmul.f32 %v3810_v17, %v3802_v56 }
 0xd92   :  { %3811 = vrcp.f32 %v1871_v16 }
 0xd98   :  { %v3812_v18 = vpop.eup %3811 }
 0xd99   :  { %v1881_v21 = vmul.f32 %v3812_v18, %v3804_v8 }
 0xd9b   :  { %v1883_v41 = vpack.c.bf16 %v1881_v21, %v1880_v20 }
 0xd9d   :  { %1987 = vrot.lane.b32.xlu1 %v1883_v41, %s3973_s27  ;;  %1952 = vrot.lane.b32.xlu0 %v1883_v41, %s3968_s13 }
 0xd9e   :  { %1915 = vrot.lane.b32.xlu2 %v1883_v41, %s3975_s29  ;;  %3319 = vmatmul.msk.bf16.gmra.mxu2 %vm473_vm4, %v1883_v41 }
 0xdf8   :  { %v1916_v46 = vpop.permute.xlu2 %1915 }
 0xdf9   :  { %v1986_v22 = vpop.permute.xlu1 %1985  ;;  %v1914_v27 = vpop.permute.xlu0 %1913 }
 0xdfa   :  { %3320 = vmatmul.msk.bf16.vlgmr.msrb.gmra.mxu3 %vm473_vm4, %v1914_v27  ;;  %3324 = vmatmul.msk.bf16.vlgmr.msrb.gmra.mxu1 %vm473_vm4, %v1986_v22 }
 0xe01   :  { %v1951_v3 = vpop.permute.xlu0 %1950 }
 0xe02   :  { %3322 = vmatmul.msk.bf16.vlgmr.msrb.gmra.mxu0 %vm473_vm4, %v1951_v3 }
 0xe0a   :  { %3321 = vmatmul.msk.bf16.gmra.mxu3 %vm473_vm4, %v1916_v46 }
 0xe0b   :  { %v1901_v42 = vpop.f32.mrf.mxu2 }
 0xe0f   :  { %v1988_v58 = vpop.permute.xlu1 %1987  ;;  %v1953_v60 = vpop.permute.xlu0 %1952 }
 0xe10   :  { %3325 = vmatmul.msk.bf16.gmra.mxu1 %vm473_vm4, %v1988_v58 }
 0xe12   :  { %3323 = vmatmul.msk.bf16.gmra.mxu0 %vm473_vm4, %v1953_v60 }
 0xe13   :  { %v1903_v19 = vpop.f32.mrf.mxu2 }
 0xe21   :  { %v1906_v11 = vpop.f32.mrf.mxu2 }
 0xe29   :  { %v1908_v17 = vpop.f32.mrf.mxu2 }
 0xe77   :  { %v2010_v30 = vpop.f32.mrf.mxu1 }
 0xe7d   :  { %v1940_v48 = vpop.f32.mrf.mxu3 }
 0xe7f   :  { %v1975_v55 = vpop.f32.mrf.mxu0  ;;  %v2012_v31 = vpop.f32.mrf.mxu1 }
 0xe80   :  { %v3693_v23 = vpack.i.bf16 %v2012_v31, %v2010_v30 }
 0xe82   :  { %3694 = vrot.lane.b32.xlu1 %v3693_v23, %s3974_s28 }
 0xe85   :  { %v1942_v44 = vpop.f32.mrf.mxu3 }
 0xe86   :  { %v3683_v33 = vpack.i.bf16 %v1942_v44, %v1940_v48  ;;  %v2091_v48 = vperm.slane %v4696_v51, 2 }
 0xe87   :  { %v1977_v45 = vpop.f32.mrf.mxu0 }
 0xe88   :  { %v3688_v36 = vpack.i.bf16 %v1977_v45, %v1975_v55  ;;  %3684 = vrot.lane.b32.xlu2 %v3683_v33, %s3971_s25 }
 0xe8a   :  { %3689 = vrot.lane.b32.xlu0 %v3688_v36, %s3973_s27 }
 0xe8d   :  { %v1945_v37 = vpop.f32.mrf.mxu3  ;;  %v2015_v38 = vpop.f32.mrf.mxu1 }
 0xe8f   :  { %v1980_v52 = vpop.f32.mrf.mxu0 }
 0xe95   :  { %v1947_v43 = vpop.f32.mrf.mxu3  ;;  %v2017_v49 = vpop.f32.mrf.mxu1 }
 0xe96   :  { %v3698_v50 = vpack.i.bf16 %v1947_v43, %v1945_v37  ;;  %v3708_v54 = vpack.i.bf16 %v2017_v49, %v2015_v38 }
 0xe97   :  { %v1982_v62 = vpop.f32.mrf.mxu0 }
 0xe98   :  { %v3703_v26 = vpack.i.bf16 %v1982_v62, %v1980_v52  ;;  %3709 = vrot.lane.b32.xlu1 %v3708_v54, %s3974_s28  ;;  %3699 = vrot.lane.b32.xlu2 %v3698_v50, %s3971_s25 }
 0xe9a   :  { %3704 = vrot.lane.b32.xlu0 %v3703_v26, %s3973_s27 }
 0xee2   :  { %v3685_v32 = vpop.permute.xlu2 %3684 }
 0xee3   :  { %v3687_v35 = vunpack.i.h.bf16 %v3685_v32  ;;  %v3686_v14 = vunpack.i.l.bf16 %v3685_v32 }
 0xee5   :  { %v2069_v7 = vsel %vm276_vm3, %v1903_v19, %v3687_v35  ;;  %v2068_v29 = vsel %vm276_vm3, %v1901_v42, %v3686_v14 }
 0xef2   :  { %v3700_v13 = vpop.permute.xlu2 %3699 }
 0xef3   :  { %v3702_v15 = vunpack.i.h.bf16 %v3700_v13  ;;  %v3701_v12 = vunpack.i.l.bf16 %v3700_v13  ;;  %v3604_v13 = vld [vmem:[%s5286_s7 + $0x64] sm:$0xf0] }
 0xef4   :  { %v3695_v39 = vpop.permute.xlu1 %3694 }
 0xef5   :  { %v3697_v47 = vunpack.i.h.bf16 %v3695_v39  ;;  %v3696_v56 = vunpack.i.l.bf16 %v3695_v39  ;;  %v2071_v21 = vsel %vm276_vm3, %v1908_v17, %v3702_v15  ;;  %v2070_v41 = vsel %vm276_vm3, %v1906_v11, %v3701_v12  ;;  %v3378_v11 = vld [vmem:[%s5286_s7 + $0x60] sm:$0xf]  ;;  %v3603_v15 = vld [vmem:[%s5286_s7 + $0x64] sm:$0xf]  ;;  %v3370_v17 = vld [vmem:[%s5286_s7 + $0x50] sm:$0xf] }
 0xef6   :  { %v3379_v12 = vor.u32 %v3604_v13, %v3378_v11 }
 0xefc   :  { %v3690_v0 = vpop.permute.xlu0 %3689 }
 0xefd   :  { %v3692_v2 = vunpack.i.h.bf16 %v3690_v0  ;;  %v3691_v4 = vunpack.i.l.bf16 %v3690_v0 }
 0xeff   :  { %v2073_v8 = vsel %vm473_vm4, %v2069_v7, %v3692_v2  ;;  %v2072_v24 = vsel %vm473_vm4, %v2068_v29, %v3691_v4 }
 0xf00   :  { %v2077_v53 = vsel %vm5296_vm8, %v2073_v8, %v3697_v47  ;;  %v2076_v9 = vsel %vm5297_vm9, %v2072_v24, %v3696_v56  ;;  %v4972_v47 = vperm.slane %v4735_v28, 2  ;;  %v3386_v56 = vld [vmem:[%s5286_s7 + $0x70] sm:$0xf]  ;;  %v3606_v8 = vld [vmem:[%s5286_s7 + $0x74] sm:$0xf0] }
 0xf01   :  { %v2080_v10 = vpack.c.bf16 %v2077_v53, %v2076_v9  ;;  %v3605_v24 = vld [vmem:[%s5286_s7 + $0x74] sm:$0xf]  ;;  %v3387_v53 = vor.u32 %v3606_v8, %v3386_v56  ;;  %v3388_v9 = vld [vmem:[%s5286_s7 + $0x78] sm:$0xf0]  ;;  %v3620_v56 = vld [vmem:[%s5287_s8 + $0xe8] sm:$0xff] }
 0xf02   :  { %v3612_v8 = vld [vmem:[%s5287_s8 + $0xa8] sm:$0xff] }
 0xf03   :  { %3350 = vmatmul.msk.bf16.vlgmr.msrb.gmra.mxu2 %vm223_vm2, %v2080_v10  ;;  %v3391_v10 = vor.u32 %v3605_v24, %v3388_v9  ;;  %2309 = vmatpush.bf16.msra.mxu3 %v3387_v53 }
 0xf05   :  { %2328 = vmatpush.bf16.msra.mxu0 %v3391_v10 }
 0xf07   :  { %2310 = vmatpush.bf16.msra.mxu3 %v3379_v12 }
 0xf0a   :  { %v3710_v1 = vpop.permute.xlu1 %3709 }
 0xf0b   :  { %v3712_v22 = vunpack.i.h.bf16 %v3710_v1  ;;  %v3711_v27 = vunpack.i.l.bf16 %v3710_v1  ;;  %v3380_v1 = vld [vmem:[%s5286_s7 + $0x68] sm:$0xf0] }
 0xf0c   :  { %v3705_v16 = vpop.permute.xlu0 %3704 }
 0xf0d   :  { %v3707_v18 = vunpack.i.h.bf16 %v3705_v16  ;;  %v3706_v20 = vunpack.i.l.bf16 %v3705_v16  ;;  %v3383_v16 = vor.u32 %v3603_v15, %v3380_v1  ;;  %v3619_v15 = vld [vmem:[%s5287_s8 + $0xe0] sm:$0xff] }
 0xf0f   :  { %v2075_v3 = vsel %vm473_vm4, %v2071_v21, %v3707_v18  ;;  %v2074_v46 = vsel %vm473_vm4, %v2070_v41, %v3706_v20  ;;  %2329 = vmatpush.bf16.msra.mxu0 %v3383_v16  ;;  %v3602_v18 = vld [vmem:[%s5286_s7 + $0x54] sm:$0xf0]  ;;  %v3601_v20 = vld [vmem:[%s5286_s7 + $0x54] sm:$0xf]  ;;  %v3372_v41 = vld [vmem:[%s5286_s7 + $0x58] sm:$0xf0] }
 0xf10   :  { %v2078_v58 = vsel %vm5298_vm10, %v2074_v46, %v3711_v27  ;;  %v2079_v60 = vsel %vm5299_vm11, %v2075_v3, %v3712_v22  ;;  %v3371_v21 = vor.u32 %v3602_v18, %v3370_v17  ;;  %v3375_v27 = vor.u32 %v3601_v20, %v3372_v41  ;;  %v3362_v46 = vld [vmem:[%s5286_s7 + $0x40] sm:$0xf] }
 0xf11   :  { %v2081_v30 = vpack.c.bf16 %v2079_v60, %v2078_v58  ;;  %v3600_v58 = vld [vmem:[%s5286_s7 + $0x44] sm:$0xf0]  ;;  %v3599_v60 = vld [vmem:[%s5286_s7 + $0x44] sm:$0xf] }
 0xf12   :  { %2311 = vmatpush.bf16.msra.mxu3 %v3371_v21 }
 0xf13   :  { %3351 = vmatmul.msk.bf16.gmra.mxu2 %vm223_vm2, %v2081_v30  ;;  %2330 = vmatpush.bf16.msra.mxu0 %v3375_v27 }
 0xf86   :  { %v2131_v55 = vpop.f32.mrf.mxu2 }
 0xf87   :  { %v2132_v31 = vadd.f32 %v2131_v55, %v2091_v48  ;;  %v3364_v55 = vld [vmem:[%s5286_s7 + $0x48] sm:$0xf0] }
 0xf89   :  { %v2141_v23 = vadd.f32 %v2132_v31, %v4673_v63  ;;  %v3367_v31 = vor.u32 %v3599_v60, %v3364_v55 }
 0xf8b   :  { %v2145_v44 = vsel %vm223_vm2, %v2141_v23, 0.0  ;;  %2331 = vmatpush.bf16.msra.mxu0 %v3367_v31 }
 0xf8c   :  { %2146 = vadd.xlane.f32.xlu2 %v2145_v44 }
 0xf8e   :  { %v2133_v33 = vpop.f32.mrf.mxu2 }
 0xf8f   :  { %v2134_v45 = vadd.f32 %v2133_v33, %v2091_v48 }
 0xf91   :  { %v2142_v36 = vadd.f32 %v2134_v45, %v4675_v25 }
 0xf93   :  { %v2148_v37 = vsel %vm223_vm2, %v2142_v36, 0.0 }
 0xf94   :  { %2149 = vadd.xlane.f32.xlu0 %v2148_v37 }
 0xf96   :  { %v2136_v38 = vpop.f32.mrf.mxu2 }
 0xf97   :  { %v2137_v52 = vadd.f32 %v2136_v38, %v2091_v48 }
 0xf99   :  { %v2143_v43 = vadd.f32 %v2137_v52, %v4687_v6 }
 0xf9b   :  { %v2151_v51 = vsel %vm223_vm2, %v2143_v43, 0.0 }
 0xf9c   :  { %2152 = vadd.xlane.f32.xlu1 %v2151_v51 }
 0xf9e   :  { %v2138_v49 = vpop.f32.mrf.mxu2 }
 0xf9f   :  { %v2139_v50 = vadd.f32 %v2138_v49, %v2091_v48 }
 0xfa1   :  { %v2144_v63 = vadd.f32 %v2139_v50, %v4685_v5 }
 0xfa3   :  { %v2154_v54 = vsel %vm223_vm2, %v2144_v63, 0.0 }
 0xfa4   :  { %2155 = vadd.xlane.f32.xlu2 %v2154_v54 }
 0xfff   :  { %v2147_v62 = vpop.xlane.xlu2 %2146 }
0x1000   :  { %v2157_v25 = vmul.f32 %v2147_v62, %v4415_v40 }
0x1002   :  { %v4948_v26 = vsub.f32 %v2141_v23, %v2157_v25  ;;  %v3622_v25 = vld [vmem:[%s5287_s8 + $0xf8] sm:$0xff] }
0x1003   :  { %2507 = vmatpush.bf16.msra.mxu2 %v3622_v25 }
0x1004   :  { %v2165_v57 = vmul.f32 %v4948_v26, %v4948_v26 }
0x1006   :  { %v2169_v6 = vsel %vm223_vm2, %v2165_v57, 0.0  ;;  %v3614_v57 = vld [vmem:[%s5287_s8 + $0xb8] sm:$0xff] }
0x1007   :  { %v2150_v34 = vpop.xlane.xlu0 %2149  ;;  %2170 = vadd.xlane.f32.xlu0 %v2169_v6  ;;  %2488 = vmatpush.bf16.msra.mxu1 %v3614_v57 }
0x1008   :  { %v2158_v59 = vmul.f32 %v2150_v34, %v4415_v40 }
0x100a   :  { %v4954_v61 = vsub.f32 %v2142_v36, %v2158_v59 }
0x100c   :  { %v2166_v5 = vmul.f32 %v4954_v61, %v4954_v61 }
0x100e   :  { %v2172_v42 = vsel %vm223_vm2, %v2166_v5, 0.0 }
0x100f   :  { %v2153_v32 = vpop.xlane.xlu1 %2152  ;;  %2173 = vadd.xlane.f32.xlu1 %v2172_v42  ;;  %v3621_v42 = vld [vmem:[%s5287_s8 + $0xf0] sm:$0xff] }
0x1010   :  { %v2159_v35 = vmul.f32 %v2153_v32, %v4415_v40  ;;  %v3613_v32 = vld [vmem:[%s5287_s8 + $0xb0] sm:$0xff]  ;;  %2508 = vmatpush.bf16.msra.mxu2 %v3621_v42 }
0x1011   :  { %2489 = vmatpush.bf16.msra.mxu1 %v3613_v32 }
0x1012   :  { %v4960_v14 = vsub.f32 %v2143_v43, %v2159_v35 }
0x1014   :  { %v2167_v19 = vmul.f32 %v4960_v14, %v4960_v14  ;;  %2509 = vmatpush.bf16.msra.mxu2 %v3620_v56 }
0x1015   :  { %2490 = vmatpush.bf16.msra.mxu1 %v3612_v8 }
0x1016   :  { %v2175_v39 = vsel %vm223_vm2, %v2167_v19, 0.0 }
0x1017   :  { %2176 = vadd.xlane.f32.xlu2 %v2175_v39  ;;  %v2156_v0 = vpop.xlane.xlu2 %2155 }
0x1018   :  { %v2160_v2 = vmul.f32 %v2156_v0, %v4415_v40  ;;  %2510 = vmatpush.bf16.msra.mxu2 %v3619_v15 }
0x101a   :  { %v4966_v4 = vsub.f32 %v2144_v63, %v2160_v2 }
0x101c   :  { %v2168_v7 = vmul.f32 %v4966_v4, %v4966_v4 }
0x101e   :  { %v2178_v29 = vsel %vm223_vm2, %v2168_v7, 0.0 }
0x101f   :  { %2179 = vadd.xlane.f32.xlu0 %v2178_v29 }
0x1028   :  { %2239 = vrot.lane.b32.xlu1 %v4972_v47, %s3968_s13 }
0x102f   :  { %2485 = vrot.lane.b32.xlu2 %v2091_v48, %s3968_s13  ;;  %v3363_v48 = vor.u32 %v3600_v58, %v3362_v46 }
0x1031   :  { %2312 = vmatpush.bf16.msra.mxu3 %v3363_v48 }
0x107a   :  { %v2171_v22 = vpop.xlane.xlu0 %2170 }
0x107b   :  { %v2181_v3 = vmul.f32 %v2171_v22, %v4415_v40 }
0x107d   :  { %v2185_v30 = vadd.f32 1e-05, %v2181_v3 }
0x107f   :  { %3813 = vrsqrt.f32 %v2185_v30  ;;  %vm2195_vm12 = vweird.f32 %v2185_v30 }
0x1082   :  { %v2174_v23 = vpop.xlane.xlu1 %2173 }
0x1083   :  { %v2182_v44 = vmul.f32 %v2174_v23, %v4415_v40 }
0x1085   :  { %v3814_v33 = vpop.eup %3813  ;;  %v2186_v45 = vadd.f32 1e-05, %v2182_v44  ;;  %v3610_v44 = vld [vmem:[%s5287_s8 + $0x98] sm:$0xff] }
0x1086   :  { %v2190_v36 = vmul.f32 %v3814_v33, %v2185_v30  ;;  %vm2196_vm1 = vweird.f32 %v3814_v33 }
0x1087   :  { %3815 = vrsqrt.f32 %v2186_v45  ;;  %vm5034_vm0 = vmor %vm2195_vm12, %vm2196_vm1  ;;  %vm2205_vm14 = vweird.f32 %v2186_v45 }
0x1088   :  { %v2191_v37 = vmul.f32 %v3814_v33, %v2190_v36  ;;  %v3615_v36 = vld [vmem:[%s5287_s8 + $0xc0] sm:$0xff] }
0x108a   :  { %v2192_v38 = vmul.f32 0.5, %v2191_v37  ;;  %v2177_v52 = vpop.xlane.xlu2 %2176  ;;  %v3608_v37 = vld [vmem:[%s5287_s8 + $0x88] sm:$0xff] }
0x108b   :  { %v2183_v43 = vmul.f32 %v2177_v52, %v4415_v40 }
0x108c   :  { %v2193_v51 = vsub.f32 1.5, %v2192_v38  ;;  %v3607_v38 = vld [vmem:[%s5287_s8 + $0x80] sm:$0xff] }
0x108d   :  { %v3816_v49 = vpop.eup %3815  ;;  %v2187_v50 = vadd.f32 1e-05, %v2183_v43  ;;  %v2258_v43 = vperm.slane %v4735_v28, 1 }
0x108e   :  { %v2200_v63 = vmul.f32 %v3816_v49, %v2186_v45  ;;  %v2194_v54 = vmul.f32 %v3814_v33, %v2193_v51  ;;  %vm2206_vm13 = vweird.f32 %v3816_v49  ;;  %v3609_v45 = vld [vmem:[%s5287_s8 + $0x90] sm:$0xff] }
0x108f   :  { %3817 = vrsqrt.f32 %v2187_v50  ;;  %vm2207_vm15 = vmor %vm2205_vm14, %vm2206_vm13  ;;  %vm2215_vm7 = vweird.f32 %v2187_v50 }
0x1090   :  { %v2201_v62 = vmul.f32 %v3816_v49, %v2200_v63  ;;  %v2198_v35 = vsel %vm5034_vm0, %v3814_v33, %v2194_v54  ;;  %v3616_v33 = vld [vmem:[%s5287_s8 + $0xc8] sm:$0xff]  ;;  %v5111_v63 = vld [vmem:[%s5283_s4 + $0x10] sm:$0xff] }
0x1091   :  { %v2229_v29 = vmul.f32 %v2198_v35, %v4948_v26  ;;  %v2257_v54 = vperm.slane %v5111_v63, 1 }
0x1092   :  { %v2202_v6 = vmul.f32 0.5, %v2201_v62  ;;  %v2180_v34 = vpop.xlane.xlu0 %2179 }
0x1093   :  { %v2184_v5 = vmul.f32 %v2180_v34, %v4415_v40  ;;  %v2234_v26 = vmul.f32 %v4972_v47, %v2229_v29 }
0x1094   :  { %v2203_v19 = vsub.f32 1.5, %v2202_v6 }
0x1095   :  { %v3818_v39 = vpop.eup %3817  ;;  %v2188_v0 = vadd.f32 1e-05, %v2184_v5 }
0x1096   :  { %v2204_v2 = vmul.f32 %v3816_v49, %v2203_v19  ;;  %v2210_v7 = vmul.f32 %v3818_v39, %v2187_v50  ;;  %vm2216_vm6 = vweird.f32 %v3818_v39 }
0x1097   :  { %3819 = vrsqrt.f32 %v2188_v0  ;;  %vm2217_vm8 = vmor %vm2215_vm7, %vm2216_vm6  ;;  %vm2225_vm10 = vweird.f32 %v2188_v0 }
0x1098   :  { %v2208_v24 = vsel %vm2207_vm15, %v3816_v49, %v2204_v2  ;;  %v2211_v53 = vmul.f32 %v3818_v39, %v2210_v7 }
0x1099   :  { %v2230_v9 = vmul.f32 %v2208_v24, %v4954_v61 }
0x109a   :  { %v2212_v10 = vmul.f32 0.5, %v2211_v53  ;;  %v2240_v11 = vpop.permute.xlu1 %2239 }
0x109b   :  { %v2235_v13 = vmul.f32 %v4972_v47, %v2230_v9  ;;  %v5060_v16 = vadd.f32 %v2240_v11, %v2234_v26 }
0x109c   :  { %v2213_v12 = vsub.f32 1.5, %v2212_v10 }
0x109d   :  { %v3820_v1 = vpop.eup %3819  ;;  %v5062_v17 = vadd.f32 %v2240_v11, %v2235_v13  ;;  %v2486_v13 = vpop.permute.xlu2 %2485 }
0x109e   :  { %v2214_v18 = vmul.f32 %v3818_v39, %v2213_v12  ;;  %v2220_v61 = vmul.f32 %v3820_v1, %v2188_v0  ;;  %vm2226_vm9 = vweird.f32 %v3820_v1 }
0x109f   :  { %v2246_v20 = vpack.c.bf16 %v5062_v17, %v5060_v16  ;;  %vm2227_vm11 = vmor %vm2225_vm10, %vm2226_vm9 }
0x10a0   :  { %v2221_v21 = vmul.f32 %v3820_v1, %v2220_v61  ;;  %v2218_v41 = vsel %vm2217_vm8, %v3818_v39, %v2214_v18 }
0x10a1   :  { %3392 = vmatmul.msk.bf16.vlgmr.msra.gmra.mxu3 %vm223_vm2, %v2246_v20  ;;  %3394 = vmatmul.msk.bf16.vlgmr.msra.gmra.mxu0 %vm223_vm2, %v2246_v20  ;;  %v2231_v3 = vmul.f32 %v2218_v41, %v4960_v14  ;;  %v3618_v14 = vld [vmem:[%s5287_s8 + $0xd8] sm:$0xff] }
0x10a2   :  { %v2222_v22 = vmul.f32 0.5, %v2221_v21  ;;  %2511 = vmatpush.bf16.msra.mxu2 %v3618_v14 }
0x10a3   :  { %v2236_v30 = vmul.f32 %v4972_v47, %v2231_v3 }
0x10a4   :  { %v2223_v27 = vsub.f32 1.5, %v2222_v22 }
0x10a5   :  { %v5072_v55 = vadd.f32 %v2240_v11, %v2236_v30 }
0x10a6   :  { %v2224_v46 = vmul.f32 %v3820_v1, %v2223_v27 }
0x10a8   :  { %v2228_v58 = vsel %vm2227_vm11, %v3820_v1, %v2224_v46 }
0x10a9   :  { %v2232_v60 = vmul.f32 %v2228_v58, %v4966_v4  ;;  %v3611_v4 = vld [vmem:[%s5287_s8 + $0xa0] sm:$0xff] }
0x10aa   :  { %2491 = vmatpush.bf16.msra.mxu1 %v3611_v4 }
0x10ab   :  { %v2237_v48 = vmul.f32 %v4972_v47, %v2232_v60  ;;  %v3617_v47 = vld [vmem:[%s5287_s8 + $0xd0] sm:$0xff] }
0x10ac   :  { %2512 = vmatpush.bf16.msra.mxu2 %v3617_v47 }
0x10ad   :  { %v5074_v31 = vadd.f32 %v2240_v11, %v2237_v48 }
0x10ae   :  { %2492 = vmatpush.bf16.msra.mxu1 %v3610_v44 }
0x10af   :  { %v2247_v23 = vpack.c.bf16 %v5074_v31, %v5072_v55 }
0x10b0   :  { %2513 = vmatpush.bf16.msra.mxu2 %v3616_v33 }
0x10b1   :  { %3393 = vmatmul.msk.bf16.gmra.mxu3 %vm223_vm2, %v2247_v23  ;;  %3395 = vmatmul.msk.bf16.gmra.mxu0 %vm223_vm2, %v2247_v23 }
0x10b2   :  { %2493 = vmatpush.bf16.msra.mxu1 %v3609_v45 }
0x10b4   :  { %2514 = vmatpush.bf16.msra.mxu2 %v3615_v36 }
0x10b6   :  { %2494 = vmatpush.bf16.msra.mxu1 %v3608_v37 }
0x10ba   :  { %2495 = vmatpush.bf16.msra.mxu1 %v3607_v38 }
0x111e   :  { %v2333_v52 = vpop.f32.mrf.mxu0 }
0x111f   :  { %v2334_v49 = vadd.f32 %v2333_v52, %v2258_v43 }
0x1121   :  { %v2344_v25 = vmax.f32 %v2334_v49, 0.0 }
0x1124   :  { %v2314_v51 = vpop.f32.mrf.mxu3 }
0x1125   :  { %v2315_v6 = vadd.f32 %v2314_v51, %v2257_v54 }
0x1126   :  { %v2335_v50 = vpop.f32.mrf.mxu0 }
0x1127   :  { %v2336_v62 = vadd.f32 %v2335_v50, %v2258_v43  ;;  %v2343_v28 = vmax.f32 %v2315_v6, 0.0 }
0x1129   :  { %v2346_v57 = vmax.f32 %v2336_v62, 0.0 }
0x112b   :  { %v2352_v34 = vpack.c.bf16 %v2346_v57, %v2344_v25 }
0x112c   :  { %v2316_v59 = vpop.f32.mrf.mxu3 }
0x112d   :  { %v2317_v5 = vadd.f32 %v2316_v59, %v2257_v54  ;;  %2515 = vmatmul.bf16.vlgmr.msra.gmra.mxu2 %v2352_v34 }
0x112e   :  { %v2338_v42 = vpop.f32.mrf.mxu0 }
0x112f   :  { %v2345_v32 = vmax.f32 %v2317_v5, 0.0  ;;  %v2339_v39 = vadd.f32 %v2338_v42, %v2258_v43  ;;  %v5147_v42 = vperm.slane %v5111_v63, 3 }
0x1131   :  { %v2351_v35 = vpack.c.bf16 %v2345_v32, %v2343_v28  ;;  %v2348_v7 = vmax.f32 %v2339_v39, 0.0  ;;  %v3626_v32 = vld [vmem:[#allocation7 + $0x18] sm:$0xff]  ;;  %v3625_v39 = vld [vmem:[#allocation7 + $0x10] sm:$0xff] }
0x1132   :  { %2676 = vmatpush.bf16.msrb.mxu3 %v3626_v32 }
0x1133   :  { %2496 = vmatmul.bf16.vlgmr.msra.gmra.mxu1 %v2351_v35 }
0x1134   :  { %v2319_v19 = vpop.f32.mrf.mxu3 }
0x1135   :  { %v2320_v56 = vadd.f32 %v2319_v19, %v2257_v54 }
0x1136   :  { %v2340_v0 = vpop.f32.mrf.mxu0  ;;  %2677 = vmatpush.bf16.msrb.mxu3 %v3625_v39 }
0x1137   :  { %v2341_v2 = vadd.f32 %v2340_v0, %v2258_v43  ;;  %v2347_v9 = vmax.f32 %v2320_v56, 0.0  ;;  %v3623_v56 = vld [vmem:[#allocation7] sm:$0xff] }
0x1139   :  { %v2350_v29 = vmax.f32 %v2341_v2, 0.0  ;;  %v3624_v2 = vld [vmem:[#allocation7 + $0x8] sm:$0xff] }
0x113a   :  { %2678 = vmatpush.bf16.msrb.mxu3 %v3624_v2 }
0x113b   :  { %v2354_v8 = vpack.c.bf16 %v2350_v29, %v2348_v7 }
0x113c   :  { %v2321_v24 = vpop.f32.mrf.mxu3 }
0x113d   :  { %v2322_v53 = vadd.f32 %v2321_v24, %v2257_v54  ;;  %2520 = vmatmul.bf16.gmra.mxu2 %v2354_v8 }
0x113e   :  { %2679 = vmatpush.bf16.msrb.mxu3 %v3623_v56 }
0x113f   :  { %v2349_v10 = vmax.f32 %v2322_v53, 0.0 }
0x1141   :  { %v2353_v11 = vpack.c.bf16 %v2349_v10, %v2347_v9 }
0x1143   :  { %2501 = vmatmul.bf16.gmra.mxu1 %v2353_v11 }
0x11b0   :  { %v2497_v26 = vpop.f32.mrf.mxu1  ;;  %v2516_v15 = vpop.f32.mrf.mxu2 }
0x11b1   :  { %v2498_v12 = vadd.f32 %v2497_v26, %v2486_v13  ;;  %v3978_v26 = vmov 0  }
0x11b2   :  { %3715 = vset.pattern.permute.xlu0 %v3978_v26  ;;  %3713 = vset.pattern.permute.xlu1 %v3978_v26 }
0x11b3   :  { %v2517_v1 = vadd.f32 %v2516_v15, %v2498_v12  ;;  %v5160_v15 = vld [vmem:[%s5281_s2 + $0x10] sm:$0xff]  ;;  %v5166_v12 = vld [vmem:[%s5281_s2] sm:$0xff]  ;;  %3714 = vset.pattern.permute.xlu2 %v3978_v26 }
0x11b5   :  { %v2526_v18 = vadd.f32 %v2517_v1, %v5060_v16 }
0x11b7   :  { %v2530_v61 = vsel %vm223_vm2, %v2526_v18, 0.0 }
0x11b8   :  { %v2499_v20 = vpop.f32.mrf.mxu1  ;;  %v2518_v21 = vpop.f32.mrf.mxu2  ;;  %2531 = vadd.xlane.f32.xlu0 %v2530_v61  ;;  %v5172_v61 = vld [vmem:[%s5281_s2 + $0x8] sm:$0xff] }
0x11b9   :  { %v2500_v41 = vadd.f32 %v2499_v20, %v2486_v13 }
0x11bb   :  { %v2519_v22 = vadd.f32 %v2518_v21, %v2500_v41 }
0x11bd   :  { %v2527_v27 = vadd.f32 %v2519_v22, %v5062_v17 }
0x11bf   :  { %v2533_v3 = vsel %vm223_vm2, %v2527_v27, 0.0 }
0x11c0   :  { %v2502_v46 = vpop.f32.mrf.mxu1  ;;  %v2521_v58 = vpop.f32.mrf.mxu2  ;;  %2534 = vadd.xlane.f32.xlu0 %v2533_v3 }
0x11c1   :  { %v2503_v60 = vadd.f32 %v2502_v46, %v2486_v13 }
0x11c3   :  { %v2522_v30 = vadd.f32 %v2521_v58, %v2503_v60 }
0x11c5   :  { %v2528_v48 = vadd.f32 %v2522_v30, %v5072_v55 }
0x11c7   :  { %v2536_v16 = vsel %vm223_vm2, %v2528_v48, 0.0 }
0x11c8   :  { %v2504_v23 = vpop.f32.mrf.mxu1  ;;  %2537 = vadd.xlane.f32.xlu0 %v2536_v16  ;;  %v2523_v4 = vpop.f32.mrf.mxu2 }
0x11c9   :  { %v2505_v14 = vadd.f32 %v2504_v23, %v2486_v13  ;;  %v3979_v23 = vmov 1  }
0x11cb   :  { %v2524_v47 = vadd.f32 %v2523_v4, %v2505_v14 }
0x11cd   :  { %v2529_v44 = vadd.f32 %v2524_v47, %v5074_v31 }
0x11cf   :  { %v2539_v17 = vsel %vm223_vm2, %v2529_v44, 0.0 }
0x11d0   :  { %2540 = vadd.xlane.f32.xlu1 %v2539_v17 }
0x11e9   :  { %2692 = vperm.xlu1 %3713, %v5166_v12  }
0x11f1   :  { %3718 = vset.pattern.permute.xlu1 %v3979_v23 }
0x11f2   :  { %2720 = vperm.xlu1 %3718, %v5160_v15  }
0x122b   :  { %v2532_v33 = vpop.xlane.xlu0 %2531 }
0x122c   :  { %v2542_v45 = vmul.f32 %v2532_v33, %v4415_v40 }
0x122e   :  { %v5123_v36 = vsub.f32 %v2526_v18, %v2542_v45 }
0x1230   :  { %v2550_v55 = vmul.f32 %v5123_v36, %v5123_v36 }
0x1232   :  { %v2554_v37 = vsel %vm223_vm2, %v2550_v55, 0.0 }
0x1233   :  { %2555 = vadd.xlane.f32.xlu2 %v2554_v37  ;;  %v2535_v38 = vpop.xlane.xlu0 %2534 }
0x1234   :  { %v2543_v52 = vmul.f32 %v2535_v38, %v4415_v40 }
0x1236   :  { %v5129_v43 = vsub.f32 %v2527_v27, %v2543_v52 }
0x1238   :  { %v2551_v31 = vmul.f32 %v5129_v43, %v5129_v43 }
0x123a   :  { %v2557_v51 = vsel %vm223_vm2, %v2551_v31, 0.0 }
0x123b   :  { %2558 = vadd.xlane.f32.xlu0 %v2557_v51  ;;  %v2538_v49 = vpop.xlane.xlu0 %2537  ;;  %v5193_v51 = vld [vmem:[%s5281_s2 + $0x18] sm:$0xff] }
0x123c   :  { %v2544_v50 = vmul.f32 %v2538_v49, %v4415_v40  ;;  %2724 = vperm.xlu1 %3718, %v5193_v51  }
0x123e   :  { %v5135_v54 = vsub.f32 %v2528_v48, %v2544_v50 }
0x1240   :  { %v2552_v62 = vmul.f32 %v5135_v54, %v5135_v54 }
0x1242   :  { %v2560_v25 = vsel %vm223_vm2, %v2552_v62, 0.0 }
0x1243   :  { %v2541_v57 = vpop.xlane.xlu1 %2540  ;;  %2561 = vadd.xlane.f32.xlu0 %v2560_v25 }
0x1244   :  { %v2545_v6 = vmul.f32 %v2541_v57, %v4415_v40 }
0x1246   :  { %v5141_v34 = vsub.f32 %v2529_v44, %v2545_v6 }
0x1248   :  { %v2553_v59 = vmul.f32 %v5141_v34, %v5141_v34 }
0x124a   :  { %v2563_v5 = vsel %vm223_vm2, %v2553_v59, 0.0 }
0x124b   :  { %2564 = vadd.xlane.f32.xlu0 %v2563_v5  ;;  %2696 = vperm.xlu2 %3714, %v5172_v61  }
0x1253   :  { %3717 = vset.pattern.permute.xlu2 %v3979_v23 }
0x1254   :  { %2716 = vperm.xlu2 %3717, %v5172_v61  }
0x125c   :  { %3719 = vset.pattern.permute.xlu2 %v3978_v26 }
0x125d   :  { %2704 = vperm.xlu2 %3719, %v5193_v51  }
0x125f   :  { %2624 = vrot.lane.b32.xlu0 %v5147_v42, %s3968_s13 }
0x1267   :  { %2700 = vperm.xlu0 %3715, %v5160_v15  }
0x126f   :  { %3716 = vset.pattern.permute.xlu0 %v3979_v23 }
0x1270   :  { %2712 = vperm.xlu0 %3716, %v5166_v12  }
0x12a6   :  { %v2556_v28 = vpop.xlane.xlu2 %2555 }
0x12a7   :  { %v2566_v35 = vmul.f32 %v2556_v28, %v4415_v40 }
0x12a9   :  { %v2570_v19 = vadd.f32 1e-05, %v2566_v35 }
0x12ab   :  { %3821 = vrsqrt.f32 %v2570_v19  ;;  %vm2580_vm0 = vweird.f32 %v2570_v19 }
0x12ae   :  { %v2559_v0 = vpop.xlane.xlu0 %2558 }
0x12af   :  { %v2567_v7 = vmul.f32 %v2559_v0, %v4415_v40  ;;  %v3980_v0 = vmov 5  }
0x12b0   :  { %3720 = vset.pattern.permute.xlu0 %v3980_v0  ;;  %3721 = vset.pattern.permute.xlu2 %v3980_v0 }
0x12b1   :  { %v2571_v29 = vadd.f32 1e-05, %v2567_v7  ;;  %v3822_v63 = vpop.eup %3821  ;;  %3722 = vset.pattern.permute.xlu1 %v3980_v0  ;;  %v5204_v7 = vld [vmem:[#allocation5] sm:$0xff] }
0x12b2   :  { %v2575_v8 = vmul.f32 %v3822_v63, %v2570_v19  ;;  %vm2581_vm1 = vweird.f32 %v3822_v63 }
0x12b3   :  { %3823 = vrsqrt.f32 %v2571_v29  ;;  %vm5177_vm13 = vmor %vm2580_vm0, %vm2581_vm1  ;;  %vm2590_vm14 = vweird.f32 %v2571_v29 }
0x12b4   :  { %v2576_v10 = vmul.f32 %v3822_v63, %v2575_v8 }
0x12b6   :  { %v2562_v24 = vpop.xlane.xlu0 %2561  ;;  %v2577_v18 = vmul.f32 0.5, %v2576_v10 }
0x12b7   :  { %v2568_v53 = vmul.f32 %v2562_v24, %v4415_v40 }
0x12b8   :  { %v2578_v27 = vsub.f32 1.5, %v2577_v18 }
0x12b9   :  { %v3824_v9 = vpop.eup %3823  ;;  %v5154_v11 = vadd.f32 1e-05, %v2568_v53 }
0x12ba   :  { %v2585_v13 = vmul.f32 %v3824_v9, %v2571_v29  ;;  %v2579_v60 = vmul.f32 %v3822_v63, %v2578_v27  ;;  %vm2591_vm12 = vweird.f32 %v3824_v9  ;;  %v2693_v29 = vpop.permute.xlu1 %2692 }
0x12bb   :  { %3825 = vrsqrt.f32 %v5154_v11  ;;  %vm2592_vm15 = vmor %vm2590_vm14, %vm2591_vm12  ;;  %vm2600_vm10 = vweird.f32 %v5154_v11 }
0x12bc   :  { %v2586_v1 = vmul.f32 %v3824_v9, %v2585_v13  ;;  %v2583_v14 = vsel %vm5177_vm13, %v3822_v63, %v2579_v60  ;;  %v2697_v63 = vpop.permute.xlu2 %2696 }
0x12bd   :  { %v2614_v33 = vmul.f32 %v2583_v14, %v5123_v36 }
0x12be   :  { %v2587_v20 = vmul.f32 0.5, %v2586_v1  ;;  %v2565_v21 = vpop.xlane.xlu0 %2564 }
0x12bf   :  { %v2569_v41 = vmul.f32 %v2565_v21, %v4415_v40  ;;  %v2619_v52 = vmul.f32 %v5147_v42, %v2614_v33 }
0x12c0   :  { %v2588_v3 = vsub.f32 1.5, %v2587_v20 }
0x12c1   :  { %v3826_v22 = vpop.eup %3825  ;;  %v2573_v46 = vadd.f32 1e-05, %v2569_v41 }
0x12c2   :  { %v2595_v58 = vmul.f32 %v3826_v22, %v5154_v11  ;;  %v2589_v30 = vmul.f32 %v3824_v9, %v2588_v3  ;;  %vm2601_vm7 = vweird.f32 %v3826_v22  ;;  %v2721_v20 = vpop.permute.xlu1 %2720 }
0x12c3   :  { %3827 = vrsqrt.f32 %v2573_v46  ;;  %vm2610_vm8 = vweird.f32 %v2573_v46  ;;  %vm2602_vm11 = vmor %vm2600_vm10, %vm2601_vm7 }
0x12c4   :  { %v2596_v16 = vmul.f32 %v3826_v22, %v2595_v58  ;;  %v2593_v4 = vsel %vm2592_vm15, %v3824_v9, %v2589_v30  ;;  %v2717_v10 = vpop.permute.xlu2 %2716 }
0x12c5   :  { %v2615_v45 = vmul.f32 %v2593_v4, %v5129_v43 }
0x12c6   :  { %v2597_v44 = vmul.f32 0.5, %v2596_v16  ;;  %v3981_v16 = vmov 4  }
0x12c7   :  { %v2620_v31 = vmul.f32 %v5147_v42, %v2615_v45 }
0x12c8   :  { %v2598_v37 = vsub.f32 1.5, %v2597_v44 }
0x12c9   :  { %v3828_v40 = vpop.eup %3827 }
0x12ca   :  { %v2605_v47 = vmul.f32 %v3828_v40, %v2573_v46  ;;  %vm2611_vm6 = vweird.f32 %v3828_v40  ;;  %v2599_v43 = vmul.f32 %v3826_v22, %v2598_v37  ;;  %v2725_v60 = vpop.permute.xlu1 %2724 }
0x12cb   :  { %vm2612_vm9 = vmor %vm2610_vm8, %vm2611_vm6 }
0x12cc   :  { %v2606_v17 = vmul.f32 %v3828_v40, %v2605_v47  ;;  %v2603_v6 = vsel %vm2602_vm11, %v3826_v22, %v2599_v43  ;;  %v2705_v3 = vpop.permute.xlu2 %2704 }
0x12cd   :  { %v2616_v5 = vmul.f32 %v2603_v6, %v5135_v54 }
0x12ce   :  { %v2607_v55 = vmul.f32 0.5, %v2606_v17 }
0x12cf   :  { %v2621_v32 = vmul.f32 %v5147_v42, %v2616_v5 }
0x12d0   :  { %v2608_v38 = vsub.f32 1.5, %v2607_v55 }
0x12d1   :  { %v2625_v49 = vpop.permute.xlu0 %2624 }
0x12d2   :  { %v2609_v50 = vmul.f32 %v3828_v40, %v2608_v38  ;;  %v2627_v36 = vadd.f32 %v2625_v49, %v2619_v52  ;;  %v2628_v62 = vadd.f32 %v2625_v49, %v2620_v31  ;;  %v2629_v19 = vadd.f32 %v2625_v49, %v2621_v32  ;;  %v3632_v38 = vld [vmem:[%s5290_s11 + $0x28] sm:$0xff]  ;;  %v3631_v52 = vld [vmem:[%s5290_s11 + $0x20] sm:$0xff]  ;;  %v3630_v31 = vld [vmem:[%s5290_s11 + $0x18] sm:$0xff] }
0x12d3   :  { %2914 = vmatpush.bf16.msrb.mxu0 %v3632_v38 }
0x12d4   :  { %v2631_v25 = vpack.c.bf16 %v2628_v62, %v2627_v36  ;;  %v2613_v57 = vsel %vm2612_vm9, %v3828_v40, %v2609_v50  ;;  %v2759_v40 = vlaneseq }
0x12d5   :  { %v2617_v59 = vmul.f32 %v2613_v57, %v5141_v34  ;;  %v2641_v34 = vperm.slane %v5204_v7, 0 }
0x12d6   :  { %3508 = vmatmul.msk.bf16.vlgmr.msrb.gmra.mxu3 %vm223_vm2, %v2631_v25  ;;  %v2760_v4 = vshrl.u32 %v2759_v40, 7 }
0x12d7   :  { %v2622_v28 = vmul.f32 %v5147_v42, %v2617_v59  ;;  %2915 = vmatpush.bf16.msrb.mxu0 %v3631_v52 }
0x12d8   :  { %vm2761_vm1 = vcmp.lt.s32.totalorder %v2760_v4, 1  ;;  %vm2790_vm12 = vcmp.lt.s32.totalorder %v2760_v4, 7 }
0x12d9   :  { %v2630_v35 = vadd.f32 %v2625_v49, %v2622_v28  ;;  %v2701_v2 = vpop.permute.xlu0 %2700  ;;  %v3629_v49 = vld [vmem:[%s5290_s11 + $0x10] sm:$0xff] }
0x12db   :  { %v2632_v39 = vpack.c.bf16 %v2630_v35, %v2629_v19  ;;  %2916 = vmatpush.bf16.msrb.mxu0 %v3630_v31 }
0x12df   :  { %2917 = vmatpush.bf16.msrb.mxu0 %v3629_v49 }
0x12e2   :  { %v2713_v8 = vpop.permute.xlu0 %2712 }
0x12e6   :  { %3509 = vmatmul.msk.bf16.gmra.mxu3 %vm223_vm2, %v2632_v39 }
0x1359   :  { %v2681_v54 = vpop.f32.mrf.mxu3 }
0x135a   :  { %v2682_v56 = vadd.f32 %v2681_v54, %v2641_v34 }
0x135c   :  { %v2707_v42 = vmul.f32 %v2693_v29, %v2682_v56 }
0x135e   :  { %v2727_v24 = vadd.f32 %v2713_v8, %v2707_v42 }
0x1360   :  { %3829 = vtanh.f32 %v2727_v24 }
0x1361   :  { %v2683_v53 = vpop.f32.mrf.mxu3 }
0x1362   :  { %v2684_v9 = vadd.f32 %v2683_v53, %v2641_v34 }
0x1364   :  { %v2708_v11 = vmul.f32 %v2697_v63, %v2684_v9 }
0x1366   :  { %v3830_v13 = vpop.eup %3829  ;;  %v2728_v26 = vadd.f32 %v2717_v10, %v2708_v11 }
0x1367   :  { %2739 = vrot.lane.b32.xlu0 %v3830_v13, %s3975_s29 }
0x1368   :  { %3831 = vtanh.f32 %v2728_v26  ;;  %v3627_v26 = vld [vmem:[%s5290_s11] sm:$0xff] }
0x1369   :  { %v2686_v1 = vpop.f32.mrf.mxu3 }
0x136a   :  { %v2687_v18 = vadd.f32 %v2686_v1, %v2641_v34  ;;  %v3982_v1 = vmov 3  }
0x136c   :  { %v2709_v21 = vmul.f32 %v2701_v2, %v2687_v18  ;;  %v3983_v18 = vmov 2  }
0x136e   :  { %v3832_v41 = vpop.eup %3831  ;;  %v2729_v22 = vadd.f32 %v2721_v20, %v2709_v21 }
0x136f   :  { %2741 = vrot.lane.b32.xlu2 %v3832_v41, %s3975_s29  ;;  %2796 = vperm.xlu0 %3720, %v5166_v12  }
0x1370   :  { %3833 = vtanh.f32 %v2729_v22 }
0x1371   :  { %v2688_v27 = vpop.f32.mrf.mxu3 }
0x1372   :  { %v2689_v46 = vadd.f32 %v2688_v27, %v2641_v34 }
0x1374   :  { %v2710_v58 = vmul.f32 %v2705_v3, %v2689_v46 }
0x1376   :  { %v3834_v30 = vpop.eup %3833  ;;  %v2730_v48 = vadd.f32 %v2725_v60, %v2710_v58 }
0x1377   :  { %2800 = vperm.xlu2 %3721, %v5172_v61   ;;  %2743 = vrot.lane.b32.xlu1 %v3834_v30, %s3975_s29 }
0x1378   :  { %3835 = vtanh.f32 %v2730_v48  ;;  %3723 = vset.pattern.permute.xlu0 %v3981_v16 }
0x1379   :  { %2767 = vperm.xlu0 %3723, %v5166_v12  }
0x137e   :  { %v3836_v23 = vpop.eup %3835 }
0x137f   :  { %2804 = vperm.xlu2 %3721, %v5160_v15   ;;  %2745 = vrot.lane.b32.xlu1 %v3836_v23, %s3975_s29 }
0x1381   :  { %2779 = vperm.xlu0 %3723, %v5193_v51  }
0x1387   :  { %3724 = vset.pattern.permute.xlu2 %v3981_v16  ;;  %2808 = vperm.xlu1 %3722, %v5193_v51  }
0x1388   :  { %2771 = vperm.xlu2 %3724, %v5172_v61  }
0x1389   :  { %3746 = vset.pattern.permute.xlu0 %v3983_v18 }
0x138a   :  { %2940 = vperm.xlu0 %3746, %v5160_v15  }
0x138f   :  { %3735 = vset.pattern.permute.xlu1 %v3981_v16 }
0x1390   :  { %3747 = vset.pattern.permute.xlu2 %v3983_v18 }
0x1392   :  { %2936 = vperm.xlu0 %3746, %v5172_v61  }
0x139a   :  { %3762 = vset.pattern.permute.xlu0 %v3982_v1 }
0x13c9   :  { %v2742_v14 = vpop.permute.xlu2 %2741 }
0x13ca   :  { %v2752_v47 = vmax.f32 %v3832_v41, %v2742_v14 }
0x13cc   :  { %v2756_v33 = vrot.slane %v2752_v47, 7  ;;  %v2787_v43 = vrot.slane %v2752_v47, 1 }
0x13d1   :  { %v2801_v59 = vpop.permute.xlu2 %2800 }
0x13d9   :  { %v2740_v44 = vpop.permute.xlu0 %2739  ;;  %v2805_v8 = vpop.permute.xlu2 %2804 }
0x13da   :  { %v2751_v17 = vmax.f32 %v3830_v13, %v2740_v44  ;;  %v3628_v13 = vld [vmem:[%s5290_s11 + $0x8] sm:$0xff]  ;;  %s3984_s11 = smov [#allocation8]  }
0x13db   :  { %2918 = vmatpush.bf16.msrb.mxu0 %v3628_v13 }
0x13dc   :  { %v3725_v45 = vpack.i.bf16 %v2752_v47, %v2751_v17  ;;  %v2755_v55 = vrot.slane %v2751_v17, 7  ;;  %v2786_v36 = vrot.slane %v2751_v17, 1 }
0x13de   :  { %3726 = vrot.lane.b32.xlu1 %v3725_v45, %s3973_s27  ;;  %v5220_v37 = vsel %vm2761_vm1, %v2755_v55, %v2756_v33  ;;  %v2793_v5 = vsel %vm2790_vm12, %v2786_v36, %v2787_v43 }
0x13df   :  { %2919 = vmatpush.bf16.msrb.mxu0 %v3627_v26 }
0x13e1   :  { %v2797_v25 = vpop.permute.xlu0 %2796 }
0x13e2   :  { %v2811_v35 = vmul.f32 %v2797_v25, %v2793_v5  ;;  %v2772_v20 = vpop.permute.xlu2 %2771 }
0x13e3   :  { %v2783_v22 = vmul.f32 %v2772_v20, %v5220_v37 }
0x13e6   :  { %2775 = vperm.xlu1 %3735, %v5160_v15  }
0x13e9   :  { %v2744_v50 = vpop.permute.xlu1 %2743 }
0x13ea   :  { %v2753_v62 = vmax.f32 %v3834_v30, %v2744_v50 }
0x13ec   :  { %v2757_v57 = vrot.slane %v2753_v62, 7  ;;  %v2788_v6 = vrot.slane %v2753_v62, 1 }
0x13ee   :  { %v2792_v28 = vsel %vm2790_vm12, %v2787_v43, %v2788_v6  ;;  %v2763_v32 = vsel %vm2761_vm1, %v2756_v33, %v2757_v57  ;;  %3748 = vset.pattern.permute.xlu1 %v3982_v1 }
0x13ef   :  { %v2812_v19 = vmul.f32 %v2801_v59, %v2792_v28 }
0x13f1   :  { %v2746_v39 = vpop.permute.xlu1 %2745  ;;  %v3730_v0 = vpack.i.bf16 %v2812_v19, %v2811_v35 }
0x13f2   :  { %v2754_v2 = vmax.f32 %v3836_v23, %v2746_v39 }
0x13f3   :  { %3731 = vrot.lane.b32.xlu2 %v3730_v0, %s3968_s13 }
0x13f4   :  { %v2758_v34 = vrot.slane %v2754_v2, 7  ;;  %v2789_v29 = vrot.slane %v2754_v2, 1  ;;  %v3736_v42 = vpack.i.bf16 %v2754_v2, %v2753_v62  ;;  %v2869_v62 = vperm.slane %v5204_v7, 1 }
0x13f6   :  { %v2765_v54 = vsel %vm2761_vm1, %v2758_v34, %v2755_v55  ;;  %v2762_v63 = vsel %vm2761_vm1, %v2757_v57, %v2758_v34  ;;  %v2791_v56 = vsel %vm2790_vm12, %v2788_v6, %v2789_v29  ;;  %v2794_v53 = vsel %vm2790_vm12, %v2789_v29, %v2786_v36 }
0x13f7   :  { %v2813_v9 = vmul.f32 %v2805_v8, %v2791_v56 }
0x13f9   :  { %v2809_v24 = vpop.permute.xlu1 %2808 }
0x13fa   :  { %v2814_v10 = vmul.f32 %v2809_v24, %v2794_v53 }
0x13fb   :  { %3737 = vrot.lane.b32.xlu2 %v3736_v42, %s3973_s27 }
0x13fc   :  { %v3741_v11 = vpack.i.bf16 %v2814_v10, %v2813_v9 }
0x13fe   :  { %3742 = vrot.lane.b32.xlu1 %v3741_v11, %s3968_s13  ;;  %s3043_s13 = sshll.u32 %s3984_s11, 4  ;;  %s3044_s13 = int_to_ptr.vmem [resolvable:$true] %s3043_s13 }
0x1403   :  { %2944 = vperm.xlu2 %3747, %v5193_v51  }
0x1406   :  { %2960 = vperm.xlu1 %3748, %v5160_v15   ;;  %v2768_v15 = vpop.permute.xlu0 %2767 }
0x1407   :  { %v2782_v27 = vmul.f32 %v2768_v15, %v2765_v54 }
0x140b   :  { %3749 = vset.pattern.permute.xlu2 %v3982_v1 }
0x140c   :  { %2964 = vperm.xlu2 %3749, %v5193_v51  }
0x140e   :  { %3750 = vset.pattern.permute.xlu1 %v3983_v18  ;;  %v2780_v40 = vpop.permute.xlu0 %2779 }
0x140f   :  { %2932 = vperm.xlu1 %3750, %v5166_v12   ;;  %v2785_v47 = vmul.f32 %v2780_v40, %v2762_v63 }
0x1414   :  { %2952 = vperm.xlu2 %3749, %v5166_v12  }
0x1416   :  { %v2941_v43 = vpop.permute.xlu0 %2940 }
0x1417   :  { %3751 = vset.pattern.permute.xlu1 %v3982_v1  ;;  %v3542_v1 = vld [vmem:[#allocation2 + $0x4] sm:$0xff] }
0x1418   :  { %2956 = vperm.xlu1 %3751, %v5172_v61   ;;  %3031 = vmatpush.bf16.msrb.mxu2 %v3542_v1 }
0x144d   :  { %v3732_v21 = vpop.permute.xlu2 %3731 }
0x144e   :  { %v3734_v58 = vunpack.i.h.bf16 %v3732_v21  ;;  %v3733_v60 = vunpack.i.l.bf16 %v3732_v21 }
0x1450   :  { %v3727_v41 = vpop.permute.xlu1 %3726 }
0x1451   :  { %v3729_v3 = vunpack.i.h.bf16 %v3727_v41  ;;  %v3728_v46 = vunpack.i.l.bf16 %v3727_v41 }
0x1453   :  { %v2847_v30 = vsel %vm473_vm4, %v2782_v27, %v3728_v46  ;;  %v2848_v51 = vsel %vm473_vm4, %v2783_v22, %v3729_v3 }
0x1454   :  { %v2851_v48 = vsel %vm223_vm2, %v2847_v30, %v3733_v60  ;;  %v2852_v61 = vsel %vm223_vm2, %v2848_v51, %v3734_v58  ;;  %v91_v51 = vld [vmem:[#allocation2 + $0xc] sm:$0xf] }
0x1455   :  { %v2855_v16 = vpack.c.bf16 %v2852_v61, %v2851_v48  ;;  %v3738_v23 = vpop.permute.xlu2 %3737 }
0x1456   :  { %v3740_v14 = vunpack.i.h.bf16 %v3738_v23  ;;  %v3739_v44 = vunpack.i.l.bf16 %v3738_v23 }
0x1457   :  { %3534 = vmatmul.msk.bf16.vlgmr.msrb.gmra.mxu0 %vm482_vm5, %v2855_v16 }
0x1458   :  { %v2776_v12 = vpop.permute.xlu1 %2775  ;;  %v2850_v55 = vsel %vm473_vm4, %v2785_v47, %v3740_v14 }
0x1459   :  { %v2784_v4 = vmul.f32 %v2776_v12, %v2763_v32  ;;  %v2937_v32 = vpop.permute.xlu0 %2936  ;;  %v3014_v12 = vperm.slane %v5204_v7, 2 }
0x145b   :  { %v2849_v37 = vsel %vm473_vm4, %v2784_v4, %v3739_v44 }
0x145d   :  { %v2945_v49 = vpop.permute.xlu2 %2944 }
0x1466   :  { %v2965_v36 = vpop.permute.xlu2 %2964 }
0x146e   :  { %v2953_v5 = vpop.permute.xlu2 %2952 }
0x1470   :  { %v3743_v17 = vpop.permute.xlu1 %3742 }
0x1471   :  { %v3745_v33 = vunpack.i.h.bf16 %v3743_v17  ;;  %v3744_v45 = vunpack.i.l.bf16 %v3743_v17 }
0x1473   :  { %v2853_v38 = vsel %vm223_vm2, %v2849_v37, %v3744_v45  ;;  %v2854_v52 = vsel %vm223_vm2, %v2850_v55, %v3745_v33 }
0x1474   :  { %v2856_v31 = vpack.c.bf16 %v2854_v52, %v2853_v38 }
0x1476   :  { %3535 = vmatmul.msk.bf16.gmra.mxu0 %vm482_vm5, %v2856_v31 }
0x1478   :  { %v2961_v50 = vpop.permute.xlu1 %2960 }
0x1481   :  { %v2933_v6 = vpop.permute.xlu1 %2932 }
0x148a   :  { %v2957_v39 = vpop.permute.xlu1 %2956 }
0x14d4   :  { %v2921_v25 = vpop.f32.mrf.mxu0 }
0x14d5   :  { %v2922_v57 = vadd.f32 %v2921_v25, %v2869_v62 }
0x14d7   :  { %v2947_v59 = vmul.f32 %v2933_v6, %v2922_v57 }
0x14d9   :  { %v2967_v19 = vadd.f32 %v2953_v5, %v2947_v59 }
0x14db   :  { %3837 = vtanh.f32 %v2967_v19 }
0x14dc   :  { %v2923_v28 = vpop.f32.mrf.mxu0 }
0x14dd   :  { %v2924_v35 = vadd.f32 %v2923_v28, %v2869_v62 }
0x14df   :  { %v2948_v0 = vmul.f32 %v2937_v32, %v2924_v35 }
0x14e1   :  { %v2968_v2 = vadd.f32 %v2957_v39, %v2948_v0  ;;  %v3838_v34 = vpop.eup %3837 }
0x14e3   :  { %3839 = vtanh.f32 %v2968_v2 }
0x14e9   :  { %v3840_v29 = vpop.eup %3839 }
0x14ea   :  { %v3757_v54 = vpack.i.bf16 %v3840_v29, %v3838_v34 }
0x14ec   :  { %3758 = vrot.lane.b32.xlu2 %v3757_v54, %s3976_s30 }
0x14f3   :  { %v2926_v63 = vpop.f32.mrf.mxu0 }
0x14f4   :  { %v2927_v56 = vadd.f32 %v2926_v63, %v2869_v62 }
0x14f6   :  { %v2949_v8 = vmul.f32 %v2941_v43, %v2927_v56 }
0x14f8   :  { %v2969_v53 = vadd.f32 %v2961_v50, %v2949_v8 }
0x14fa   :  { %3841 = vtanh.f32 %v2969_v53 }
0x14fb   :  { %v2928_v42 = vpop.f32.mrf.mxu0 }
0x14fc   :  { %v2929_v24 = vadd.f32 %v2928_v42, %v2869_v62 }
0x14fe   :  { %v2950_v9 = vmul.f32 %v2945_v49, %v2929_v24 }
0x1500   :  { %v2970_v10 = vadd.f32 %v2965_v36, %v2950_v9  ;;  %v3842_v11 = vpop.eup %3841 }
0x1502   :  { %3843 = vtanh.f32 %v2970_v10 }
0x1508   :  { %v3844_v13 = vpop.eup %3843 }
0x1509   :  { %v3752_v26 = vpack.i.bf16 %v3844_v13, %v3842_v11 }
0x150b   :  { %3753 = vrot.lane.b32.xlu0 %v3752_v26, %s3976_s30 }
0x1546   :  { %v3759_v18 = vpop.permute.xlu2 %3758 }
0x1547   :  { %v3761_v21 = vunpack.i.h.bf16 %v3759_v18  ;;  %v3760_v15 = vunpack.i.l.bf16 %v3759_v18 }
0x1549   :  { %v2992_v46 = vmax.f32 %v3840_v29, %v3761_v21  ;;  %v2991_v58 = vmax.f32 %v3838_v34, %v3760_v15 }
0x154b   :  { %v2995_v30 = vpack.c.bf16 %v2992_v46, %v2991_v58 }
0x157d   :  { %v3754_v20 = vpop.permute.xlu0 %3753 }
0x157e   :  { %v3756_v41 = vunpack.i.h.bf16 %v3754_v20  ;;  %v3755_v22 = vunpack.i.l.bf16 %v3754_v20 }
0x1580   :  { %v2994_v27 = vmax.f32 %v3844_v13, %v3756_v41  ;;  %v2993_v3 = vmax.f32 %v3842_v11, %v3755_v22 }
0x1582   :  { %v2996_v60 = vpack.c.bf16 %v2994_v27, %v2993_v3 }
0x1584   :  { %3006 = vmatpush.bf16.msrb.mxu1 %v2996_v60 }
0x1588   :  { %3007 = vmatpush.bf16.msrb.mxu1 %v2995_v30 }
0x158b   :  { %3536 = vmatmul.msk.bf16.vlgmr.msrb.gmra.mxu1 %vm473_vm4, %v91_v51 }
0x1608   :  { %v3009_v48 = vpop.f32.mrf.mxu1 }
0x1609   :  { %v3013_v61 = vpack.c.bf16 %v3009_v48, %v3009_v48 }
0x160b   :  { %3541 = vmatmul.msk.bf16.vlgmr.msrb.gmra.mxu2 %vm276_vm3, %v3013_v61 }
0x1610   :  { %v3011_v16 = vpop.f32.mrf.mxu1 }
0x168e   :  { %v3033_v23 = vpop.f32.mrf.mxu2 }
0x168f   :  { %v3034_v40 = vadd.f32 %v3033_v23, %v3014_v12 }
0x1691   :  { %3037 = vst [vmem:[#allocation8] sm:$0x3] %v3034_v40 }
0x1692   :  { %3048 = dma.vmem_to_hbm [thread:$0]  %s3044_s13, 32, %s3046_s10, [#allocation4]  }
0x1696   :  { %v3035_v14 = vpop.f32.mrf.mxu2 }
0x1697   :  { %3964 = dma.done.wait [#allocation4], 32  }
0x1698   :  { %3965 = vsyncadd [#allocation4], 4294967264 }
0x1699   :  { %3053 = vsyncpa [#allocation3], 1 }
0x169a   :  { %3054 = vsyncpa [#allocation6], 1 }
0x169b   :  { %3055 = vsyncpa [#allocation4], 1 }

</bundles_post_ra>
